<compile_context>
chip_gen: v6e
topology: v6e:2x2x1
jax: 0.10.0
libtpu: 0.0.40
codegen_flags: <defaults>
</compile_context>

<pallas_src>
import jax
import jax.numpy as jnp
from jax import lax
from jax.experimental import pallas as pl
from jax.experimental.pallas import tpu as pltpu


# ------------------------------- Pallas kernel -------------------------------


def _pam_flash_kernel(gamma_ref, x_ref, q_ref, k_ref, v_ref, o_ref, m_sc, l_sc):
    """One (batch, q-tile, kv-tile) grid step of position attention.

    gamma_ref : SMEM (1, 1)         residual scale
    x_ref     : VMEM (1, tq, Cp)    residual rows of this q tile (f32, padded)
    q_ref     : VMEM (1, tq, Cq)    precomputed query rows (bf16)
    k_ref     : VMEM (1, tk, Cq)    precomputed key rows   (bf16)
    v_ref     : VMEM (1, tk, Cp)    precomputed value rows (bf16, padded)
    o_ref     : VMEM (1, tq, Cp)    f32 output block, doubles as the accumulator
    m_sc,l_sc : VMEM (tq, 1)        online-softmax running max / sum
    """
    ki = pl.program_id(2)

    @pl.when(ki == 0)
    def _init():
        m_sc[...] = jnp.full_like(m_sc, -jnp.inf)
        l_sc[...] = jnp.zeros_like(l_sc)
        o_ref[...] = jnp.zeros_like(o_ref)

    q = q_ref[0]                                   # (tq, Cq) bf16
    k = k_ref[0]                                   # (tk, Cq) bf16
    v = v_ref[0]                                   # (tk, Cp) bf16

    # Scores for this (q-tile, kv-tile) block: energy[i, j] = q_i . k_j
    s = lax.dot_general(q, k, (((1,), (1,)), ((), ())),
                        preferred_element_type=jnp.float32)            # (tq, tk)

    # Online softmax update (flash-attention style), accumulating into o_ref.
    m_prev = m_sc[...]
    m_new = jnp.maximum(m_prev, jnp.max(s, axis=-1, keepdims=True))
    alpha = jnp.exp(m_prev - m_new)
    p = jnp.exp(s - m_new)
    l_sc[...] = alpha * l_sc[...] + jnp.sum(p, axis=-1, keepdims=True)
    pv = jnp.dot(p.astype(jnp.bfloat16), v, preferred_element_type=jnp.float32)
    o_ref[0] = alpha * o_ref[0] + pv
    m_sc[...] = m_new

    @pl.when(ki == pl.num_programs(2) - 1)
    def _finalize():
        # Exact reciprocal: runs once per q tile, cost negligible, keeps parity
        # with the f32 softmax of the PyTorch reference.
        inv_l = pl.reciprocal(l_sc[...], approx=False)
        o_ref[0] = gamma_ref[0, 0] * (o_ref[0] * inv_l) + x_ref[0]


# --------------------------------- wrapper -----------------------------------


def _pick_tile(hw, preferred):
    """Largest tile <= preferred dividing hw; prefer multiples of 256, then 128, then 8."""
    if hw <= preferred:
        return hw
    for align in (256, 128, 8):
        t = (preferred // align) * align
        while t >= align:
            if hw % t == 0:
                return t
            t -= align
    return hw


def pam_module(x_nchw, params, *, tq=256, tk=256, interpret=False):
    """Position attention module forward: gamma * attention(x) + x, NCHW in/out."""
    B, C, H, W = x_nchw.shape
    hw = H * W
    cq = params["wq"].shape[-1]
    assert hw % 8 == 0, "H*W must be a multiple of 8 for TPU tiling"
    tq = _pick_tile(hw, tq)
    tk = _pick_tile(hw, tk)

    # channels-last flattened layout: (B, HW, C); f32 residual stream.
    x_flat = jnp.transpose(x_nchw, (0, 2, 3, 1)).reshape(B, hw, C).astype(jnp.float32)

    # Hoisted 1x1-conv projections: one XLA batched matmul each (f32 math),
    # streamed into the kernel as bf16 to halve the repeated kv-side HBM reads.
    q = (x_flat @ params["wq"] + params["bq"]).astype(jnp.bfloat16)    # (B, HW, Cq)
    k = (x_flat @ params["wk"] + params["bk"]).astype(jnp.bfloat16)    # (B, HW, Cq)
    v = (x_flat @ params["wv"] + params["bv"]).astype(jnp.bfloat16)    # (B, HW, C)

    # Pad channels to a lane-dense multiple of 128 so V tiles and output stores
    # are unmasked.  Zero-padded value channels stay zero through attention and
    # the zero-padded residual keeps them zero in the output; sliced off below.
    cp = max(128, ((C + 127) // 128) * 128)
    if cp != C:
        pad = ((0, 0), (0, 0), (0, cp - C))
        x_flat = jnp.pad(x_flat, pad)
        v = jnp.pad(v, pad)

    gamma = params["gamma"].reshape(1, 1).astype(jnp.float32)
    grid = (B, hw // tq, hw // tk)

    out_flat = pl.pallas_call(
        _pam_flash_kernel,
        out_shape=jax.ShapeDtypeStruct((B, hw, cp), jnp.float32),
        grid_spec=pltpu.PrefetchScalarGridSpec(
            num_scalar_prefetch=0,
            grid=grid,
            in_specs=[
                pl.BlockSpec(memory_space=pltpu.MemorySpace.SMEM),         # gamma
                pl.BlockSpec((1, tq, cp), lambda b, qi, ki: (b, qi, 0)),   # x residual
                pl.BlockSpec((1, tq, cq), lambda b, qi, ki: (b, qi, 0)),   # Q
                pl.BlockSpec((1, tk, cq), lambda b, qi, ki: (b, ki, 0)),   # K
                pl.BlockSpec((1, tk, cp), lambda b, qi, ki: (b, ki, 0)),   # V
            ],
            out_specs=pl.BlockSpec((1, tq, cp), lambda b, qi, ki: (b, qi, 0)),
            scratch_shapes=[
                pltpu.VMEM((tq, 1), jnp.float32),   # running max
                pltpu.VMEM((tq, 1), jnp.float32),   # running sum
            ],
        ),
        compiler_params=pltpu.CompilerParams(
            dimension_semantics=("parallel", "parallel", "arbitrary"),
            # Footprint is small even at 256/512 tiles; 48 MiB stays within
            # v7x's 64 MiB per-TC VMEM while giving headroom on v5e/v6e.
            vmem_limit_bytes=48 * 1024 * 1024,
        ),
        interpret=interpret,
    )(gamma, x_flat, q, k, v)

    out_flat = out_flat[:, :, :C]
    return jnp.transpose(out_flat.reshape(B, H, W, C), (0, 3, 1, 2))   # back to NCHW


# --------------------------- deterministic parameters -------------------------


def init_params(key, in_dim):
    cq = in_dim // 8
    assert cq >= 1, "in_dim must be >= 8 (PyTorch PAM_Module uses in_dim // 8)"
    ks = jax.random.split(key, 6)
    return {
        "wq": 0.1 * jax.random.normal(ks[0], (in_dim, cq), jnp.float32),
        "bq": 0.05 * jax.random.normal(ks[1], (1, cq), jnp.float32),
        "wk": 0.1 * jax.random.normal(ks[2], (in_dim, cq), jnp.float32),
        "bk": 0.05 * jax.random.normal(ks[3], (1, cq), jnp.float32),
        "wv": 0.1 * jax.random.normal(ks[4], (in_dim, in_dim), jnp.float32),
        "bv": 0.05 * jax.random.normal(ks[5], (1, in_dim), jnp.float32),
        # PyTorch initializes gamma to 0 (module == identity at init); use a nonzero
        # deterministic value so the attention path is actually exercised in the test.
        "gamma": jnp.full((1,), 0.5, jnp.float32),
    }


# ------------------------------ pure-JAX reference ----------------------------


def pam_reference(params, x_nchw):
    B, C, H, W = x_nchw.shape
    hw = H * W
    xf = jnp.transpose(x_nchw, (0, 2, 3, 1)).reshape(B, hw, C).astype(jnp.float32)
    q = xf @ params["wq"] + params["bq"]
    k = xf @ params["wk"] + params["bk"]
    v = xf @ params["wv"] + params["bv"]
    energy = jnp.einsum("bic,bjc->bij", q, k)
    att = jax.nn.softmax(energy, axis=-1)
    out = jnp.einsum("bij,bjc->bic", att, v)
    res = params["gamma"] * out + xf
    return jnp.transpose(res.reshape(B, H, W, C), (0, 3, 1, 2))


# ------------------------------------ main ------------------------------------


if __name__ == "__main__":
    key = jax.random.PRNGKey(0)
    k_param, k_x = jax.random.split(key)

    B, C, H, W = 2, 64, 16, 16          # HW = 256 -> single 256-tile per axis
    params = init_params(k_param, C)
    x = jax.random.normal(k_x, (B, C, H, W), jnp.float32)

    fwd = jax.jit(pam_module)
    out = jax.block_until_ready(fwd(x, params))

    assert out.shape == (B, C, H, W), out.shape
    assert bool(jnp.all(jnp.isfinite(out)))

    ref = jax.block_until_ready(pam_reference(params, x))
    max_err = float(jnp.max(jnp.abs(out - ref)))
    # Tolerance covers bf16 Q/K/V streams (f32 accumulation everywhere else).
    assert max_err < 2e-2, f"max abs err {max_err}"

    print("KERNEL_OK")
</pallas_src>

<mosaic_0001>
module attributes {stable_mosaic.version = 11 : i64} {
  func.func @_pam_flash_kernel(%arg0: i32, %arg1: i32, %arg2: i32, %arg3: memref<1x1xf32, #tpu.memory_space<smem>>, %arg4: memref<1x256x128xf32, #tpu.memory_space<vmem>>, %arg5: memref<1x256x8xbf16, #tpu.memory_space<vmem>>, %arg6: memref<1x256x8xbf16, #tpu.memory_space<vmem>>, %arg7: memref<1x256x128xbf16, #tpu.memory_space<vmem>>, %arg8: memref<1x256x128xf32, #tpu.memory_space<vmem>>, %arg9: memref<256x1xf32, #tpu.memory_space<vmem>>, %arg10: memref<256x1xf32, #tpu.memory_space<vmem>>) attributes {dimension_semantics = [#tpu.dimension_semantics<parallel>, #tpu.dimension_semantics<parallel>, #tpu.dimension_semantics<arbitrary>], iteration_bounds = array<i64: 2, 1, 1>, scalar_prefetch = 0 : i64, scratch_operands = 2 : i64, tpu.core_type = #tpu.core_type<tc>, window_params = [{transform_indices = @transform_0, window_bounds = array<i64: 1, 1>}, {transform_indices = @transform_1, window_bounds = array<i64: 1, 256, 128>}, {transform_indices = @transform_2, window_bounds = array<i64: 1, 256, 8>}, {transform_indices = @transform_3, window_bounds = array<i64: 1, 256, 8>}, {transform_indices = @transform_4, window_bounds = array<i64: 1, 256, 128>}, {transform_indices = @transform_5, window_bounds = array<i64: 1, 256, 128>}]} {
    %c0_i32 = arith.constant 0 : i32
    %0 = arith.cmpi eq, %arg2, %c0_i32 : i32
    %1 = arith.extui %0 : i1 to i32
    %c0_i32_0 = arith.constant 0 : i32
    %2 = arith.cmpi ne, %1, %c0_i32_0 : i32
    scf.if %2 {
      %cst_28 = arith.constant 0xFF800000 : f32
      %39 = vector.broadcast %cst_28 : f32 to vector<256x1xf32>
      %c0_29 = arith.constant 0 : index
      %c0_30 = arith.constant 0 : index
      %40 = vector.load %arg9[%c0_29, %c0_30] : memref<256x1xf32, #tpu.memory_space<vmem>>, vector<256x1xf32>
      tpu.vector_store %arg9[%c0_29, %c0_30], %39 {strides = array<i32>} : memref<256x1xf32, #tpu.memory_space<vmem>>, vector<256x1xf32>,
      %cst_31 = arith.constant 0.000000e+00 : f32
      %41 = vector.broadcast %cst_31 : f32 to vector<256x1xf32>
      %c0_32 = arith.constant 0 : index
      %c0_33 = arith.constant 0 : index
      %42 = vector.load %arg10[%c0_32, %c0_33] : memref<256x1xf32, #tpu.memory_space<vmem>>, vector<256x1xf32>
      tpu.vector_store %arg10[%c0_32, %c0_33], %41 {strides = array<i32>} : memref<256x1xf32, #tpu.memory_space<vmem>>, vector<256x1xf32>,
      %cst_34 = arith.constant 0.000000e+00 : f32
      %43 = vector.broadcast %cst_34 : f32 to vector<1x256x128xf32>
      %c0_35 = arith.constant 0 : index
      %c0_36 = arith.constant 0 : index
      %c0_37 = arith.constant 0 : index
      %44 = vector.load %arg8[%c0_35, %c0_36, %c0_37] : memref<1x256x128xf32, #tpu.memory_space<vmem>>, vector<1x256x128xf32>
      tpu.vector_store %arg8[%c0_35, %c0_36, %c0_37], %43 {strides = array<i32>} : memref<1x256x128xf32, #tpu.memory_space<vmem>>, vector<1x256x128xf32>,
    } else {
    }
    %c0 = arith.constant 0 : index
    %c0_1 = arith.constant 0 : index
    %c0_2 = arith.constant 0 : index
    %3 = vector.load %arg5[%c0, %c0_1, %c0_2] : memref<1x256x8xbf16, #tpu.memory_space<vmem>>, vector<1x256x8xbf16>
    %4 = vector.shape_cast %3 : vector<1x256x8xbf16> to vector<256x8xbf16>
    %c0_3 = arith.constant 0 : index
    %c0_4 = arith.constant 0 : index
    %c0_5 = arith.constant 0 : index
    %5 = vector.load %arg6[%c0_3, %c0_4, %c0_5] : memref<1x256x8xbf16, #tpu.memory_space<vmem>>, vector<1x256x8xbf16>
    %6 = vector.shape_cast %5 : vector<1x256x8xbf16> to vector<256x8xbf16>
    %c0_6 = arith.constant 0 : index
    %c0_7 = arith.constant 0 : index
    %c0_8 = arith.constant 0 : index
    %7 = vector.load %arg7[%c0_6, %c0_7, %c0_8] : memref<1x256x128xbf16, #tpu.memory_space<vmem>>, vector<1x256x128xbf16>
    %8 = vector.shape_cast %7 : vector<1x256x128xbf16> to vector<256x128xbf16>
    %cst = arith.constant dense<0.000000e+00> : vector<256x256xf32>
    %9 = tpu.matmul %4, %6, %cst {dimension_numbers = #tpu.dot_dimension_numbers<[1], [1], [0], [0], [0, 0, 1, 0], [], []>} : vector<256x8xbf16>, vector<256x8xbf16>, vector<256x256xf32> -> vector<256x256xf32>
    %c0_9 = arith.constant 0 : index
    %c0_10 = arith.constant 0 : index
    %10 = vector.load %arg9[%c0_9, %c0_10] : memref<256x1xf32, #tpu.memory_space<vmem>>, vector<256x1xf32>
    %cst_11 = arith.constant dense<0xFF800000> : vector<256xf32>
    %11 = vector.multi_reduction <maximumf>, %9, %cst_11 [1] : vector<256x256xf32> to vector<256xf32>
    %12 = vector.shape_cast %11 : vector<256xf32> to vector<256x1xf32>
    %13 = arith.maximumf %10, %12 : vector<256x1xf32>
    %14 = arith.subf %10, %13 : vector<256x1xf32>
    %15 = math.exp %14 : vector<256x1xf32>
    %16 = vector.broadcast %13 : vector<256x1xf32> to vector<256x256xf32>
    %17 = arith.subf %9, %16 : vector<256x256xf32>
    %18 = math.exp %17 : vector<256x256xf32>
    %c0_12 = arith.constant 0 : index
    %c0_13 = arith.constant 0 : index
    %19 = vector.load %arg10[%c0_12, %c0_13] : memref<256x1xf32, #tpu.memory_space<vmem>>, vector<256x1xf32>
    %20 = arith.mulf %15, %19 : vector<256x1xf32>
    %cst_14 = arith.constant dense<0.000000e+00> : vector<256xf32>
    %21 = vector.multi_reduction <add>, %18, %cst_14 [1] : vector<256x256xf32> to vector<256xf32>
    %22 = vector.shape_cast %21 : vector<256xf32> to vector<256x1xf32>
    %23 = arith.addf %20, %22 : vector<256x1xf32>
    %c0_15 = arith.constant 0 : index
    %c0_16 = arith.constant 0 : index
    %24 = vector.load %arg10[%c0_15, %c0_16] : memref<256x1xf32, #tpu.memory_space<vmem>>, vector<256x1xf32>
    tpu.vector_store %arg10[%c0_15, %c0_16], %23 {strides = array<i32>} : memref<256x1xf32, #tpu.memory_space<vmem>>, vector<256x1xf32>,
    %25 = arith.truncf %18 : vector<256x256xf32> to vector<256x256xbf16>
    %cst_17 = arith.constant dense<0.000000e+00> : vector<256x128xf32>
    %26 = tpu.matmul %25, %8, %cst_17 {dimension_numbers = #tpu.dot_dimension_numbers<[1], [0], [0], [1], [0, 0, 1, 1], [], []>} : vector<256x256xbf16>, vector<256x128xbf16>, vector<256x128xf32> -> vector<256x128xf32>
    %c0_18 = arith.constant 0 : index
    %c0_19 = arith.constant 0 : index
    %c0_20 = arith.constant 0 : index
    %27 = vector.load %arg8[%c0_18, %c0_19, %c0_20] : memref<1x256x128xf32, #tpu.memory_space<vmem>>, vector<1x256x128xf32>
    %28 = vector.shape_cast %27 : vector<1x256x128xf32> to vector<256x128xf32>
    %29 = vector.broadcast %15 : vector<256x1xf32> to vector<256x128xf32>
    %30 = arith.mulf %29, %28 : vector<256x128xf32>
    %31 = arith.addf %30, %26 : vector<256x128xf32>
    %c0_21 = arith.constant 0 : index
    %c0_22 = arith.constant 0 : index
    %c0_23 = arith.constant 0 : index
    %32 = vector.load %arg8[%c0_21, %c0_22, %c0_23] : memref<1x256x128xf32, #tpu.memory_space<vmem>>, vector<1x256x128xf32>
    %33 = vector.shape_cast %32 : vector<1x256x128xf32> to vector<256x128xf32>
    %34 = vector.shape_cast %31 : vector<256x128xf32> to vector<1x256x128xf32>
    tpu.vector_store %arg8[%c0_21, %c0_22, %c0_23], %34 {strides = array<i32>} : memref<1x256x128xf32, #tpu.memory_space<vmem>>, vector<1x256x128xf32>,
    %c0_24 = arith.constant 0 : index
    %c0_25 = arith.constant 0 : index
    %35 = vector.load %arg9[%c0_24, %c0_25] : memref<256x1xf32, #tpu.memory_space<vmem>>, vector<256x1xf32>
    tpu.vector_store %arg9[%c0_24, %c0_25], %13 {strides = array<i32>} : memref<256x1xf32, #tpu.memory_space<vmem>>, vector<256x1xf32>,
    %c0_i32_26 = arith.constant 0 : i32
    %36 = arith.cmpi eq, %arg2, %c0_i32_26 : i32
    %37 = arith.extui %36 : i1 to i32
    %c0_i32_27 = arith.constant 0 : i32
    %38 = arith.cmpi ne, %37, %c0_i32_27 : i32
    scf.if %38 {
      %c0_28 = arith.constant 0 : index
      %c0_29 = arith.constant 0 : index
      %39 = vector.load %arg10[%c0_28, %c0_29] : memref<256x1xf32, #tpu.memory_space<vmem>>, vector<256x1xf32>
      %40 = tpu.reciprocal %39 : vector<256x1xf32> -> vector<256x1xf32>
      %c0_30 = arith.constant 0 : index
      %c0_31 = arith.constant 0 : index
      %41 = memref.load %arg3[%c0_30, %c0_31] : memref<1x1xf32, #tpu.memory_space<smem>>
      %c0_32 = arith.constant 0 : index
      %c0_33 = arith.constant 0 : index
      %c0_34 = arith.constant 0 : index
      %42 = vector.load %arg8[%c0_32, %c0_33, %c0_34] : memref<1x256x128xf32, #tpu.memory_space<vmem>>, vector<1x256x128xf32>
      %43 = vector.shape_cast %42 : vector<1x256x128xf32> to vector<256x128xf32>
      %44 = vector.broadcast %40 : vector<256x1xf32> to vector<256x128xf32>
      %45 = arith.mulf %43, %44 : vector<256x128xf32>
      %46 = vector.broadcast %41 : f32 to vector<256x128xf32>
      %47 = arith.mulf %46, %45 : vector<256x128xf32>
      %c0_35 = arith.constant 0 : index
      %c0_36 = arith.constant 0 : index
      %c0_37 = arith.constant 0 : index
      %48 = vector.load %arg4[%c0_35, %c0_36, %c0_37] : memref<1x256x128xf32, #tpu.memory_space<vmem>>, vector<1x256x128xf32>
      %49 = vector.shape_cast %48 : vector<1x256x128xf32> to vector<256x128xf32>
      %50 = arith.addf %47, %49 : vector<256x128xf32>
      %c0_38 = arith.constant 0 : index
      %c0_39 = arith.constant 0 : index
      %c0_40 = arith.constant 0 : index
      %51 = vector.load %arg8[%c0_38, %c0_39, %c0_40] : memref<1x256x128xf32, #tpu.memory_space<vmem>>, vector<1x256x128xf32>
      %52 = vector.shape_cast %51 : vector<1x256x128xf32> to vector<256x128xf32>
      %53 = vector.shape_cast %50 : vector<256x128xf32> to vector<1x256x128xf32>
      tpu.vector_store %arg8[%c0_38, %c0_39, %c0_40], %53 {strides = array<i32>} : memref<1x256x128xf32, #tpu.memory_space<vmem>>, vector<1x256x128xf32>,
    } else {
    }
    return
  }
  func.func @transform_0(%arg0: i32, %arg1: i32, %arg2: i32) -> (i32, i32) {
    %c0_i32 = arith.constant 0 : i32
    %c0_i32_0 = arith.constant 0 : i32
    %c0_i32_1 = arith.constant 0 : i32
    return %c0_i32, %c0_i32_0 : i32, i32
  }
  func.func @transform_1(%arg0: i32, %arg1: i32, %arg2: i32) -> (i32, i32, i32) {
    %c0_i32 = arith.constant 0 : i32
    %c0_i32_0 = arith.constant 0 : i32
    return %arg0, %arg1, %c0_i32 : i32, i32, i32
  }
  func.func @transform_2(%arg0: i32, %arg1: i32, %arg2: i32) -> (i32, i32, i32) {
    %c0_i32 = arith.constant 0 : i32
    %c0_i32_0 = arith.constant 0 : i32
    return %arg0, %arg1, %c0_i32 : i32, i32, i32
  }
  func.func @transform_3(%arg0: i32, %arg1: i32, %arg2: i32) -> (i32, i32, i32) {
    %c0_i32 = arith.constant 0 : i32
    %c0_i32_0 = arith.constant 0 : i32
    return %arg0, %arg2, %c0_i32 : i32, i32, i32
  }
  func.func @transform_4(%arg0: i32, %arg1: i32, %arg2: i32) -> (i32, i32, i32) {
    %c0_i32 = arith.constant 0 : i32
    %c0_i32_0 = arith.constant 0 : i32
    return %arg0, %arg2, %c0_i32 : i32, i32, i32
  }
  func.func @transform_5(%arg0: i32, %arg1: i32, %arg2: i32) -> (i32, i32, i32) {
    %c0_i32 = arith.constant 0 : i32
    %c0_i32_0 = arith.constant 0 : i32
    return %arg0, %arg1, %c0_i32 : i32, i32, i32
  }
}

</mosaic_0001>

<bundles_post_ra>
// kernel: pam_module.1
= control target key start
LH: loop header
LB: loop body
LE: loop exit
PB: predicated region body
PF: predicated region fallthrough
CT: control target
= control target key end

     0   :  { %s5417_s0 = inlined_call_operand.<no memory space> [shape: f32[1,1], index: 0, kind: input, shape index: {}]   ;;  %s5418_s1 = inlined_call_operand.vmem [shape: f32[2,256,128], index: 1, kind: input, shape index: {}]   ;;  %s5419_s2 = inlined_call_operand.vmem [shape: bf16[2,256,8], index: 2, kind: input, shape index: {}]   ;;  %s5420_s3 = inlined_call_operand.vmem [shape: bf16[2,256,8], index: 3, kind: input, shape index: {}]   ;;  %s5421_s4 = inlined_call_operand.vmem [shape: bf16[2,256,128], index: 4, kind: input, shape index: {}]   ;;  %s5422_s5 = inlined_call_operand.hbm [shape: f32[2,256,128], index: 5, kind: output, shape index: {}]  }
   0x1   :  { %10 = sst [smem:[#allocation4]] %s5417_s0 }
   0x2   :  { %11 = vsyncpa [#allocation6], 0 }
   0x3   :  { %13 = vsyncpa [#allocation6 + $0x1], 0  ;;  %s3772_s20 = smov 0   ;;  %s3774_s21 = smov 0  }
   0x4   :  { %s3776_s22 = smov 0   ;;  %s3778_s23 = smov 0  }
   0x5   :  { %s3780_s24 = smov 0   ;;  %s3782_s25 = smov 0  }
   0x6 LB: > { %s3033_s0 = sadd.s32 4294967295, %s3731_s25   ;;  %s3034_s26 = sadd.s32 4294967294, %s3731_s25   ;;  %s3731_s25 = sphi %s3782_s25, %s19_s25   ;;  %s3727_s24 = sphi %s3780_s24, %s5726_s24   ;;  %s3723_s23 = sphi %s3778_s23, %s5725_s23   ;;  %s3719_s22 = sphi %s3776_s22, %s5724_s22   ;;  %s3715_s21 = sphi %s3774_s21, %s5723_s21   ;;  %s3711_s20 = sphi %s3772_s20, %s5722_s20  }
   0x7   : > { %s38_s27 = sadd.s32 1, %s3727_s24  ;;  %s180_s28 = sadd.s32 1, %s3719_s22 }
   0x8   : > { %p40_p0 = scmp.ge.s32.totalorder %s38_s27, 2  ;;  %p190_p1 = scmp.ne.s32.totalorder %s3719_s22, %s3715_s21 }
   0x9   : > { %p191_p2 = scmp.eq.s32.totalorder %s3033_s0, 1  ;;  %p196_p3 = scmp.ne.s32.totalorder %s3715_s21, %s3711_s20 }
   0xa   : > { %s5728_s27 = smov (%p40_p0, %s38_s27), 0  ;;  %p197_p5 = scmp.eq.s32.totalorder %s3034_s26, 1 }
   0xb   : > { %p3812_p4 = por %p191_p2, %p190_p1  ;;  %s175_s30 = ssub.s32 %s3727_s24, %s5728_s27 }
   0xc   : > { %p3037_p6 = scmp.ge.s32.totalorder %s3731_s25, 1  ;;  %p178_p7 = scmp.eq.s32.totalorder %s175_s30, 0 }
   0xd   : > { %p3819_p8 = por %p197_p5, %p196_p3  ;;  %p270_p9 = scmp.lt.s32.totalorder %s3731_s25, 3 }
   0xe   : > { %s3825_s7 = scalar_select %p178_p7, %s3719_s22, %s180_s28  }
   0xf   : > { %p271_p10 = pnand %p3037_p6, %p270_p9 }
  0x11   : > { %274 = sbr.rel (%p271_p10) target bundleno = 1014 (0x3f6), region = 40 }
  0x16   : > { %p330_p11 = scmp.lt.s32.totalorder %s3723_s23, 1  ;;  %vm728_vm0 = vcmask 64512   ;;  %vm375_vm1 = vcmask 7168   ;;  %v3733_v42 = vmov -inf   ;;  %v3734_v55 = vmov 0   ;;  %s2527_s19 = sld [smem:[#allocation4]] }
  0x17   : > { %376 = vst.msk [vmem:[#allocation2] sm:$0xff] %vm375_vm1, %v3733_v42  ;;  %377 = vst.msk [vmem:[#allocation2 + $0x8] sm:$0xff] %vm375_vm1, %v3733_v42  ;;  %3349 = vset.pattern.permute.xlu0 %v3734_v55  ;;  %3350 = vset.pattern.permute.xlu1 %v3734_v55  ;;  %s326_s26 = sand.u32 1, %s3715_s21   ;;  %s3120_s11 = sshll.u32 %s3723_s23, 12 }
  0x18   : > { %s3829_s8 = scalar_select %p330_p11, %s3723_s23, 1  ;;  %378 = vst.msk [vmem:[#allocation2 + $0x10] sm:$0xff] %vm375_vm1, %v3733_v42  ;;  %379 = vst.msk [vmem:[#allocation2 + $0x18] sm:$0xff] %vm375_vm1, %v3733_v42 }
  0x19   : > { %380 = vst.msk [vmem:[#allocation2 + $0x20] sm:$0xff] %vm375_vm1, %v3733_v42  ;;  %381 = vst.msk [vmem:[#allocation2 + $0x28] sm:$0xff] %vm375_vm1, %v3733_v42  ;;  %s5372_s23 = scalar_lea.sflag [#allocation6], %s326_s26  ;;  %s3736_s17 = smov [#allocation5]  }
  0x1a   : > { %s3832_s9 = sshll.u32 %s3829_s8, 7  ;;  %382 = vst.msk [vmem:[#allocation2 + $0x30] sm:$0xff] %vm375_vm1, %v3733_v42  ;;  %383 = vst.msk [vmem:[#allocation2 + $0x38] sm:$0xff] %vm375_vm1, %v3733_v42  ;;  %s3116_s0 = sshll.u32 %s3829_s8, 8 }
  0x1b   : > { %s3838_s12 = scalar_lea.vmem %s5420_s3, %s3832_s9  ;;  %s3855_s15 = scalar_lea.vmem %s5419_s2, %s3832_s9  ;;  %384 = vst.msk [vmem:[#allocation2 + $0x40] sm:$0xff] %vm375_vm1, %v3733_v42  ;;  %385 = vst.msk [vmem:[#allocation2 + $0x48] sm:$0xff] %vm375_vm1, %v3733_v42 }
  0x1c   : > { %v3351_v0 = vld [vmem:[%s3838_s12 + $0x78] sm:$0xff]   ;;  %v3353_v2 = vld [vmem:[%s3838_s12 + $0x70] sm:$0xff]   ;;  %v3355_v6 = vld [vmem:[%s3838_s12 + $0x68] sm:$0xff]   ;;  %386 = vst.msk [vmem:[#allocation2 + $0x50] sm:$0xff] %vm375_vm1, %v3733_v42  ;;  %s4186_s18 = scalar_lea.vmem %s5421_s4, %s3832_s9  ;;  %s5145_s9 = scalar_lea.vmem %s5418_s1, %s3116_s0 }
  0x1d   : > { %v3352_v1 = vld [vmem:[%s3838_s12 + $0x38] sm:$0xff]   ;;  %3281 = vmatprep.subr.msk.bf16.mxu0 %vm728_vm0, %v3351_v0  ;;  %v3354_v4 = vld [vmem:[%s3838_s12 + $0x30] sm:$0xff]   ;;  %v3356_v7 = vld [vmem:[%s3838_s12 + $0x28] sm:$0xff]   ;;  %387 = vst.msk [vmem:[#allocation2 + $0x58] sm:$0xff] %vm375_vm1, %v3733_v42  ;;  %v3735_v0 = vmov 0.0   ;;  %s3038_s8 = sshll.u32 %s326_s26, 8 }
  0x1e   : > { %v799_v3 = vsel %vm728_vm0, %v3352_v1, 0  ;;  %v796_v5 = vsel %vm728_vm0, %v3354_v4, 0  ;;  %v3367_v8 = vld [vmem:[%s3855_s15] sm:$0xff]   ;;  %v793_v9 = vsel %vm728_vm0, %v3356_v7, 0  ;;  %v3359_v13 = vld [vmem:[%s3838_s12 + $0x58] sm:$0xff]   ;;  %v3361_v16 = vld [vmem:[%s3838_s12 + $0x50] sm:$0xff]  }
  0x1f   : > { %3122 = vmatpush3.bf16.xpose.msra.mxu0 %v799_v3  ;;  %v3357_v10 = vld [vmem:[%s3838_s12 + $0x60] sm:$0xff]   ;;  %3137 = vmatprep.mubr.msk.bf16.mxu0 %vm728_vm0, %v3367_v8  ;;  %v3360_v14 = vld [vmem:[%s3838_s12 + $0x18] sm:$0xff]   ;;  %v3362_v17 = vld [vmem:[%s3838_s12 + $0x10] sm:$0xff]   ;;  %388 = vst.msk [vmem:[#allocation2 + $0x60] sm:$0xff] %vm375_vm1, %v3733_v42  ;;  %s5168_s10 = scalar_lea.vmem [#allocation5], %s3038_s8 }
  0x20   : > { %3282 = vmatprep.subr.msk.bf16.mxu0 %vm728_vm0, %v3353_v2  ;;  %v3358_v11 = vld [vmem:[%s3838_s12 + $0x20] sm:$0xff]   ;;  %v787_v15 = vsel %vm728_vm0, %v3360_v14, 0  ;;  %v784_v18 = vsel %vm728_vm0, %v3362_v17, 0  ;;  %v3363_v19 = vld [vmem:[%s3838_s12 + $0x48] sm:$0xff]   ;;  %v3369_v26 = vld [vmem:[%s3855_s15 + $0x10] sm:$0xff]   ;;  %389 = vst.msk [vmem:[#allocation2 + $0x68] sm:$0xff] %vm375_vm1, %v3733_v42 }
  0x21   : > { %v790_v12 = vsel %vm728_vm0, %v3358_v11, 0  ;;  %v3364_v20 = vld [vmem:[%s3838_s12 + $0x8] sm:$0xff]   ;;  %v3365_v22 = vld [vmem:[%s3838_s12 + $0x40] sm:$0xff]   ;;  %v3370_v27 = vld [vmem:[%s3855_s15 + $0x18] sm:$0xff]   ;;  %390 = vst.msk [vmem:[#allocation2 + $0x70] sm:$0xff] %vm375_vm1, %v3733_v42 }
  0x22   : > { %v781_v21 = vsel %vm728_vm0, %v3364_v20, 0  ;;  %v3366_v23 = vld [vmem:[%s3838_s12] sm:$0xff]   ;;  %v3368_v25 = vld [vmem:[%s3855_s15 + $0x8] sm:$0xff]   ;;  %v3373_v30 = vld [vmem:[%s3855_s15 + $0x30] sm:$0xff]   ;;  %391 = vst.msk [vmem:[#allocation2 + $0x78] sm:$0xff] %vm375_vm1, %v3733_v42  ;;  %s2897_s12 = sshll.u32 %s5168_s10, 4  ;;  %s5366_s12 = int_to_ptr.vmem [resolvable:$true] %s2897_s12 }
  0x23   : > { %v778_v24 = vsel %vm728_vm0, %v3366_v23, 0  ;;  %v3371_v28 = vld [vmem:[%s3855_s15 + $0x20] sm:$0xff]   ;;  %v3372_v29 = vld [vmem:[%s3855_s15 + $0x28] sm:$0xff]   ;;  %v3374_v31 = vld [vmem:[%s3855_s15 + $0x38] sm:$0xff]   ;;  %392 = vst.msk [vmem:[#allocation2 + $0x80] sm:$0xff] %vm375_vm1, %v3733_v42  ;;  %s3655_s16 = scalar_lea.vmem %s5366_s12, 4096 }
  0x24   : > { %v3375_v32 = vld [vmem:[%s3855_s15 + $0x40] sm:$0xff]   ;;  %v3376_v33 = vld [vmem:[%s3855_s15 + $0x48] sm:$0xff]   ;;  %v3377_v34 = vld [vmem:[%s3855_s15 + $0x50] sm:$0xff]   ;;  %393 = vst.msk [vmem:[#allocation2 + $0x88] sm:$0xff] %vm375_vm1, %v3733_v42  ;;  %p3656_p12 = scmp.ne.s32.totalorder %s5366_s12, %s3655_s16 }
  0x25   : > { %v3378_v35 = vld [vmem:[%s3855_s15 + $0x58] sm:$0xff]   ;;  %v3379_v36 = vld [vmem:[%s3855_s15 + $0x60] sm:$0xff]   ;;  %v3380_v37 = vld [vmem:[%s3855_s15 + $0x68] sm:$0xff]   ;;  %394 = vst.msk [vmem:[#allocation2 + $0x90] sm:$0xff] %vm375_vm1, %v3733_v42 }
  0x26   : > { %v3381_v38 = vld [vmem:[%s3855_s15 + $0x70] sm:$0xff]   ;;  %v3382_v39 = vld [vmem:[%s3855_s15 + $0x78] sm:$0xff]   ;;  %395 = vst.msk [vmem:[#allocation2 + $0x98] sm:$0xff] %vm375_vm1, %v3733_v42  ;;  %396 = vst.msk [vmem:[#allocation2 + $0xa0] sm:$0xff] %vm375_vm1, %v3733_v42  ;;  %s5364_s15 = scalar_lea.hbm %s5422_s5, %s3120_s11  ;;  %p3657_p13 = pnand %p3656_p12, %p3812_p4 }
  0x27   : > { %3124 = vmatpush3.bf16.xpose.msra.mxu0 %v796_v5  ;;  %397 = vst.msk [vmem:[#allocation2 + $0xa8] sm:$0xff] %vm375_vm1, %v3733_v42  ;;  %398 = vst.msk [vmem:[#allocation2 + $0xb0] sm:$0xff] %vm375_vm1, %v3733_v42 }
  0x28   : > { %3283 = vmatprep.subr.msk.bf16.mxu0 %vm728_vm0, %v3355_v6  ;;  %399 = vst.msk [vmem:[#allocation2 + $0xb8] sm:$0xff] %vm375_vm1, %v3733_v42  ;;  %400 = vst.msk [vmem:[#allocation2 + $0xc0] sm:$0xff] %vm375_vm1, %v3733_v42  ;;  %p3658_p0 = pneg %p3657_p13 }
  0x29   : > { %401 = vst.msk [vmem:[#allocation2 + $0xc8] sm:$0xff] %vm375_vm1, %v3733_v42  ;;  %402 = vst.msk [vmem:[#allocation2 + $0xd0] sm:$0xff] %vm375_vm1, %v3733_v42 }
  0x2a   : > { %403 = vst.msk [vmem:[#allocation2 + $0xd8] sm:$0xff] %vm375_vm1, %v3733_v42  ;;  %404 = vst.msk [vmem:[#allocation2 + $0xe0] sm:$0xff] %vm375_vm1, %v3733_v42 }
  0x2b   : > { %405 = vst.msk [vmem:[#allocation2 + $0xe8] sm:$0xff] %vm375_vm1, %v3733_v42  ;;  %406 = vst.msk [vmem:[#allocation2 + $0xf0] sm:$0xff] %vm375_vm1, %v3733_v42 }
  0x2c   : > { %407 = vst.msk [vmem:[#allocation2 + $0xf8] sm:$0xff] %vm375_vm1, %v3733_v42  ;;  %408 = vst.msk [vmem:[#allocation3] sm:$0xff] %vm375_vm1, %v3735_v0 }
  0x2d   : > { %409 = vst.msk [vmem:[#allocation3 + $0x8] sm:$0xff] %vm375_vm1, %v3735_v0  ;;  %410 = vst.msk [vmem:[#allocation3 + $0x10] sm:$0xff] %vm375_vm1, %v3735_v0 }
  0x2e   : > { %411 = vst.msk [vmem:[#allocation3 + $0x18] sm:$0xff] %vm375_vm1, %v3735_v0  ;;  %412 = vst.msk [vmem:[#allocation3 + $0x20] sm:$0xff] %vm375_vm1, %v3735_v0 }
  0x2f   : > { %3126 = vmatpush3.bf16.xpose.msra.mxu0 %v793_v9  ;;  %413 = vst.msk [vmem:[#allocation3 + $0x28] sm:$0xff] %vm375_vm1, %v3735_v0  ;;  %414 = vst.msk [vmem:[#allocation3 + $0x30] sm:$0xff] %vm375_vm1, %v3735_v0 }
  0x30   : > { %3284 = vmatprep.subr.msk.bf16.mxu0 %vm728_vm0, %v3357_v10  ;;  %415 = vst.msk [vmem:[#allocation3 + $0x38] sm:$0xff] %vm375_vm1, %v3735_v0  ;;  %416 = vst.msk [vmem:[#allocation3 + $0x40] sm:$0xff] %vm375_vm1, %v3735_v0 }
  0x31   : > { %417 = vst.msk [vmem:[#allocation3 + $0x48] sm:$0xff] %vm375_vm1, %v3735_v0  ;;  %418 = vst.msk [vmem:[#allocation3 + $0x50] sm:$0xff] %vm375_vm1, %v3735_v0 }
  0x32   : > { %419 = vst.msk [vmem:[#allocation3 + $0x58] sm:$0xff] %vm375_vm1, %v3735_v0  ;;  %420 = vst.msk [vmem:[#allocation3 + $0x60] sm:$0xff] %vm375_vm1, %v3735_v0 }
  0x33   : > { %421 = vst.msk [vmem:[#allocation3 + $0x68] sm:$0xff] %vm375_vm1, %v3735_v0  ;;  %422 = vst.msk [vmem:[#allocation3 + $0x70] sm:$0xff] %vm375_vm1, %v3735_v0 }
  0x34   : > { %423 = vst.msk [vmem:[#allocation3 + $0x78] sm:$0xff] %vm375_vm1, %v3735_v0  ;;  %424 = vst.msk [vmem:[#allocation3 + $0x80] sm:$0xff] %vm375_vm1, %v3735_v0 }
  0x35   : > { %425 = vst.msk [vmem:[#allocation3 + $0x88] sm:$0xff] %vm375_vm1, %v3735_v0  ;;  %426 = vst.msk [vmem:[#allocation3 + $0x90] sm:$0xff] %vm375_vm1, %v3735_v0 }
  0x36   : > { %427 = vst.msk [vmem:[#allocation3 + $0x98] sm:$0xff] %vm375_vm1, %v3735_v0  ;;  %428 = vst.msk [vmem:[#allocation3 + $0xa0] sm:$0xff] %vm375_vm1, %v3735_v0 }
  0x37   : > { %3128 = vmatpush3.bf16.xpose.msra.mxu0 %v790_v12  ;;  %429 = vst.msk [vmem:[#allocation3 + $0xa8] sm:$0xff] %vm375_vm1, %v3735_v0  ;;  %430 = vst.msk [vmem:[#allocation3 + $0xb0] sm:$0xff] %vm375_vm1, %v3735_v0 }
  0x38   : > { %3285 = vmatprep.subr.msk.bf16.mxu0 %vm728_vm0, %v3359_v13  ;;  %431 = vst.msk [vmem:[#allocation3 + $0xb8] sm:$0xff] %vm375_vm1, %v3735_v0  ;;  %432 = vst.msk [vmem:[#allocation3 + $0xc0] sm:$0xff] %vm375_vm1, %v3735_v0 }
  0x39   : > { %433 = vst.msk [vmem:[#allocation3 + $0xc8] sm:$0xff] %vm375_vm1, %v3735_v0  ;;  %434 = vst.msk [vmem:[#allocation3 + $0xd0] sm:$0xff] %vm375_vm1, %v3735_v0 }
  0x3a   : > { %435 = vst.msk [vmem:[#allocation3 + $0xd8] sm:$0xff] %vm375_vm1, %v3735_v0  ;;  %436 = vst.msk [vmem:[#allocation3 + $0xe0] sm:$0xff] %vm375_vm1, %v3735_v0 }
  0x3b   : > { %437 = vst.msk [vmem:[#allocation3 + $0xe8] sm:$0xff] %vm375_vm1, %v3735_v0  ;;  %438 = vst.msk [vmem:[#allocation3 + $0xf0] sm:$0xff] %vm375_vm1, %v3735_v0 }
  0x3c   : > { %439 = vst.msk [vmem:[#allocation3 + $0xf8] sm:$0xff] %vm375_vm1, %v3735_v0 }
  0x3f   : > { %3130 = vmatpush3.bf16.xpose.msra.mxu0 %v787_v15 }
  0x40   : > { %3286 = vmatprep.subr.msk.bf16.mxu0 %vm728_vm0, %v3361_v16 }
  0x47   : > { %3132 = vmatpush3.bf16.xpose.msra.mxu0 %v784_v18 }
  0x48   : > { %3287 = vmatprep.subr.msk.bf16.mxu0 %vm728_vm0, %v3363_v19 }
  0x4f   : > { %3134 = vmatpush3.bf16.xpose.msra.mxu0 %v781_v21 }
  0x50   : > { %3288 = vmatprep.subr.msk.bf16.mxu0 %vm728_vm0, %v3365_v22 }
  0x57   : > { %3136 = vmatpush3.bf16.xpose.msra.mxu0 %v778_v24 }
  0x5e   : > { %3138 = vmatmul.mubr.msk.bf16.vlgmr.msra.gmra.mxu0 %vm728_vm0, %v3367_v8 }
  0x5f   : > { %3139 = vmatprep.mubr.msk.bf16.mxu0 %vm728_vm0, %v3368_v25 }
  0x66   : > { %3140 = vmatmul.mubr.msk.bf16.gmra.mxu0 %vm728_vm0, %v3368_v25 }
  0x67   : > { %3141 = vmatprep.mubr.msk.bf16.mxu0 %vm728_vm0, %v3369_v26 }
  0x6e   : > { %3142 = vmatmul.mubr.msk.bf16.gmra.mxu0 %vm728_vm0, %v3369_v26 }
  0x6f   : > { %3143 = vmatprep.mubr.msk.bf16.mxu0 %vm728_vm0, %v3370_v27 }
  0x76   : > { %3144 = vmatmul.mubr.msk.bf16.gmra.mxu0 %vm728_vm0, %v3370_v27 }
  0x77   : > { %3145 = vmatprep.mubr.msk.bf16.mxu0 %vm728_vm0, %v3371_v28 }
  0x7e   : > { %3146 = vmatmul.mubr.msk.bf16.gmra.mxu0 %vm728_vm0, %v3371_v28 }
  0x7f   : > { %3147 = vmatprep.mubr.msk.bf16.mxu0 %vm728_vm0, %v3372_v29 }
  0x86   : > { %3148 = vmatmul.mubr.msk.bf16.gmra.mxu0 %vm728_vm0, %v3372_v29 }
  0x87   : > { %3149 = vmatprep.mubr.msk.bf16.mxu0 %vm728_vm0, %v3373_v30 }
  0x8e   : > { %3150 = vmatmul.mubr.msk.bf16.gmra.mxu0 %vm728_vm0, %v3373_v30 }
  0x8f   : > { %3151 = vmatprep.mubr.msk.bf16.mxu0 %vm728_vm0, %v3374_v31 }
  0x96   : > { %3152 = vmatmul.mubr.msk.bf16.gmra.mxu0 %vm728_vm0, %v3374_v31 }
  0x97   : > { %3153 = vmatprep.mubr.msk.bf16.mxu0 %vm728_vm0, %v3375_v32 }
  0x9e   : > { %3154 = vmatmul.mubr.msk.bf16.gmra.mxu0 %vm728_vm0, %v3375_v32 }
  0x9f   : > { %3155 = vmatprep.mubr.msk.bf16.mxu0 %vm728_vm0, %v3376_v33 }
  0xa6   : > { %3156 = vmatmul.mubr.msk.bf16.gmra.mxu0 %vm728_vm0, %v3376_v33 }
  0xa7   : > { %3157 = vmatprep.mubr.msk.bf16.mxu0 %vm728_vm0, %v3377_v34 }
  0xae   : > { %3158 = vmatmul.mubr.msk.bf16.gmra.mxu0 %vm728_vm0, %v3377_v34 }
  0xaf   : > { %3159 = vmatprep.mubr.msk.bf16.mxu0 %vm728_vm0, %v3378_v35 }
  0xb6   : > { %3160 = vmatmul.mubr.msk.bf16.gmra.mxu0 %vm728_vm0, %v3378_v35 }
  0xb7   : > { %3161 = vmatprep.mubr.msk.bf16.mxu0 %vm728_vm0, %v3379_v36 }
  0xbe   : > { %3162 = vmatmul.mubr.msk.bf16.gmra.mxu0 %vm728_vm0, %v3379_v36 }
  0xbf   : > { %3163 = vmatprep.mubr.msk.bf16.mxu0 %vm728_vm0, %v3380_v37 }
  0xc6   : > { %3164 = vmatmul.mubr.msk.bf16.gmra.mxu0 %vm728_vm0, %v3380_v37 }
  0xc7   : > { %3165 = vmatprep.mubr.msk.bf16.mxu0 %vm728_vm0, %v3381_v38 }
  0xce   : > { %3166 = vmatmul.mubr.msk.bf16.gmra.mxu0 %vm728_vm0, %v3381_v38 }
  0xcf   : > { %3167 = vmatprep.mubr.msk.bf16.mxu0 %vm728_vm0, %v3382_v39 }
  0xd6   : > { %3168 = vmatmul.mubr.msk.bf16.gmra.mxu0 %vm728_vm0, %v3382_v39 }
 0x11e   : > { %v3926_v40 = vpop.f32.mrf.mxu0 }
 0x120   : > { %v3928_v41 = vpop.f32.mrf.mxu0 }
 0x121   : > { %v1050_v43 = vmax.f32 %v3926_v40, %v3928_v41 }
 0x122   : > { %v3964_v44 = vpop.f32.mrf.mxu0 }
 0x123   : > { %1051 = vmax.xlane.f32.xlu0 %v1050_v43 }
 0x124   : > { %v3966_v45 = vpop.f32.mrf.mxu0 }
 0x125   : > { %v1053_v46 = vmax.f32 %v3964_v44, %v3966_v45 }
 0x126   : > { %v3970_v47 = vpop.f32.mrf.mxu0 }
 0x127   : > { %1054 = vmax.xlane.f32.xlu0 %v1053_v46 }
 0x128   : > { %v3972_v48 = vpop.f32.mrf.mxu0 }
 0x129   : > { %v1056_v49 = vmax.f32 %v3970_v47, %v3972_v48 }
 0x12a   : > { %v3976_v50 = vpop.f32.mrf.mxu0 }
 0x12b   : > { %1057 = vmax.xlane.f32.xlu1 %v1056_v49 }
 0x12c   : > { %v3978_v51 = vpop.f32.mrf.mxu0 }
 0x12d   : > { %v1059_v52 = vmax.f32 %v3976_v50, %v3978_v51 }
 0x12e   : > { %v3982_v53 = vpop.f32.mrf.mxu0 }
 0x12f   : > { %1060 = vmax.xlane.f32.xlu1 %v1059_v52 }
 0x130   : > { %v3984_v54 = vpop.f32.mrf.mxu0 }
 0x131   : > { %v1062_v56 = vmax.f32 %v3982_v53, %v3984_v54 }
 0x132   : > { %v3988_v57 = vpop.f32.mrf.mxu0 }
 0x133   : > { %5499 = vst [vmem:[#allocation8_spill] sm:$0xff] %v3988_v57  ;;  %1063 = vmax.xlane.f32.xlu0 %v1062_v56 }
 0x134   : > { %v3990_v58 = vpop.f32.mrf.mxu0 }
 0x135   : > { %5500 = vst [vmem:[#allocation9_spill] sm:$0xff] %v3990_v58  ;;  %v1065_v59 = vmax.f32 %v3988_v57, %v3990_v58  ;;  %v4441_v58 = vld [vmem:[#allocation2 + $0xc8] sm:$0xff] }
 0x136   : > { %v3994_v60 = vpop.f32.mrf.mxu0 }
 0x137   : > { %5501 = vst [vmem:[#allocation10_spill] sm:$0xff] %v3994_v60  ;;  %1066 = vmax.xlane.f32.xlu1 %v1065_v59 }
 0x138   : > { %v3996_v61 = vpop.f32.mrf.mxu0 }
 0x139   : > { %5502 = vst [vmem:[#allocation11_spill] sm:$0xff] %v3996_v61  ;;  %v1068_v62 = vmax.f32 %v3994_v60, %v3996_v61  ;;  %v4433_v61 = vld [vmem:[#allocation2 + $0xc0] sm:$0xff] }
 0x13a   : > { %v4000_v63 = vpop.f32.mrf.mxu0  ;;  %5557 = vst [vmem:[#allocation66_spill] sm:$0xff] %v4433_v61 }
 0x13b   : > { %5503 = vst [vmem:[#allocation12_spill] sm:$0xff] %v4000_v63  ;;  %1069 = vmax.xlane.f32.xlu0 %v1068_v62 }
 0x13c   : > { %v4034_v1 = vpop.f32.mrf.mxu0 }
 0x13d   : > { %5504 = vst [vmem:[#allocation13_spill] sm:$0xff] %v4034_v1  ;;  %v1071_v2 = vmax.f32 %v4000_v63, %v4034_v1  ;;  %v4425_v1 = vld [vmem:[#allocation2 + $0xb8] sm:$0xff] }
 0x13e   : > { %v4038_v3 = vpop.f32.mrf.mxu0  ;;  %5555 = vst [vmem:[#allocation64_spill] sm:$0xff] %v4425_v1 }
 0x13f   : > { %5505 = vst [vmem:[#allocation14_spill] sm:$0xff] %v4038_v3  ;;  %1072 = vmax.xlane.f32.xlu1 %v1071_v2 }
 0x140   : > { %v4040_v4 = vpop.f32.mrf.mxu0 }
 0x141   : > { %5506 = vst [vmem:[#allocation15_spill] sm:$0xff] %v4040_v4  ;;  %v1074_v5 = vmax.f32 %v4038_v3, %v4040_v4 }
 0x142   : > { %v4044_v6 = vpop.f32.mrf.mxu0 }
 0x143   : > { %5507 = vst [vmem:[#allocation16_spill] sm:$0xff] %v4044_v6  ;;  %1075 = vmax.xlane.f32.xlu0 %v1074_v5 }
 0x144   : > { %v4046_v7 = vpop.f32.mrf.mxu0 }
 0x145   : > { %5508 = vst [vmem:[#allocation17_spill] sm:$0xff] %v4046_v7  ;;  %v1077_v8 = vmax.f32 %v4044_v6, %v4046_v7  ;;  %v4409_v6 = vld [vmem:[#allocation2 + $0xa8] sm:$0xff] }
 0x146   : > { %v4050_v9 = vpop.f32.mrf.mxu0 }
 0x147   : > { %5509 = vst [vmem:[#allocation18_spill] sm:$0xff] %v4050_v9  ;;  %1078 = vmax.xlane.f32.xlu1 %v1077_v8 }
 0x148   : > { %v4052_v10 = vpop.f32.mrf.mxu0 }
 0x149   : > { %5510 = vst [vmem:[#allocation19_spill] sm:$0xff] %v4052_v10  ;;  %v1080_v11 = vmax.f32 %v4050_v9, %v4052_v10  ;;  %v4399_v9 = vld [vmem:[#allocation2 + $0xa0] sm:$0xff] }
 0x14a   : > { %v4056_v12 = vpop.f32.mrf.mxu0 }
 0x14b   : > { %5511 = vst [vmem:[#allocation20_spill] sm:$0xff] %v4056_v12  ;;  %1081 = vmax.xlane.f32.xlu0 %v1080_v11 }
 0x14c   : > { %v4058_v13 = vpop.f32.mrf.mxu0 }
 0x14d   : > { %5512 = vst [vmem:[#allocation21_spill] sm:$0xff] %v4058_v13  ;;  %v1083_v14 = vmax.f32 %v4056_v12, %v4058_v13  ;;  %v4389_v12 = vld [vmem:[#allocation2 + $0x98] sm:$0xff] }
 0x14e   : > { %v4062_v15 = vpop.f32.mrf.mxu0 }
 0x14f   : > { %5513 = vst [vmem:[#allocation22_spill] sm:$0xff] %v4062_v15  ;;  %1084 = vmax.xlane.f32.xlu1 %v1083_v14 }
 0x150   : > { %v4064_v16 = vpop.f32.mrf.mxu0 }
 0x151   : > { %5514 = vst [vmem:[#allocation23_spill] sm:$0xff] %v4064_v16  ;;  %v1086_v17 = vmax.f32 %v4062_v15, %v4064_v16  ;;  %v4379_v15 = vld [vmem:[#allocation2 + $0x90] sm:$0xff] }
 0x152   : > { %v4068_v18 = vpop.f32.mrf.mxu0 }
 0x153   : > { %5515 = vst [vmem:[#allocation24_spill] sm:$0xff] %v4068_v18  ;;  %1087 = vmax.xlane.f32.xlu0 %v1086_v17 }
 0x154   : > { %v4070_v19 = vpop.f32.mrf.mxu0 }
 0x155   : > { %5516 = vst [vmem:[#allocation25_spill] sm:$0xff] %v4070_v19  ;;  %v1089_v20 = vmax.f32 %v4068_v18, %v4070_v19  ;;  %v4369_v18 = vld [vmem:[#allocation2 + $0x88] sm:$0xff] }
 0x156   : > { %v4074_v21 = vpop.f32.mrf.mxu0 }
 0x157   : > { %5517 = vst [vmem:[#allocation26_spill] sm:$0xff] %v4074_v21  ;;  %1090 = vmax.xlane.f32.xlu1 %v1089_v20 }
 0x158   : > { %v4076_v22 = vpop.f32.mrf.mxu0 }
 0x159   : > { %5518 = vst [vmem:[#allocation27_spill] sm:$0xff] %v4076_v22  ;;  %v1092_v23 = vmax.f32 %v4074_v21, %v4076_v22  ;;  %v4359_v21 = vld [vmem:[#allocation2 + $0x80] sm:$0xff] }
 0x15a   : > { %v4080_v24 = vpop.f32.mrf.mxu0 }
 0x15b   : > { %5519 = vst [vmem:[#allocation28_spill] sm:$0xff] %v4080_v24  ;;  %1093 = vmax.xlane.f32.xlu0 %v1092_v23 }
 0x15c   : > { %v4082_v25 = vpop.f32.mrf.mxu0 }
 0x15d   : > { %5520 = vst [vmem:[#allocation29_spill] sm:$0xff] %v4082_v25  ;;  %v1095_v26 = vmax.f32 %v4080_v24, %v4082_v25  ;;  %v4349_v24 = vld [vmem:[#allocation2 + $0x78] sm:$0xff] }
 0x15e   : > { %v4086_v27 = vpop.f32.mrf.mxu0 }
 0x15f   : > { %5521 = vst [vmem:[#allocation30_spill] sm:$0xff] %v4086_v27  ;;  %1096 = vmax.xlane.f32.xlu1 %v1095_v26 }
 0x160   : > { %v4088_v28 = vpop.f32.mrf.mxu0 }
 0x161   : > { %5522 = vst [vmem:[#allocation31_spill] sm:$0xff] %v4088_v28  ;;  %v1098_v29 = vmax.f32 %v4086_v27, %v4088_v28  ;;  %v4339_v27 = vld [vmem:[#allocation2 + $0x70] sm:$0xff] }
 0x162   : > { %v4092_v30 = vpop.f32.mrf.mxu0 }
 0x163   : > { %5523 = vst [vmem:[#allocation32_spill] sm:$0xff] %v4092_v30  ;;  %1099 = vmax.xlane.f32.xlu0 %v1098_v29 }
 0x164   : > { %v4094_v31 = vpop.f32.mrf.mxu0 }
 0x165   : > { %5524 = vst [vmem:[#allocation33_spill] sm:$0xff] %v4094_v31  ;;  %v1101_v32 = vmax.f32 %v4092_v30, %v4094_v31  ;;  %v4329_v30 = vld [vmem:[#allocation2 + $0x68] sm:$0xff] }
 0x166   : > { %v4098_v33 = vpop.f32.mrf.mxu0 }
 0x167   : > { %5525 = vst [vmem:[#allocation34_spill] sm:$0xff] %v4098_v33  ;;  %1102 = vmax.xlane.f32.xlu1 %v1101_v32 }
 0x168   : > { %v4100_v34 = vpop.f32.mrf.mxu0 }
 0x169   : > { %5526 = vst [vmem:[#allocation35_spill] sm:$0xff] %v4100_v34  ;;  %v1104_v35 = vmax.f32 %v4098_v33, %v4100_v34  ;;  %v4319_v33 = vld [vmem:[#allocation2 + $0x60] sm:$0xff] }
 0x16a   : > { %v4104_v36 = vpop.f32.mrf.mxu0 }
 0x16b   : > { %5527 = vst [vmem:[#allocation36_spill] sm:$0xff] %v4104_v36  ;;  %1105 = vmax.xlane.f32.xlu0 %v1104_v35 }
 0x16c   : > { %v4106_v37 = vpop.f32.mrf.mxu0 }
 0x16d   : > { %5528 = vst [vmem:[#allocation37_spill] sm:$0xff] %v4106_v37  ;;  %v1107_v38 = vmax.f32 %v4104_v36, %v4106_v37  ;;  %v4309_v36 = vld [vmem:[#allocation2 + $0x58] sm:$0xff] }
 0x16e   : > { %v4110_v39 = vpop.f32.mrf.mxu0 }
 0x16f   : > { %5529 = vst [vmem:[#allocation38_spill] sm:$0xff] %v4110_v39  ;;  %1108 = vmax.xlane.f32.xlu1 %v1107_v38 }
 0x170   : > { %v4112_v42 = vpop.f32.mrf.mxu0 }
 0x171   : > { %5530 = vst [vmem:[#allocation39_spill] sm:$0xff] %v4112_v42  ;;  %v1110_v43 = vmax.f32 %v4110_v39, %v4112_v42  ;;  %v4299_v39 = vld [vmem:[#allocation2 + $0x50] sm:$0xff] }
 0x172   : > { %v4116_v46 = vpop.f32.mrf.mxu0 }
 0x173   : > { %5531 = vst [vmem:[#allocation40_spill] sm:$0xff] %v4116_v46  ;;  %1111 = vmax.xlane.f32.xlu0 %v1110_v43 }
 0x174   : > { %v4118_v49 = vpop.f32.mrf.mxu0 }
 0x175   : > { %5532 = vst [vmem:[#allocation41_spill] sm:$0xff] %v4118_v49  ;;  %v1113_v52 = vmax.f32 %v4116_v46, %v4118_v49  ;;  %v4289_v46 = vld [vmem:[#allocation2 + $0x48] sm:$0xff] }
 0x176   : > { %v4122_v55 = vpop.f32.mrf.mxu0 }
 0x177   : > { %5533 = vst [vmem:[#allocation42_spill] sm:$0xff] %v4122_v55  ;;  %1114 = vmax.xlane.f32.xlu1 %v1113_v52 }
 0x178   : > { %v4124_v56 = vpop.f32.mrf.mxu0 }
 0x179   : > { %5534 = vst [vmem:[#allocation43_spill] sm:$0xff] %v4124_v56  ;;  %v1116_v59 = vmax.f32 %v4122_v55, %v4124_v56  ;;  %v4269_v55 = vld [vmem:[#allocation2 + $0x38] sm:$0xff] }
 0x17a   : > { %v4128_v62 = vpop.f32.mrf.mxu0 }
 0x17b   : > { %5535 = vst [vmem:[#allocation44_spill] sm:$0xff] %v4128_v62  ;;  %1117 = vmax.xlane.f32.xlu0 %v1116_v59 }
 0x17c   : > { %v4130_v0 = vpop.f32.mrf.mxu0 }
 0x17d   : > { %5536 = vst [vmem:[#allocation45_spill] sm:$0xff] %v4130_v0  ;;  %v1119_v2 = vmax.f32 %v4128_v62, %v4130_v0  ;;  %v3398_v62 = vld [vmem:[%s4186_s18] sm:$0xff]  }
 0x17e   : > { %v4134_v5 = vpop.f32.mrf.mxu0 }
 0x17f   : > { %5537 = vst [vmem:[#allocation46_spill] sm:$0xff] %v4134_v5  ;;  %1120 = vmax.xlane.f32.xlu1 %v1119_v2 }
 0x180   : > { %v4136_v8 = vpop.f32.mrf.mxu0 }
 0x181   : > { %5538 = vst [vmem:[#allocation47_spill] sm:$0xff] %v4136_v8  ;;  %v1122_v11 = vmax.f32 %v4134_v5, %v4136_v8  ;;  %v3396_v5 = vld [vmem:[%s4186_s18 + $0x8] sm:$0xff]  }
 0x182   : > { %v4140_v14 = vpop.f32.mrf.mxu0 }
 0x183   : > { %5539 = vst [vmem:[#allocation48_spill] sm:$0xff] %v4140_v14  ;;  %1123 = vmax.xlane.f32.xlu0 %v1122_v11 }
 0x184   : > { %v4142_v17 = vpop.f32.mrf.mxu0 }
 0x185   : > { %5540 = vst [vmem:[#allocation49_spill] sm:$0xff] %v4142_v17  ;;  %v1125_v20 = vmax.f32 %v4140_v14, %v4142_v17  ;;  %v3394_v14 = vld [vmem:[%s4186_s18 + $0x10] sm:$0xff]  }
 0x186   : > { %v4146_v23 = vpop.f32.mrf.mxu0 }
 0x187   : > { %5541 = vst [vmem:[#allocation50_spill] sm:$0xff] %v4146_v23  ;;  %1126 = vmax.xlane.f32.xlu1 %v1125_v20 }
 0x188   : > { %v4148_v26 = vpop.f32.mrf.mxu0 }
 0x189   : > { %5542 = vst [vmem:[#allocation51_spill] sm:$0xff] %v4148_v26  ;;  %v1128_v29 = vmax.f32 %v4146_v23, %v4148_v26 }
 0x18a   : > { %v4152_v32 = vpop.f32.mrf.mxu0 }
 0x18b   : > { %5543 = vst [vmem:[#allocation52_spill] sm:$0xff] %v4152_v32  ;;  %1129 = vmax.xlane.f32.xlu0 %v1128_v29 }
 0x18c   : > { %v4154_v35 = vpop.f32.mrf.mxu0 }
 0x18d   : > { %5544 = vst [vmem:[#allocation53_spill] sm:$0xff] %v4154_v35  ;;  %v1131_v38 = vmax.f32 %v4152_v32, %v4154_v35 }
 0x18e   : > { %v4158_v43 = vpop.f32.mrf.mxu0 }
 0x18f   : > { %5545 = vst [vmem:[#allocation54_spill] sm:$0xff] %v4158_v43  ;;  %1132 = vmax.xlane.f32.xlu1 %v1131_v38 }
 0x190   : > { %v4160_v52 = vpop.f32.mrf.mxu0 }
 0x191   : > { %5546 = vst [vmem:[#allocation55_spill] sm:$0xff] %v4160_v52  ;;  %v1134_v59 = vmax.f32 %v4158_v43, %v4160_v52 }
 0x192   : > { %v4164_v2 = vpop.f32.mrf.mxu0 }
 0x193   : > { %5547 = vst [vmem:[#allocation56_spill] sm:$0xff] %v4164_v2  ;;  %1135 = vmax.xlane.f32.xlu0 %v1134_v59 }
 0x194   : > { %v4166_v11 = vpop.f32.mrf.mxu0 }
 0x195   : > { %5548 = vst [vmem:[#allocation57_spill] sm:$0xff] %v4166_v11  ;;  %v1137_v20 = vmax.f32 %v4164_v2, %v4166_v11  ;;  %v4195_v11 = vld [vmem:[#allocation2 + $0x8] sm:$0xff] }
 0x196   : > { %v4170_v29 = vpop.f32.mrf.mxu0  ;;  %v3388_v2 = vld [vmem:[%s4186_s18 + $0x28] sm:$0xff]  }
 0x197   : > { %5549 = vst [vmem:[#allocation58_spill] sm:$0xff] %v4170_v29  ;;  %1138 = vmax.xlane.f32.xlu1 %v1137_v20  ;;  %v3383_v20 = vld [vmem:[%s4186_s18 + $0x78] sm:$0xff]  }
 0x198   : > { %v4172_v35 = vpop.f32.mrf.mxu0  ;;  %3169 = vmatprep.subr.bf16.mxu1 %v3383_v20  ;;  %v3389_v20 = vld [vmem:[%s4186_s18 + $0x60] sm:$0xff]  }
 0x199   : > { %5550 = vst [vmem:[#allocation59_spill] sm:$0xff] %v4172_v35  ;;  %v1140_v38 = vmax.f32 %v4170_v29, %v4172_v35  ;;  %v3384_v35 = vld [vmem:[%s4186_s18 + $0x38] sm:$0xff]  }
 0x19a   : > { %v4176_v32 = vpop.f32.mrf.mxu0  ;;  %3170 = vmatpush3.bf16.msra.mxu1 %v3384_v35 }
 0x19b   : > { %5551 = vst [vmem:[#allocation60_spill] sm:$0xff] %v4176_v32  ;;  %1141 = vmax.xlane.f32.xlu0 %v1140_v38  ;;  %v3385_v38 = vld [vmem:[%s4186_s18 + $0x70] sm:$0xff]  }
 0x19c   : > { %v4178_v52 = vpop.f32.mrf.mxu0  ;;  %3171 = vmatprep.subr.bf16.mxu1 %v3385_v38  ;;  %v3390_v38 = vld [vmem:[%s4186_s18 + $0x20] sm:$0xff]  }
 0x19d   : > { %5552 = vst [vmem:[#allocation61_spill] sm:$0xff] %v4178_v52  ;;  %v1143_v59 = vmax.f32 %v4176_v32, %v4178_v52  ;;  %v3386_v52 = vld [vmem:[%s4186_s18 + $0x30] sm:$0xff]   ;;  %v3387_v32 = vld [vmem:[%s4186_s18 + $0x68] sm:$0xff]  }
 0x19e   : > { %3172 = vmatpush3.bf16.msra.mxu1 %v3386_v52 }
 0x19f   : > { %1144 = vmax.xlane.f32.xlu1 %v1143_v59  ;;  %v4192_v59 = vld [vmem:[#allocation2] sm:$0xff]  ;;  %3173 = vmatprep.subr.bf16.mxu1 %v3387_v32  ;;  %v4211_v32 = vld [vmem:[#allocation2 + $0x10] sm:$0xff] }
 0x1a2   : > { %3174 = vmatpush3.bf16.msra.mxu1 %v3388_v2  ;;  %v3393_v2 = vld [vmem:[%s4186_s18 + $0x50] sm:$0xff]  }
 0x1a3   : > { %3175 = vmatprep.subr.bf16.mxu1 %v3389_v20  ;;  %v4223_v20 = vld [vmem:[#allocation2 + $0x18] sm:$0xff] }
 0x1a6   : > { %3176 = vmatpush3.bf16.msra.mxu1 %v3390_v38  ;;  %v3395_v38 = vld [vmem:[%s4186_s18 + $0x48] sm:$0xff]  }
 0x1ac   : > { %v1052_v29 = vpop.xlane.xlu0 %1051 }
 0x1ad   : > { %v4199_v43 = vmax.f32 %v4192_v59, %v1052_v29  ;;  %v3391_v29 = vld [vmem:[%s4186_s18 + $0x58] sm:$0xff]  }
 0x1ae   : > { %3177 = vmatprep.subr.bf16.mxu1 %v3391_v29  ;;  %v4235_v29 = vld [vmem:[#allocation2 + $0x20] sm:$0xff] }
 0x1af   : > { %2428 = vst.msk [vmem:[#allocation2] sm:$0xff] %vm375_vm1, %v4199_v43 }
 0x1b0   : > { %v1055_v52 = vpop.xlane.xlu0 %1054 }
 0x1b1   : > { %v4208_v26 = vmax.f32 %v4195_v11, %v1055_v52  ;;  %1276 = vperm.xlu0 %3349, %v4199_v43   ;;  %v3392_v52 = vld [vmem:[%s4186_s18 + $0x18] sm:$0xff]  }
 0x1b2   : > { %3178 = vmatpush3.bf16.msra.mxu1 %v3392_v52  ;;  %v3397_v52 = vld [vmem:[%s4186_s18 + $0x40] sm:$0xff]   ;;  %s3659_s18 = sshll.u32 %s3736_s17, 4  ;;  %s3660_s18 = int_to_ptr.vmem [resolvable:$false] %s3659_s18 }
 0x1b3   : > { %2429 = vst.msk [vmem:[#allocation2 + $0x8] sm:$0xff] %vm375_vm1, %v4208_v26  ;;  %1281 = vperm.xlu1 %3350, %v4208_v26   ;;  %3179 = vmatprep.subr.bf16.mxu1 %v3393_v2  ;;  %v4247_v2 = vld [vmem:[#allocation2 + $0x28] sm:$0xff]  ;;  %v5559_v57 = vsub.f32 %v4195_v11, %v4208_v26  ;;  %p3662_p1 = scmp.lt.s32.totalorder %s5366_s12, %s3660_s18 }
 0x1b4   : > { %v1058_v35 = vpop.xlane.xlu1 %1057 }
 0x1b5   : > { %v4221_v23 = vmax.f32 %v4211_v32, %v1058_v35 }
 0x1b6   : > { %3180 = vmatpush3.bf16.msra.mxu1 %v3394_v14 }
 0x1b7   : > { %2430 = vst.msk [vmem:[#allocation2 + $0x10] sm:$0xff] %vm375_vm1, %v4221_v23  ;;  %1286 = vperm.xlu1 %3350, %v4221_v23   ;;  %3181 = vmatprep.subr.bf16.mxu1 %v3395_v38  ;;  %v5561_v11 = vsub.f32 %v4211_v32, %v4221_v23 }
 0x1b8   : > { %v1061_v17 = vpop.xlane.xlu1 %1060 }
 0x1b9   : > { %v4233_v35 = vmax.f32 %v4223_v20, %v1061_v17 }
 0x1ba   : > { %3182 = vmatpush3.bf16.msra.mxu1 %v3396_v5  ;;  %v4279_v5 = vld [vmem:[#allocation2 + $0x40] sm:$0xff] }
 0x1bb   : > { %2431 = vst.msk [vmem:[#allocation2 + $0x18] sm:$0xff] %vm375_vm1, %v4233_v35  ;;  %1291 = vperm.xlu1 %3350, %v4233_v35   ;;  %3183 = vmatprep.subr.bf16.mxu1 %v3397_v52 }
 0x1bc   : > { %v1064_v8 = vpop.xlane.xlu0 %1063 }
 0x1bd   : > { %v4245_v17 = vmax.f32 %v4235_v29, %v1064_v8  ;;  %v4259_v8 = vld [vmem:[#allocation2 + $0x30] sm:$0xff] }
 0x1be   : > { %3184 = vmatpush3.bf16.msra.mxu1 %v3398_v62 }
 0x1bf   : > { %2432 = vst.msk [vmem:[#allocation2 + $0x20] sm:$0xff] %vm375_vm1, %v4245_v17  ;;  %1296 = vperm.xlu1 %3350, %v4245_v17  }
 0x1c0   : > { %v1067_v0 = vpop.xlane.xlu1 %1066 }
 0x1c1   : > { %v4257_v56 = vmax.f32 %v4247_v2, %v1067_v0 }
 0x1c3   : > { %2433 = vst.msk [vmem:[#allocation2 + $0x28] sm:$0xff] %vm375_vm1, %v4257_v56  ;;  %1301 = vperm.xlu1 %3350, %v4257_v56  }
 0x1c4   : > { %v1070_v38 = vpop.xlane.xlu0 %1069 }
 0x1c5   : > { %v4267_v14 = vmax.f32 %v4259_v8, %v1070_v38 }
 0x1c7   : > { %2434 = vst.msk [vmem:[#allocation2 + $0x30] sm:$0xff] %vm375_vm1, %v4267_v14  ;;  %1306 = vperm.xlu1 %3350, %v4267_v14  }
 0x1c8   : > { %v1073_v62 = vpop.xlane.xlu1 %1072 }
 0x1c9   : > { %v4277_v52 = vmax.f32 %v4269_v55, %v1073_v62 }
 0x1cb   : > { %2435 = vst.msk [vmem:[#allocation2 + $0x38] sm:$0xff] %vm375_vm1, %v4277_v52  ;;  %1311 = vperm.xlu1 %3350, %v4277_v52  }
 0x1cc   : > { %v1076_v0 = vpop.xlane.xlu0 %1075 }
 0x1cd   : > { %v4287_v49 = vmax.f32 %v4279_v5, %v1076_v0 }
 0x1cf   : > { %2436 = vst.msk [vmem:[#allocation2 + $0x40] sm:$0xff] %vm375_vm1, %v4287_v49  ;;  %1316 = vperm.xlu1 %3350, %v4287_v49  }
 0x1d0   : > { %v1079_v38 = vpop.xlane.xlu1 %1078 }
 0x1d1   : > { %v4297_v42 = vmax.f32 %v4289_v46, %v1079_v38 }
 0x1d3   : > { %2437 = vst.msk [vmem:[#allocation2 + $0x48] sm:$0xff] %vm375_vm1, %v4297_v42  ;;  %1321 = vperm.xlu0 %3349, %v4297_v42  }
 0x1d4   : > { %v1082_v62 = vpop.xlane.xlu0 %1081 }
 0x1d5   : > { %v4307_v37 = vmax.f32 %v4299_v39, %v1082_v62 }
 0x1d7   : > { %2438 = vst.msk [vmem:[#allocation2 + $0x50] sm:$0xff] %vm375_vm1, %v4307_v37  ;;  %1326 = vperm.xlu1 %3350, %v4307_v37  }
 0x1d8   : > { %v1085_v0 = vpop.xlane.xlu1 %1084 }
 0x1d9   : > { %v4317_v34 = vmax.f32 %v4309_v36, %v1085_v0 }
 0x1db   : > { %2439 = vst.msk [vmem:[#allocation2 + $0x58] sm:$0xff] %vm375_vm1, %v4317_v34  ;;  %1331 = vperm.xlu0 %3349, %v4317_v34  }
 0x1dc   : > { %v1088_v38 = vpop.xlane.xlu0 %1087 }
 0x1dd   : > { %v4327_v31 = vmax.f32 %v4319_v33, %v1088_v38 }
 0x1df   : > { %2440 = vst.msk [vmem:[#allocation2 + $0x60] sm:$0xff] %vm375_vm1, %v4327_v31  ;;  %1336 = vperm.xlu1 %3350, %v4327_v31  }
 0x1e0   : > { %v1091_v62 = vpop.xlane.xlu1 %1090 }
 0x1e1   : > { %v4337_v28 = vmax.f32 %v4329_v30, %v1091_v62 }
 0x1e3   : > { %2441 = vst.msk [vmem:[#allocation2 + $0x68] sm:$0xff] %vm375_vm1, %v4337_v28  ;;  %1341 = vperm.xlu0 %3349, %v4337_v28  }
 0x1e4   : > { %v1094_v0 = vpop.xlane.xlu0 %1093 }
 0x1e5   : > { %v4347_v25 = vmax.f32 %v4339_v27, %v1094_v0 }
 0x1e7   : > { %2442 = vst.msk [vmem:[#allocation2 + $0x70] sm:$0xff] %vm375_vm1, %v4347_v25  ;;  %1346 = vperm.xlu1 %3350, %v4347_v25  }
 0x1e8   : > { %v1097_v38 = vpop.xlane.xlu1 %1096 }
 0x1e9   : > { %v4357_v22 = vmax.f32 %v4349_v24, %v1097_v38 }
 0x1eb   : > { %2443 = vst.msk [vmem:[#allocation2 + $0x78] sm:$0xff] %vm375_vm1, %v4357_v22  ;;  %1351 = vperm.xlu0 %3349, %v4357_v22  }
 0x1ec   : > { %v1100_v62 = vpop.xlane.xlu0 %1099 }
 0x1ed   : > { %v4367_v19 = vmax.f32 %v4359_v21, %v1100_v62 }
 0x1ef   : > { %2444 = vst.msk [vmem:[#allocation2 + $0x80] sm:$0xff] %vm375_vm1, %v4367_v19  ;;  %1356 = vperm.xlu1 %3350, %v4367_v19  }
 0x1f0   : > { %v1103_v0 = vpop.xlane.xlu1 %1102 }
 0x1f1   : > { %v4377_v16 = vmax.f32 %v4369_v18, %v1103_v0 }
 0x1f3   : > { %2445 = vst.msk [vmem:[#allocation2 + $0x88] sm:$0xff] %vm375_vm1, %v4377_v16  ;;  %1361 = vperm.xlu0 %3349, %v4377_v16  }
 0x1f4   : > { %v1106_v38 = vpop.xlane.xlu0 %1105 }
 0x1f5   : > { %v4387_v13 = vmax.f32 %v4379_v15, %v1106_v38  ;;  %v4417_v38 = vld [vmem:[#allocation2 + $0xb0] sm:$0xff] }
 0x1f6   : > { %5553 = vst [vmem:[#allocation62_spill] sm:$0xff] %v4417_v38 }
 0x1f7   : > { %2446 = vst.msk [vmem:[#allocation2 + $0x90] sm:$0xff] %vm375_vm1, %v4387_v13  ;;  %1366 = vperm.xlu1 %3350, %v4387_v13  }
 0x1f8   : > { %v1109_v62 = vpop.xlane.xlu1 %1108 }
 0x1f9   : > { %v4397_v10 = vmax.f32 %v4389_v12, %v1109_v62 }
 0x1fb   : > { %2447 = vst.msk [vmem:[#allocation2 + $0x98] sm:$0xff] %vm375_vm1, %v4397_v10  ;;  %1371 = vperm.xlu0 %3349, %v4397_v10  }
 0x1fc   : > { %v1112_v0 = vpop.xlane.xlu0 %1111 }
 0x1fd   : > { %v4407_v7 = vmax.f32 %v4399_v9, %v1112_v0 }
 0x1ff   : > { %2448 = vst.msk [vmem:[#allocation2 + $0xa0] sm:$0xff] %vm375_vm1, %v4407_v7  ;;  %1376 = vperm.xlu1 %3350, %v4407_v7  }
 0x200   : > { %v1115_v62 = vpop.xlane.xlu1 %1114 }
 0x201   : > { %v4415_v4 = vmax.f32 %v4409_v6, %v1115_v62 }
 0x203   : > { %2449 = vst.msk [vmem:[#allocation2 + $0xa8] sm:$0xff] %vm375_vm1, %v4415_v4  ;;  %1381 = vperm.xlu0 %3349, %v4415_v4  }
 0x204   : > { %v1118_v0 = vpop.xlane.xlu0 %1117 }
 0x205   : > { %v4423_v3 = vmax.f32 %v4417_v38, %v1118_v0 }
 0x207   : > { %5554 = vst [vmem:[#allocation63_spill] sm:$0xff] %v4423_v3  ;;  %2450 = vst.msk [vmem:[#allocation2 + $0xb0] sm:$0xff] %vm375_vm1, %v4423_v3  ;;  %1386 = vperm.xlu1 %3350, %v4423_v3  }
 0x208   : > { %v1121_v62 = vpop.xlane.xlu1 %1120 }
 0x209   : > { %v4431_v63 = vmax.f32 %v4425_v1, %v1121_v62  ;;  %v1212_v1 = vmul.f32 1.442695, %v5559_v57  ;;  %v4463_v57 = vld [vmem:[#allocation2 + $0xd8] sm:$0xff] }
 0x20b   : > { %5556 = vst [vmem:[#allocation65_spill] sm:$0xff] %v4431_v63  ;;  %2451 = vst.msk [vmem:[#allocation2 + $0xb8] sm:$0xff] %vm375_vm1, %v4431_v63  ;;  %1391 = vperm.xlu0 %3349, %v4431_v63   ;;  %v4452_v63 = vld [vmem:[#allocation2 + $0xd0] sm:$0xff]  ;;  %3399 = vpow2.f32 %v1212_v1  ;;  %v5562_v1 = vsub.f32 %v4223_v20, %v4233_v35  ;;  %v5564_v20 = vsub.f32 %v4247_v2, %v4257_v56 }
 0x20c   : > { %v1124_v0 = vpop.xlane.xlu0 %1123  ;;  %v5566_v56 = vsub.f32 %v4269_v55, %v4277_v52  ;;  %v5570_v52 = vsub.f32 %v4309_v36, %v4317_v34 }
 0x20d   : > { %v4439_v60 = vmax.f32 %v4433_v61, %v1124_v0  ;;  %v5560_v61 = vsub.f32 %v4192_v59, %v4199_v43  ;;  %v1216_v59 = vmul.f32 1.442695, %v5562_v1  ;;  %v1220_v35 = vmul.f32 1.442695, %v5564_v20  ;;  %v4521_v20 = vld [vmem:[#allocation2 + $0xf8] sm:$0xff] }
 0x20e   : > { %v1224_v2 = vmul.f32 1.442695, %v5566_v56 }
 0x20f   : > { %5558 = vst [vmem:[#allocation67_spill] sm:$0xff] %v4439_v60  ;;  %2452 = vst.msk [vmem:[#allocation2 + $0xc0] sm:$0xff] %vm375_vm1, %v4439_v60  ;;  %1396 = vperm.xlu1 %3350, %v4439_v60   ;;  %v1210_v60 = vmul.f32 1.442695, %v5560_v61  ;;  %v4474_v61 = vld [vmem:[#allocation2 + $0xe0] sm:$0xff] }
 0x210   : > { %v1127_v62 = vpop.xlane.xlu1 %1126 }
 0x211   : > { %v4450_v38 = vmax.f32 %v4441_v58, %v1127_v62  ;;  %3401 = vpow2.f32 %v1210_v60  ;;  %v1214_v62 = vmul.f32 1.442695, %v5561_v11  ;;  %v5563_v60 = vsub.f32 %v4235_v29, %v4245_v17 }
 0x212   : > { %v5565_v29 = vsub.f32 %v4259_v8, %v4267_v14  ;;  %v5567_v8 = vsub.f32 %v4279_v5, %v4287_v49  ;;  %v5569_v49 = vsub.f32 %v4299_v39, %v4307_v37  ;;  %v5572_v37 = vsub.f32 %v4329_v30, %v4337_v28 }
 0x213   : > { %2453 = vst.msk [vmem:[#allocation2 + $0xc8] sm:$0xff] %vm375_vm1, %v4450_v38  ;;  %1401 = vperm.xlu0 %3349, %v4450_v38   ;;  %3403 = vpow2.f32 %v1214_v62  ;;  %v1218_v23 = vmul.f32 1.442695, %v5563_v60 }
 0x214   : > { %v1130_v0 = vpop.xlane.xlu0 %1129  ;;  %3405 = vpow2.f32 %v1216_v59  ;;  %v1222_v17 = vmul.f32 1.442695, %v5565_v29  ;;  %v1226_v59 = vmul.f32 1.442695, %v5567_v8  ;;  %v1230_v55 = vmul.f32 1.442695, %v5569_v49 }
 0x215   : > { %v4461_v3 = vmax.f32 %v4452_v63, %v1130_v0  ;;  %3407 = vpow2.f32 %v1218_v23  ;;  %v1232_v29 = vmul.f32 1.442695, %v5570_v52  ;;  %v1236_v39 = vmul.f32 1.442695, %v5572_v37 }
 0x216   : > { %3409 = vpow2.f32 %v1220_v35  ;;  %v5568_v35 = vsub.f32 %v4289_v46, %v4297_v42 }
 0x217   : > { %2454 = vst.msk [vmem:[#allocation2 + $0xd0] sm:$0xff] %vm375_vm1, %v4461_v3  ;;  %1406 = vperm.xlu1 %3350, %v4461_v3   ;;  %3411 = vpow2.f32 %v1222_v17  ;;  %v5571_v17 = vsub.f32 %v4319_v33, %v4327_v31  ;;  %v5573_v31 = vsub.f32 %v4339_v27, %v4347_v25 }
 0x218   : > { %v1133_v26 = vpop.xlane.xlu1 %1132  ;;  %v4502_v1 = vpop.eup %3399  ;;  %3413 = vpow2.f32 %v1224_v2  ;;  %v5622_v2 = vld [vmem:[#allocation31_spill] sm:$0xff] }
 0x219   : > { %v4472_v43 = vmax.f32 %v4463_v57, %v1133_v26  ;;  %v4488_v26 = vld [vmem:[#allocation2 + $0xe8] sm:$0xff]  ;;  %3415 = vpow2.f32 %v1226_v59  ;;  %v1234_v56 = vmul.f32 1.442695, %v5571_v17  ;;  %v1238_v33 = vmul.f32 1.442695, %v5573_v31 }
 0x21b   : > { %2455 = vst.msk [vmem:[#allocation2 + $0xd8] sm:$0xff] %vm375_vm1, %v4472_v43  ;;  %1411 = vperm.xlu0 %3349, %v4472_v43  }
 0x21c   : > { %v1136_v0 = vpop.xlane.xlu0 %1135 }
 0x21d   : > { %v4486_v32 = vmax.f32 %v4474_v61, %v1136_v0  ;;  %v4504_v0 = vld [vmem:[#allocation2 + $0xf0] sm:$0xff] }
 0x21e   : > { %v4519_v23 = vpop.eup %3401 }
 0x21f   : > { %2456 = vst.msk [vmem:[#allocation2 + $0xe0] sm:$0xff] %vm375_vm1, %v4486_v32  ;;  %1416 = vperm.xlu1 %3350, %v4486_v32  }
 0x220   : > { %v1139_v11 = vpop.xlane.xlu1 %1138  ;;  %v4539_v46 = vpop.eup %3403 }
 0x221   : > { %v4500_v62 = vmax.f32 %v4488_v26, %v1139_v11  ;;  %v1228_v11 = vmul.f32 1.442695, %v5568_v35  ;;  %v4556_v36 = vpop.eup %3405 }
 0x223   : > { %2457 = vst.msk [vmem:[#allocation2 + $0xe8] sm:$0xff] %vm375_vm1, %v4500_v62  ;;  %1421 = vperm.xlu0 %3349, %v4500_v62   ;;  %2179 = vperm.xlu1 %3350, %v4502_v1   ;;  %3417 = vpow2.f32 %v1228_v11 }
 0x224   : > { %v1142_v14 = vpop.xlane.xlu0 %1141  ;;  %3419 = vpow2.f32 %v1230_v55 }
 0x225   : > { %v4517_v60 = vmax.f32 %v4504_v0, %v1142_v14  ;;  %3421 = vpow2.f32 %v1232_v29  ;;  %v4560_v14 = vpop.eup %3407 }
 0x226   : > { %3423 = vpow2.f32 %v1234_v56  ;;  %v4566_v27 = vpop.eup %3409 }
 0x227   : > { %2458 = vst.msk [vmem:[#allocation2 + $0xf0] sm:$0xff] %vm375_vm1, %v4517_v60  ;;  %2174 = vperm.xlu0 %3349, %v4519_v23   ;;  %1426 = vperm.xlu1 %3350, %v4517_v60   ;;  %3425 = vpow2.f32 %v1236_v39  ;;  %v4571_v55 = vpop.eup %3411  ;;  %v1198_v39 = vsub.f32 %v4399_v9, %v4407_v7 }
 0x228   : > { %v1145_v5 = vpop.xlane.xlu1 %1144  ;;  %3427 = vpow2.f32 %v1238_v33 }
 0x229   : > { %v4537_v42 = vmax.f32 %v4521_v20, %v1145_v5 }
 0x22b   : > { %2459 = vst.msk [vmem:[#allocation2 + $0xf8] sm:$0xff] %vm375_vm1, %v4537_v42  ;;  %2184 = vperm.xlu1 %3350, %v4539_v46   ;;  %1431 = vperm.xlu0 %3349, %v4537_v42  }
 0x22c   : > { %v1277_v34 = vpop.permute.xlu0 %1276 }
 0x22d   : > { %v1434_v28 = vsub.f32 %v3926_v40, %v1277_v34  ;;  %v1435_v30 = vsub.f32 %v3928_v41, %v1277_v34  ;;  %v5574_v40 = vsub.f32 %v4349_v24, %v4357_v22  ;;  %v4580_v22 = vpop.eup %3413 }
 0x22e   : > { %v1282_v8 = vpop.permute.xlu1 %1281  ;;  %v4585_v37 = vpop.eup %3415 }
 0x22f   : > { %v1498_v59 = vmul.f32 1.442695, %v1434_v28  ;;  %v1500_v35 = vmul.f32 1.442695, %v1435_v30  ;;  %v1436_v11 = vsub.f32 %v3964_v44, %v1282_v8  ;;  %2194 = vperm.xlu1 %3350, %v4560_v14   ;;  %2189 = vperm.xlu0 %3349, %v4556_v36   ;;  %v1437_v25 = vsub.f32 %v3966_v45, %v1282_v8 }
 0x230   : > { %v1240_v41 = vmul.f32 1.442695, %v5574_v40  ;;  %v5575_v44 = vsub.f32 %v4359_v21, %v4367_v19  ;;  %v5576_v19 = vsub.f32 %v4369_v18, %v4377_v16  ;;  %v4596_v16 = vpop.eup %3417 }
 0x231   : > { %3429 = vpow2.f32 %v1498_v59  ;;  %v1502_v49 = vmul.f32 1.442695, %v1436_v11  ;;  %v1504_v52 = vmul.f32 1.442695, %v1437_v25  ;;  %v4598_v18 = vpop.eup %3419  ;;  %v5579_v11 = vld [vmem:[#allocation63_spill] sm:$0xff] }
 0x232   : > { %v1242_v5 = vmul.f32 1.442695, %v5575_v44  ;;  %3431 = vpow2.f32 %v1500_v35  ;;  %v1287_v29 = vpop.permute.xlu1 %1286  ;;  %v1244_v21 = vmul.f32 1.442695, %v5576_v19  ;;  %v4603_v28 = vpop.eup %3421  ;;  %v5585_v19 = vld [vmem:[#allocation8_spill] sm:$0xff] }
 0x233   : > { %3433 = vpow2.f32 %v1502_v49  ;;  %v1438_v45 = vsub.f32 %v3970_v47, %v1287_v29  ;;  %v1439_v17 = vsub.f32 %v3972_v48, %v1287_v29  ;;  %2204 = vperm.xlu1 %3350, %v4571_v55   ;;  %2199 = vperm.xlu0 %3349, %v4566_v27   ;;  %v5577_v47 = vsub.f32 %v4379_v15, %v4387_v13  ;;  %v4607_v8 = vpop.eup %3423  ;;  %v5581_v49 = vld [vmem:[#allocation65_spill] sm:$0xff]  ;;  %v5583_v29 = vld [vmem:[#allocation67_spill] sm:$0xff] }
 0x234   : > { %3435 = vpow2.f32 %v1504_v52  ;;  %v5578_v13 = vsub.f32 %v4389_v12, %v4397_v10  ;;  %v4613_v10 = vpop.eup %3425 }
 0x235   : > { %3437 = vpow2.f32 %v1240_v41  ;;  %v1506_v24 = vmul.f32 1.442695, %v1438_v45  ;;  %v1508_v56 = vmul.f32 1.442695, %v1439_v17  ;;  %v1246_v48 = vmul.f32 1.442695, %v5577_v47  ;;  %v4615_v12 = vpop.eup %3427 }
 0x236   : > { %3439 = vpow2.f32 %v1242_v5  ;;  %v1292_v31 = vpop.permute.xlu1 %1291  ;;  %v1248_v7 = vmul.f32 1.442695, %v5578_v13  ;;  %v5584_v45 = vld [vmem:[#allocation66_spill] sm:$0xff] }
 0x237   : > { %3441 = vpow2.f32 %v1506_v24  ;;  %v1440_v33 = vsub.f32 %v3976_v50, %v1292_v31  ;;  %v1441_v34 = vsub.f32 %v3978_v51, %v1292_v31  ;;  %2214 = vperm.xlu1 %3350, %v4585_v37   ;;  %2209 = vperm.xlu0 %3349, %v4580_v22   ;;  %v1250_v50 = vmul.f32 1.442695, %v1198_v39  ;;  %v5586_v24 = vld [vmem:[#allocation9_spill] sm:$0xff] }
 0x238   : > { %3443 = vpow2.f32 %v1508_v56  ;;  %v1199_v51 = vsub.f32 %v4409_v6, %v4415_v4  ;;  %v5580_v4 = vld [vmem:[#allocation62_spill] sm:$0xff]  ;;  %v1202_v17 = vsub.f32 %v5584_v45, %v5583_v29 }
 0x239   : > { %3445 = vpow2.f32 %v1244_v21  ;;  %v1510_v9 = vmul.f32 1.442695, %v1440_v33  ;;  %v1512_v15 = vmul.f32 1.442695, %v1441_v34  ;;  %v1200_v6 = vsub.f32 %v5580_v4, %v5579_v11  ;;  %v5588_v11 = vld [vmem:[#allocation11_spill] sm:$0xff] }
 0x23a   : > { %3447 = vpow2.f32 %v1246_v48  ;;  %v1297_v30 = vpop.permute.xlu1 %1296  ;;  %v1203_v48 = vsub.f32 %v4441_v58, %v4450_v38  ;;  %v5587_v58 = vld [vmem:[#allocation10_spill] sm:$0xff] }
 0x23b   : > { %3449 = vpow2.f32 %v1510_v9  ;;  %v1442_v59 = vsub.f32 %v3982_v53, %v1297_v30  ;;  %v1443_v35 = vsub.f32 %v3984_v54, %v1297_v30  ;;  %2224 = vperm.xlu1 %3350, %v4598_v18   ;;  %2219 = vperm.xlu0 %3349, %v4596_v16   ;;  %v1252_v53 = vmul.f32 1.442695, %v1199_v51  ;;  %v5582_v54 = vld [vmem:[#allocation64_spill] sm:$0xff] }
 0x23c   : > { %3451 = vpow2.f32 %v1512_v15  ;;  %v1201_v44 = vsub.f32 %v5582_v54, %v5581_v49  ;;  %v1254_v33 = vmul.f32 1.442695, %v1200_v6  ;;  %v1205_v54 = vsub.f32 %v4463_v57, %v4472_v43 }
 0x23d   : > { %3453 = vpow2.f32 %v1248_v7  ;;  %v1514_v25 = vmul.f32 1.442695, %v1442_v59  ;;  %v1516_v40 = vmul.f32 1.442695, %v1443_v35  ;;  %v1258_v35 = vmul.f32 1.442695, %v1202_v17 }
 0x23e   : > { %v3430_v41 = vpop.eup %3429  ;;  %3455 = vpow2.f32 %v1250_v50  ;;  %v1302_v5 = vpop.permute.xlu1 %1301  ;;  %v1256_v15 = vmul.f32 1.442695, %v1201_v44  ;;  %v5592_v17 = vld [vmem:[#allocation13_spill] sm:$0xff]  ;;  %v1207_v43 = vsub.f32 %v4488_v26, %v4500_v62  ;;  %v5596_v26 = vld [vmem:[#allocation15_spill] sm:$0xff] }
 0x23f   : > { %v3432_v52 = vpop.eup %3431  ;;  %3457 = vpow2.f32 %v1514_v25  ;;  %v1444_v21 = vsub.f32 %v5585_v19, %v1302_v5  ;;  %v1445_v56 = vsub.f32 %v5586_v24, %v1302_v5  ;;  %2234 = vperm.xlu1 %3350, %v4607_v8   ;;  %2229 = vperm.xlu0 %3349, %v4603_v28   ;;  %v1260_v25 = vmul.f32 1.442695, %v1203_v48 }
 0x240   : > { %v3434_v47 = vpop.eup %3433  ;;  %3459 = vpow2.f32 %v1516_v40  ;;  %v4629_v39 = vadd.f32 %v3432_v52, %v3430_v41  ;;  %v1204_v40 = vsub.f32 %v4452_v63, %v4461_v3  ;;  %v1206_v63 = vsub.f32 %v4474_v61, %v4486_v32  ;;  %v5591_v3 = vld [vmem:[#allocation12_spill] sm:$0xff] }
 0x241   : > { %v3436_v31 = vpop.eup %3435  ;;  %v1518_v34 = vmul.f32 1.442695, %v1444_v21  ;;  %v1520_v13 = vmul.f32 1.442695, %v1445_v56  ;;  %v1851_v7 = vpack.c.bf16 %v3434_v47, %v3430_v41  ;;  %3461 = vpow2.f32 %v1252_v53 }
 0x242   : > { %v4631_v9 = vpop.eup %3437  ;;  %v1307_v50 = vpop.permute.xlu1 %1306  ;;  %v1852_v51 = vpack.c.bf16 %v3436_v31, %v3432_v52  ;;  %v4633_v30 = vadd.f32 %v3436_v31, %v3434_v47  ;;  %v1262_v57 = vmul.f32 1.442695, %v1204_v40  ;;  %v1264_v32 = vmul.f32 1.442695, %v1205_v54  ;;  %v5599_v54 = vld [vmem:[#allocation17_spill] sm:$0xff] }
 0x243   : > { %v4635_v59 = vpop.eup %3439  ;;  %3463 = vpow2.f32 %v1518_v34  ;;  %v1446_v38 = vsub.f32 %v5587_v58, %v1307_v50  ;;  %v1447_v4 = vsub.f32 %v5588_v11, %v1307_v50  ;;  %2244 = vperm.xlu1 %3350, %v4615_v12   ;;  %2239 = vperm.xlu0 %3349, %v4613_v10   ;;  %v1208_v58 = vsub.f32 %v4504_v0, %v4517_v60 }
 0x244   : > { %v3442_v6 = vpop.eup %3441  ;;  %3465 = vpow2.f32 %v1520_v13  ;;  %2011 = vmatprep.mubr.bf16.mxu1 %v1852_v51 }
 0x245   : > { %v3444_v41 = vpop.eup %3443  ;;  %3467 = vpow2.f32 %v1254_v33  ;;  %v1522_v53 = vmul.f32 1.442695, %v1446_v38  ;;  %2012 = vmatmul.mubr.bf16.vlgmr.msra.gmra.mxu1 %v1851_v7  ;;  %v1524_v44 = vmul.f32 1.442695, %v1447_v4  ;;  %v1266_v7 = vmul.f32 1.442695, %v1206_v63 }
 0x246   : > { %v4643_v49 = vpop.eup %3445  ;;  %3469 = vpow2.f32 %v1256_v15  ;;  %v1312_v5 = vpop.permute.xlu1 %1311  ;;  %v4647_v52 = vadd.f32 %v3444_v41, %v3442_v6  ;;  %v5595_v15 = vld [vmem:[#allocation14_spill] sm:$0xff]  ;;  %v1270_v60 = vmul.f32 1.442695, %v1208_v58 }
 0x247   : > { %5589 = vst [vmem:[#allocation63_spill] sm:$0xff] %v4643_v49  ;;  %v4649_v29 = vpop.eup %3447  ;;  %3471 = vpow2.f32 %v1258_v35  ;;  %v1448_v45 = vsub.f32 %v5591_v3, %v1312_v5  ;;  %v1449_v19 = vsub.f32 %v5592_v17, %v1312_v5  ;;  %2254 = vperm.xlu1 %3350, %v4635_v59   ;;  %2249 = vperm.xlu0 %3349, %v4631_v9   ;;  %v1268_v35 = vmul.f32 1.442695, %v1207_v43 }
 0x248   : > { %5590 = vst [vmem:[#allocation62_spill] sm:$0xff] %v4649_v29  ;;  %v3450_v21 = vpop.eup %3449  ;;  %3473 = vpow2.f32 %v1260_v25 }
 0x249   : > { %v3452_v24 = vpop.eup %3451  ;;  %3475 = vpow2.f32 %v1522_v53  ;;  %v1526_v56 = vmul.f32 1.442695, %v1448_v45  ;;  %v1528_v47 = vmul.f32 1.442695, %v1449_v19  ;;  %v1853_v48 = vpack.c.bf16 %v3450_v21, %v3442_v6 }
 0x24a   : > { %v4659_v61 = vpop.eup %3453  ;;  %3477 = vpow2.f32 %v1524_v44  ;;  %v1317_v31 = vpop.permute.xlu1 %1316  ;;  %v1854_v33 = vpack.c.bf16 %v3452_v24, %v3444_v41  ;;  %v4661_v34 = vadd.f32 %v3452_v24, %v3450_v21  ;;  %v5598_v41 = vld [vmem:[#allocation16_spill] sm:$0xff]  ;;  %v5602_v24 = vld [vmem:[#allocation18_spill] sm:$0xff] }
 0x24b   : > { %5593 = vst [vmem:[#allocation65_spill] sm:$0xff] %v4659_v61  ;;  %v4663_v13 = vpop.eup %3455  ;;  %3479 = vpow2.f32 %v1526_v56  ;;  %v1450_v50 = vsub.f32 %v5595_v15, %v1317_v31  ;;  %v1451_v62 = vsub.f32 %v5596_v26, %v1317_v31  ;;  %2264 = vperm.xlu1 %3350, %v4649_v29   ;;  %2259 = vperm.xlu0 %3349, %v4643_v49   ;;  %v5636_v29 = vld [vmem:[#allocation45_spill] sm:$0xff] }
 0x24c   : > { %5594 = vst [vmem:[#allocation64_spill] sm:$0xff] %v4663_v13  ;;  %v3458_v51 = vpop.eup %3457  ;;  %3481 = vpow2.f32 %v1528_v47  ;;  %2019 = vmatprep.mubr.bf16.mxu1 %v1854_v33  ;;  %v5603_v47 = vld [vmem:[#allocation19_spill] sm:$0xff] }
 0x24d   : > { %v3460_v38 = vpop.eup %3459  ;;  %3483 = vpow2.f32 %v1262_v57  ;;  %v1530_v11 = vmul.f32 1.442695, %v1450_v50  ;;  %2020 = vmatmul.mubr.bf16.gmra.mxu1 %v1853_v48  ;;  %v1532_v4 = vmul.f32 1.442695, %v1451_v62  ;;  %v5606_v62 = vld [vmem:[#allocation20_spill] sm:$0xff] }
 0x24e   : > { %3485 = vpow2.f32 %v1264_v32  ;;  %v1322_v6 = vpop.permute.xlu0 %1321  ;;  %v4671_v25 = vadd.f32 %v3460_v38, %v3458_v51  ;;  %v4673_v40 = vpop.eup %3461 }
 0x24f   : > { %5597 = vst [vmem:[#allocation67_spill] sm:$0xff] %v4673_v40  ;;  %3487 = vpow2.f32 %v1266_v7  ;;  %v1452_v53 = vsub.f32 %v5598_v41, %v1322_v6  ;;  %v1453_v44 = vsub.f32 %v5599_v54, %v1322_v6  ;;  %2274 = vperm.xlu1 %3350, %v4663_v13   ;;  %2269 = vperm.xlu0 %3349, %v4659_v61   ;;  %v5632_v61 = vld [vmem:[#allocation41_spill] sm:$0xff] }
 0x250   : > { %v3464_v0 = vpop.eup %3463  ;;  %3489 = vpow2.f32 %v1268_v35  ;;  %v5607_v35 = vld [vmem:[#allocation21_spill] sm:$0xff] }
 0x251   : > { %v3466_v5 = vpop.eup %3465  ;;  %3491 = vpow2.f32 %v1530_v11  ;;  %v1534_v63 = vmul.f32 1.442695, %v1452_v53  ;;  %v1536_v3 = vmul.f32 1.442695, %v1453_v44  ;;  %v1855_v45 = vpack.c.bf16 %v3464_v0, %v3458_v51 }
 0x252   : > { %v4679_v17 = vpop.eup %3467  ;;  %3493 = vpow2.f32 %v1532_v4  ;;  %v1327_v19 = vpop.permute.xlu1 %1326  ;;  %v1856_v21 = vpack.c.bf16 %v3466_v5, %v3460_v38  ;;  %v4681_v57 = vadd.f32 %v3466_v5, %v3464_v0  ;;  %v5610_v5 = vld [vmem:[#allocation22_spill] sm:$0xff] }
 0x253   : > { %5600 = vst [vmem:[#allocation66_spill] sm:$0xff] %v4679_v17  ;;  %v4683_v43 = vpop.eup %3469  ;;  %3495 = vpow2.f32 %v1534_v63  ;;  %v1454_v56 = vsub.f32 %v5602_v24, %v1327_v19  ;;  %v1455_v48 = vsub.f32 %v5603_v47, %v1327_v19  ;;  %2284 = vperm.xlu1 %3350, %v4679_v17   ;;  %2279 = vperm.xlu0 %3349, %v4673_v40  }
 0x254   : > { %5601 = vst [vmem:[#allocation8_spill] sm:$0xff] %v4683_v43  ;;  %v4689_v32 = vpop.eup %3471  ;;  %3497 = vpow2.f32 %v1536_v3  ;;  %2027 = vmatprep.mubr.bf16.mxu1 %v1856_v21  ;;  %v5611_v3 = vld [vmem:[#allocation23_spill] sm:$0xff] }
 0x255   : > { %5604 = vst [vmem:[#allocation9_spill] sm:$0xff] %v4689_v32  ;;  %v4691_v31 = vpop.eup %3473  ;;  %3499 = vpow2.f32 %v1270_v60  ;;  %v1538_v33 = vmul.f32 1.442695, %v1454_v56  ;;  %2028 = vmatmul.mubr.bf16.gmra.mxu1 %v1855_v45  ;;  %v1540_v15 = vmul.f32 1.442695, %v1455_v48 }
 0x256   : > { %5605 = vst [vmem:[#allocation10_spill] sm:$0xff] %v4691_v31  ;;  %v4693_v7 = vpop.eup %3475  ;;  %v1332_v50 = vpop.permute.xlu0 %1331 }
 0x257   : > { %v4695_v26 = vpop.eup %3477  ;;  %v1456_v51 = vsub.f32 %v5606_v62, %v1332_v50  ;;  %v1457_v58 = vsub.f32 %v5607_v35, %v1332_v50  ;;  %2294 = vperm.xlu1 %3350, %v4689_v32   ;;  %2289 = vperm.xlu0 %3349, %v4683_v43   ;;  %3501 = vpow2.f32 %v1538_v33  ;;  %v5615_v62 = vld [vmem:[#allocation25_spill] sm:$0xff] }
 0x258   : > { %v3480_v38 = vpop.eup %3479  ;;  %3503 = vpow2.f32 %v1540_v15  ;;  %v5614_v15 = vld [vmem:[#allocation24_spill] sm:$0xff]  ;;  %v5628_v43 = vld [vmem:[#allocation37_spill] sm:$0xff] }
 0x259   : > { %v3482_v11 = vpop.eup %3481  ;;  %v1542_v4 = vmul.f32 1.442695, %v1456_v51  ;;  %v1544_v6 = vmul.f32 1.442695, %v1457_v58  ;;  %v1857_v41 = vpack.c.bf16 %v3480_v38, %v4693_v7 }
 0x25a   : > { %v4702_v53 = vpop.eup %3483  ;;  %v1337_v54 = vpop.permute.xlu1 %1336  ;;  %v1858_v44 = vpack.c.bf16 %v3482_v11, %v4695_v26  ;;  %v4705_v0 = vadd.f32 %v3482_v11, %v3480_v38 }
 0x25b   : > { %5608 = vst [vmem:[#allocation11_spill] sm:$0xff] %v4702_v53  ;;  %v4707_v60 = vpop.eup %3485  ;;  %3505 = vpow2.f32 %v1542_v4  ;;  %v1458_v63 = vsub.f32 %v5610_v5, %v1337_v54  ;;  %v1459_v45 = vsub.f32 %v5611_v3, %v1337_v54  ;;  %2304 = vperm.xlu1 %3350, %v4702_v53   ;;  %2299 = vperm.xlu0 %3349, %v4691_v31  }
 0x25c   : > { %5609 = vst [vmem:[#allocation12_spill] sm:$0xff] %v4707_v60  ;;  %v4713_v19 = vpop.eup %3487  ;;  %3507 = vpow2.f32 %v1544_v6  ;;  %2035 = vmatprep.mubr.bf16.mxu1 %v1858_v44  ;;  %v5617_v44 = vld [vmem:[#allocation26_spill] sm:$0xff] }
 0x25d   : > { %5612 = vst [vmem:[#allocation13_spill] sm:$0xff] %v4713_v19  ;;  %v4715_v21 = vpop.eup %3489  ;;  %v1546_v24 = vmul.f32 1.442695, %v1458_v63  ;;  %2036 = vmatmul.mubr.bf16.gmra.mxu1 %v1857_v41  ;;  %v1548_v47 = vmul.f32 1.442695, %v1459_v45  ;;  %v5618_v63 = vld [vmem:[#allocation27_spill] sm:$0xff] }
 0x25e   : > { %5613 = vst [vmem:[#allocation14_spill] sm:$0xff] %v4715_v21  ;;  %v4717_v56 = vpop.eup %3491  ;;  %v1342_v48 = vpop.permute.xlu0 %1341 }
 0x25f   : > { %v4719_v33 = vpop.eup %3493  ;;  %v1460_v50 = vsub.f32 %v5614_v15, %v1342_v48  ;;  %v1461_v51 = vsub.f32 %v5615_v62, %v1342_v48  ;;  %2314 = vperm.xlu1 %3350, %v4713_v19   ;;  %2309 = vperm.xlu0 %3349, %v4707_v60   ;;  %3509 = vpow2.f32 %v1546_v24  ;;  %v5624_v60 = vld [vmem:[#allocation33_spill] sm:$0xff] }
 0x260   : > { %v4725_v35 = vpop.eup %3495  ;;  %3511 = vpow2.f32 %v1548_v47 }
 0x261   : > { %v4727_v58 = vpop.eup %3497  ;;  %v1550_v38 = vmul.f32 1.442695, %v1460_v50  ;;  %v1552_v11 = vmul.f32 1.442695, %v1461_v51  ;;  %v1859_v4 = vpack.c.bf16 %v4725_v35, %v4717_v56  ;;  %v5619_v50 = vld [vmem:[#allocation28_spill] sm:$0xff]  ;;  %v5620_v51 = vld [vmem:[#allocation29_spill] sm:$0xff] }
 0x262   : > { %v4731_v6 = vpop.eup %3499  ;;  %v1347_v41 = vpop.permute.xlu1 %1346  ;;  %v1860_v54 = vpack.c.bf16 %v4727_v58, %v4719_v33 }
 0x263   : > { %5616 = vst [vmem:[#allocation15_spill] sm:$0xff] %v4731_v6  ;;  %3513 = vpow2.f32 %v1550_v38  ;;  %v1462_v5 = vsub.f32 %v5617_v44, %v1347_v41  ;;  %v1463_v3 = vsub.f32 %v5618_v63, %v1347_v41  ;;  %2324 = vperm.xlu1 %3350, %v4731_v6   ;;  %2319 = vperm.xlu0 %3349, %v4715_v21  }
 0x264   : > { %3515 = vpow2.f32 %v1552_v11  ;;  %2043 = vmatprep.mubr.bf16.mxu1 %v1860_v54  ;;  %v4739_v24 = vpop.eup %3501 }
 0x265   : > { %v1554_v45 = vmul.f32 1.442695, %v1462_v5  ;;  %2044 = vmatmul.mubr.bf16.gmra.mxu1 %v1859_v4  ;;  %v1556_v47 = vmul.f32 1.442695, %v1463_v3  ;;  %v4741_v15 = vpop.eup %3503  ;;  %v5621_v3 = vld [vmem:[#allocation30_spill] sm:$0xff] }
 0x266   : > { %v1352_v48 = vpop.permute.xlu0 %1351 }
 0x267   : > { %v1464_v62 = vsub.f32 %v5619_v50, %v1352_v48  ;;  %v1465_v38 = vsub.f32 %v5620_v51, %v1352_v48  ;;  %3517 = vpow2.f32 %v1554_v45 }
 0x268   : > { %v4745_v44 = vpop.eup %3505  ;;  %3519 = vpow2.f32 %v1556_v47  ;;  %v5623_v47 = vld [vmem:[#allocation32_spill] sm:$0xff] }
 0x269   : > { %v4747_v41 = vpop.eup %3507  ;;  %v1558_v63 = vmul.f32 1.442695, %v1464_v62  ;;  %v1560_v11 = vmul.f32 1.442695, %v1465_v38  ;;  %v1861_v4 = vpack.c.bf16 %v4745_v44, %v4739_v24 }
 0x26a   : > { %v1357_v54 = vpop.permute.xlu1 %1356  ;;  %v1862_v5 = vpack.c.bf16 %v4747_v41, %v4741_v15 }
 0x26b   : > { %3521 = vpow2.f32 %v1558_v63  ;;  %v1466_v50 = vsub.f32 %v5621_v3, %v1357_v54  ;;  %v1467_v48 = vsub.f32 %v5622_v2, %v1357_v54  ;;  %v5625_v3 = vld [vmem:[#allocation34_spill] sm:$0xff] }
 0x26c   : > { %3523 = vpow2.f32 %v1560_v11  ;;  %2051 = vmatprep.mubr.bf16.mxu1 %v1862_v5  ;;  %v4755_v45 = vpop.eup %3509 }
 0x26d   : > { %v1562_v51 = vmul.f32 1.442695, %v1466_v50  ;;  %2052 = vmatmul.mubr.bf16.gmra.mxu1 %v1861_v4  ;;  %v1564_v62 = vmul.f32 1.442695, %v1467_v48  ;;  %v4757_v21 = vpop.eup %3511  ;;  %v5626_v48 = vld [vmem:[#allocation35_spill] sm:$0xff] }
 0x26e   : > { %v1362_v38 = vpop.permute.xlu0 %1361 }
 0x26f   : > { %v1468_v6 = vsub.f32 %v5623_v47, %v1362_v38  ;;  %v1469_v19 = vsub.f32 %v5624_v60, %v1362_v38  ;;  %3525 = vpow2.f32 %v1562_v51 }
 0x270   : > { %v4761_v31 = vpop.eup %3513  ;;  %3527 = vpow2.f32 %v1564_v62  ;;  %v5627_v62 = vld [vmem:[#allocation36_spill] sm:$0xff] }
 0x271   : > { %v4763_v63 = vpop.eup %3515  ;;  %v1566_v2 = vmul.f32 1.442695, %v1468_v6  ;;  %v1568_v11 = vmul.f32 1.442695, %v1469_v19  ;;  %v1863_v4 = vpack.c.bf16 %v4761_v31, %v4755_v45 }
 0x272   : > { %v1367_v54 = vpop.permute.xlu1 %1366  ;;  %v1864_v5 = vpack.c.bf16 %v4763_v63, %v4757_v21 }
 0x273   : > { %3529 = vpow2.f32 %v1566_v2  ;;  %v1470_v50 = vsub.f32 %v5625_v3, %v1367_v54  ;;  %v1471_v60 = vsub.f32 %v5626_v48, %v1367_v54 }
 0x274   : > { %3531 = vpow2.f32 %v1568_v11  ;;  %2059 = vmatprep.mubr.bf16.mxu1 %v1864_v5  ;;  %v4771_v51 = vpop.eup %3517 }
 0x275   : > { %v1570_v38 = vmul.f32 1.442695, %v1470_v50  ;;  %2060 = vmatmul.mubr.bf16.gmra.mxu1 %v1863_v4  ;;  %v1572_v19 = vmul.f32 1.442695, %v1471_v60  ;;  %v4773_v47 = vpop.eup %3519  ;;  %v5629_v50 = vld [vmem:[#allocation38_spill] sm:$0xff]  ;;  %v5630_v60 = vld [vmem:[#allocation39_spill] sm:$0xff] }
 0x276   : > { %v1372_v6 = vpop.permute.xlu0 %1371 }
 0x277   : > { %v1472_v53 = vsub.f32 %v5627_v62, %v1372_v6  ;;  %v1473_v32 = vsub.f32 %v5628_v43, %v1372_v6  ;;  %3533 = vpow2.f32 %v1570_v38 }
 0x278   : > { %v4777_v40 = vpop.eup %3521  ;;  %3535 = vpow2.f32 %v1572_v19  ;;  %v5631_v19 = vld [vmem:[#allocation40_spill] sm:$0xff] }
 0x279   : > { %v4779_v2 = vpop.eup %3523  ;;  %v1574_v54 = vmul.f32 1.442695, %v1472_v53  ;;  %v1576_v11 = vmul.f32 1.442695, %v1473_v32  ;;  %v1865_v4 = vpack.c.bf16 %v4777_v40, %v4771_v51 }
 0x27a   : > { %v1377_v5 = vpop.permute.xlu1 %1376  ;;  %v1866_v3 = vpack.c.bf16 %v4779_v2, %v4773_v47 }
 0x27b   : > { %3537 = vpow2.f32 %v1574_v54  ;;  %v1474_v48 = vsub.f32 %v5629_v50, %v1377_v5  ;;  %v1475_v43 = vsub.f32 %v5630_v60, %v1377_v5  ;;  %v5634_v60 = vld [vmem:[#allocation43_spill] sm:$0xff] }
 0x27c   : > { %3539 = vpow2.f32 %v1576_v11  ;;  %2067 = vmatprep.mubr.bf16.mxu1 %v1866_v3  ;;  %v4787_v38 = vpop.eup %3525 }
 0x27d   : > { %v1578_v6 = vmul.f32 1.442695, %v1474_v48  ;;  %2068 = vmatmul.mubr.bf16.gmra.mxu1 %v1865_v4  ;;  %v1580_v32 = vmul.f32 1.442695, %v1475_v43  ;;  %v4789_v62 = vpop.eup %3527  ;;  %v5633_v48 = vld [vmem:[#allocation42_spill] sm:$0xff] }
 0x27e   : > { %v1382_v53 = vpop.permute.xlu0 %1381 }
 0x27f   : > { %v1476_v17 = vsub.f32 %v5631_v19, %v1382_v53  ;;  %v1477_v13 = vsub.f32 %v5632_v61, %v1382_v53  ;;  %3541 = vpow2.f32 %v1578_v6 }
 0x280   : > { %v4793_v49 = vpop.eup %3529  ;;  %3543 = vpow2.f32 %v1580_v32  ;;  %v5635_v32 = vld [vmem:[#allocation44_spill] sm:$0xff] }
 0x281   : > { %v4795_v54 = vpop.eup %3531  ;;  %v1582_v5 = vmul.f32 1.442695, %v1476_v17  ;;  %v1584_v11 = vmul.f32 1.442695, %v1477_v13  ;;  %v1867_v4 = vpack.c.bf16 %v4793_v49, %v4787_v38 }
 0x282   : > { %1694 = vadd.xlane.f32.xlu0 %v4633_v30  ;;  %v1387_v3 = vpop.permute.xlu1 %1386  ;;  %v1868_v50 = vpack.c.bf16 %v4795_v54, %v4789_v62 }
 0x283   : > { %3545 = vpow2.f32 %v1582_v5  ;;  %v1478_v61 = vsub.f32 %v5633_v48, %v1387_v3  ;;  %v1479_v43 = vsub.f32 %v5634_v60, %v1387_v3  ;;  %v5638_v60 = vld [vmem:[#allocation47_spill] sm:$0xff] }
 0x284   : > { %3547 = vpow2.f32 %v1584_v11  ;;  %2075 = vmatprep.mubr.bf16.mxu1 %v1868_v50  ;;  %v4804_v13 = vpop.eup %3533 }
 0x285   : > { %v1586_v6 = vmul.f32 1.442695, %v1478_v61  ;;  %2076 = vmatmul.mubr.bf16.gmra.mxu1 %v1867_v4  ;;  %v1588_v17 = vmul.f32 1.442695, %v1479_v43  ;;  %v4807_v30 = vpop.eup %3535 }
 0x286   : > { %v1392_v53 = vpop.permute.xlu0 %1391  ;;  %1697 = vadd.xlane.f32.xlu0 %v4647_v52 }
 0x287   : > { %v1480_v19 = vsub.f32 %v5635_v32, %v1392_v53  ;;  %v1481_v5 = vsub.f32 %v5636_v29, %v1392_v53  ;;  %1691 = vadd.xlane.f32.xlu1 %v4629_v39  ;;  %3549 = vpow2.f32 %v1586_v6  ;;  %v5637_v29 = vld [vmem:[#allocation46_spill] sm:$0xff]  ;;  %v1708_v6 = vadd.f32 %v4695_v26, %v4693_v7 }
 0x288   : > { %v4812_v48 = vpop.eup %3537  ;;  %3551 = vpow2.f32 %v1588_v17  ;;  %v1714_v7 = vadd.f32 %v4719_v33, %v4717_v56  ;;  %v1720_v56 = vadd.f32 %v4741_v15, %v4739_v24  ;;  %v1726_v24 = vadd.f32 %v4757_v21, %v4755_v45  ;;  %v5646_v45 = vld [vmem:[#allocation55_spill] sm:$0xff] }
 0x289   : > { %v4814_v11 = vpop.eup %3539  ;;  %v1590_v4 = vmul.f32 1.442695, %v1480_v19  ;;  %v1592_v3 = vmul.f32 1.442695, %v1481_v5  ;;  %v1869_v50 = vpack.c.bf16 %v4812_v48, %v4804_v13  ;;  %v5639_v5 = vld [vmem:[#allocation48_spill] sm:$0xff] }
 0x28a   : > { %1703 = vadd.xlane.f32.xlu0 %v4671_v25  ;;  %v1397_v52 = vpop.permute.xlu1 %1396  ;;  %v1870_v61 = vpack.c.bf16 %v4814_v11, %v4807_v30 }
 0x28b   : > { %3553 = vpow2.f32 %v1590_v4  ;;  %v1482_v39 = vsub.f32 %v5637_v29, %v1397_v52  ;;  %v1483_v43 = vsub.f32 %v5638_v60, %v1397_v52  ;;  %1700 = vadd.xlane.f32.xlu1 %v4661_v34  ;;  %v5640_v29 = vld [vmem:[#allocation49_spill] sm:$0xff] }
 0x28c   : > { %3555 = vpow2.f32 %v1592_v3  ;;  %2083 = vmatprep.mubr.bf16.mxu1 %v1870_v61  ;;  %v4826_v17 = vpop.eup %3541 }
 0x28d   : > { %v1594_v53 = vmul.f32 1.442695, %v1482_v39  ;;  %2084 = vmatmul.mubr.bf16.gmra.mxu1 %v1869_v50  ;;  %v1596_v25 = vmul.f32 1.442695, %v1483_v43  ;;  %v4828_v19 = vpop.eup %3543 }
 0x28e   : > { %v1402_v32 = vpop.permute.xlu0 %1401  ;;  %1709 = vadd.xlane.f32.xlu0 %v1708_v6  ;;  %v5642_v6 = vld [vmem:[#allocation51_spill] sm:$0xff] }
 0x28f   : > { %v1484_v4 = vsub.f32 %v5639_v5, %v1402_v32  ;;  %v1485_v52 = vsub.f32 %v5640_v29, %v1402_v32  ;;  %1706 = vadd.xlane.f32.xlu1 %v4681_v57  ;;  %3557 = vpow2.f32 %v1594_v53  ;;  %v5641_v57 = vld [vmem:[#allocation50_spill] sm:$0xff]  ;;  %v1717_v53 = vadd.f32 %v4727_v58, %v4725_v35 }
 0x290   : > { %v4833_v34 = vpop.eup %3545  ;;  %3559 = vpow2.f32 %v1596_v25  ;;  %v1723_v35 = vadd.f32 %v4747_v41, %v4745_v44  ;;  %v1732_v44 = vadd.f32 %v4773_v47, %v4771_v51  ;;  %v1738_v51 = vadd.f32 %v4789_v62, %v4787_v38  ;;  %v5650_v38 = vld [vmem:[#allocation59_spill] sm:$0xff] }
 0x291   : > { %v4837_v26 = vpop.eup %3547  ;;  %v1598_v3 = vmul.f32 1.442695, %v1484_v4  ;;  %v1600_v50 = vmul.f32 1.442695, %v1485_v52  ;;  %v1871_v61 = vpack.c.bf16 %v4833_v34, %v4826_v17  ;;  %v5643_v52 = vld [vmem:[#allocation52_spill] sm:$0xff] }
 0x292   : > { %1715 = vadd.xlane.f32.xlu0 %v1714_v7  ;;  %v1407_v39 = vpop.permute.xlu1 %1406  ;;  %v1872_v60 = vpack.c.bf16 %v4837_v26, %v4828_v19 }
 0x293   : > { %3561 = vpow2.f32 %v1598_v3  ;;  %v1486_v43 = vsub.f32 %v5641_v57, %v1407_v39  ;;  %v1487_v32 = vsub.f32 %v5642_v6, %v1407_v39  ;;  %1712 = vadd.xlane.f32.xlu1 %v4705_v0  ;;  %v5644_v0 = vld [vmem:[#allocation53_spill] sm:$0xff] }
 0x294   : > { %3563 = vpow2.f32 %v1600_v50  ;;  %2091 = vmatprep.mubr.bf16.mxu1 %v1872_v60  ;;  %v4850_v25 = vpop.eup %3549 }
 0x295   : > { %v1602_v33 = vmul.f32 1.442695, %v1486_v43  ;;  %2092 = vmatmul.mubr.bf16.gmra.mxu1 %v1871_v61  ;;  %v1604_v5 = vmul.f32 1.442695, %v1487_v32  ;;  %v4852_v29 = vpop.eup %3551  ;;  %v5645_v43 = vld [vmem:[#allocation54_spill] sm:$0xff]  ;;  %v1729_v32 = vadd.f32 %v4763_v63, %v4761_v31  ;;  %v1735_v31 = vadd.f32 %v4779_v2, %v4777_v40 }
 0x296   : > { %v1412_v4 = vpop.permute.xlu0 %1411  ;;  %1721 = vadd.xlane.f32.xlu0 %v1720_v56  ;;  %v1744_v40 = vadd.f32 %v4807_v30, %v4804_v13  ;;  %v1747_v13 = vadd.f32 %v4814_v11, %v4812_v48 }
 0x297   : > { %v1488_v7 = vsub.f32 %v5643_v52, %v1412_v4  ;;  %v1489_v3 = vsub.f32 %v5644_v0, %v1412_v4  ;;  %1718 = vadd.xlane.f32.xlu1 %v1717_v53  ;;  %3565 = vpow2.f32 %v1602_v33  ;;  %v5647_v52 = vld [vmem:[#allocation56_spill] sm:$0xff]  ;;  %v5648_v0 = vld [vmem:[#allocation57_spill] sm:$0xff] }
 0x298   : > { %v4856_v50 = vpop.eup %3553  ;;  %3567 = vpow2.f32 %v1604_v5 }
 0x299   : > { %v4862_v58 = vpop.eup %3555  ;;  %v1606_v15 = vmul.f32 1.442695, %v1488_v7  ;;  %v1608_v61 = vmul.f32 1.442695, %v1489_v3  ;;  %v1873_v39 = vpack.c.bf16 %v4856_v50, %v4850_v25 }
 0x29a   : > { %1727 = vadd.xlane.f32.xlu0 %v1726_v24  ;;  %v1417_v60 = vpop.permute.xlu1 %1416  ;;  %v1874_v57 = vpack.c.bf16 %v4862_v58, %v4852_v29 }
 0x29b   : > { %3569 = vpow2.f32 %v1606_v15  ;;  %v1490_v21 = vsub.f32 %v5645_v43, %v1417_v60  ;;  %v1491_v6 = vsub.f32 %v5646_v45, %v1417_v60  ;;  %1724 = vadd.xlane.f32.xlu1 %v1723_v35 }
 0x29c   : > { %3571 = vpow2.f32 %v1608_v61  ;;  %2099 = vmatprep.mubr.bf16.mxu1 %v1874_v57  ;;  %v4874_v56 = vpop.eup %3557  ;;  %v5649_v57 = vld [vmem:[#allocation58_spill] sm:$0xff] }
 0x29d   : > { %v1610_v41 = vmul.f32 1.442695, %v1490_v21  ;;  %2100 = vmatmul.mubr.bf16.gmra.mxu1 %v1873_v39  ;;  %v1612_v33 = vmul.f32 1.442695, %v1491_v6  ;;  %v3560_v4 = vpop.eup %3559  ;;  %v1741_v21 = vadd.f32 %v4795_v54, %v4793_v49 }
 0x29e   : > { %v1422_v53 = vpop.permute.xlu0 %1421  ;;  %1733 = vadd.xlane.f32.xlu0 %v1732_v44  ;;  %v4876_v5 = vpop.permute.xlu1 %2179 }
 0x29f   : > { %v1492_v7 = vsub.f32 %v5647_v52, %v1422_v53  ;;  %v1493_v3 = vsub.f32 %v5648_v0, %v1422_v53  ;;  %1730 = vadd.xlane.f32.xlu1 %v1729_v32  ;;  %3573 = vpow2.f32 %v1610_v41  ;;  %v5651_v32 = vld [vmem:[#allocation60_spill] sm:$0xff]  ;;  %v5652_v53 = vld [vmem:[#allocation61_spill] sm:$0xff]  ;;  %v1750_v0 = vadd.f32 %v4828_v19, %v4826_v17 }
 0x2a0   : > { %v4880_v24 = vpop.eup %3561  ;;  %3575 = vpow2.f32 %v1612_v33  ;;  %v1753_v17 = vadd.f32 %v4837_v26, %v4833_v34 }
 0x2a1   : > { %v3564_v63 = vpop.eup %3563  ;;  %v1614_v47 = vmul.f32 1.442695, %v1492_v7  ;;  %v1616_v35 = vmul.f32 1.442695, %v1493_v3  ;;  %v1875_v15 = vpack.c.bf16 %v4880_v24, %v4874_v56 }
 0x2a2   : > { %v4888_v61 = vpop.permute.xlu0 %2174  ;;  %1739 = vadd.xlane.f32.xlu0 %v1738_v51  ;;  %v1427_v39 = vpop.permute.xlu1 %1426  ;;  %v1876_v60 = vpack.c.bf16 %v3564_v63, %v3560_v4  ;;  %v1765_v34 = vadd.f32 %v3564_v63, %v4880_v24 }
 0x2a3   : > { %3577 = vpow2.f32 %v1614_v47  ;;  %v1494_v43 = vsub.f32 %v5649_v57, %v1427_v39  ;;  %v1495_v62 = vsub.f32 %v5650_v38, %v1427_v39  ;;  %1736 = vadd.xlane.f32.xlu1 %v1735_v31  ;;  %v1756_v31 = vadd.f32 %v4852_v29, %v4850_v25 }
 0x2a4   : > { %3579 = vpow2.f32 %v1616_v35  ;;  %2107 = vmatprep.mubr.bf16.mxu1 %v1876_v60  ;;  %v3566_v45 = vpop.eup %3565  ;;  %v1762_v47 = vadd.f32 %v3560_v4, %v4874_v56 }
 0x2a5   : > { %v1618_v2 = vmul.f32 1.442695, %v1494_v43  ;;  %2108 = vmatmul.mubr.bf16.gmra.mxu1 %v1875_v15  ;;  %v1620_v6 = vmul.f32 1.442695, %v1495_v62  ;;  %v3568_v41 = vpop.eup %3567  ;;  %v1759_v15 = vadd.f32 %v4862_v58, %v4856_v50 }
 0x2a6   : > { %v1432_v44 = vpop.permute.xlu0 %1431  ;;  %1745 = vadd.xlane.f32.xlu0 %v1744_v40  ;;  %v1768_v25 = vadd.f32 %v3568_v41, %v3566_v45  ;;  %v4910_v43 = vpop.permute.xlu1 %2184 }
 0x2a7   : > { %v1496_v33 = vsub.f32 %v5651_v32, %v1432_v44  ;;  %v1497_v52 = vsub.f32 %v5652_v53, %v1432_v44  ;;  %1742 = vadd.xlane.f32.xlu1 %v1741_v21  ;;  %3581 = vpow2.f32 %v1618_v2 }
 0x2a8   : > { %v3570_v7 = vpop.eup %3569  ;;  %3583 = vpow2.f32 %v1620_v6 }
 0x2a9   : > { %v3572_v30 = vpop.eup %3571  ;;  %v1622_v49 = vmul.f32 1.442695, %v1496_v33  ;;  %v1624_v54 = vmul.f32 1.442695, %v1497_v52  ;;  %v1877_v3 = vpack.c.bf16 %v3570_v7, %v3566_v45  ;;  %v5653_v45 = vsub.f32 %v4521_v20, %v4537_v42 }
 0x2aa   : > { %1751 = vadd.xlane.f32.xlu0 %v1750_v0  ;;  %v1878_v51 = vpack.c.bf16 %v3572_v30, %v3568_v41  ;;  %v4912_v38 = vpop.permute.xlu0 %2189  ;;  %v1771_v50 = vadd.f32 %v3572_v30, %v3570_v7  ;;  %v4914_v63 = vpop.permute.xlu1 %2194 }
 0x2ab   : > { %3585 = vpow2.f32 %v1622_v49  ;;  %1748 = vadd.xlane.f32.xlu1 %v1747_v13  ;;  %v1272_v6 = vmul.f32 1.442695, %v5653_v45 }
 0x2ac   : > { %3587 = vpow2.f32 %v1624_v54  ;;  %2115 = vmatprep.mubr.bf16.mxu1 %v1878_v51  ;;  %v3574_v48 = vpop.eup %3573 }
 0x2ad   : > { %2116 = vmatmul.mubr.bf16.gmra.mxu1 %v1877_v3  ;;  %v3576_v11 = vpop.eup %3575  ;;  %3589 = vpow2.f32 %v1272_v6 }
 0x2ae   : > { %1757 = vadd.xlane.f32.xlu0 %v1756_v31  ;;  %v1774_v56 = vadd.f32 %v3576_v11, %v3574_v48  ;;  %v4916_v2 = vpop.permute.xlu0 %2199  ;;  %v4921_v44 = vpop.permute.xlu1 %2204 }
 0x2af   : > { %1754 = vadd.xlane.f32.xlu1 %v1753_v17 }
 0x2b0   : > { %v3578_v19 = vpop.eup %3577 }
 0x2b1   : > { %v3580_v35 = vpop.eup %3579  ;;  %v1879_v39 = vpack.c.bf16 %v3578_v19, %v3574_v48 }
 0x2b2   : > { %1763 = vadd.xlane.f32.xlu0 %v1762_v47  ;;  %v1880_v60 = vpack.c.bf16 %v3580_v35, %v3576_v11  ;;  %v1777_v24 = vadd.f32 %v3580_v35, %v3578_v19  ;;  %v4923_v41 = vpop.permute.xlu0 %2209  ;;  %v4925_v32 = vpop.permute.xlu1 %2214 }
 0x2b3   : > { %1760 = vadd.xlane.f32.xlu1 %v1759_v15 }
 0x2b4   : > { %2123 = vmatprep.mubr.bf16.mxu1 %v1880_v60  ;;  %v3582_v26 = vpop.eup %3581 }
 0x2b5   : > { %2124 = vmatmul.mubr.bf16.gmra.mxu1 %v1879_v39  ;;  %v3584_v29 = vpop.eup %3583 }
 0x2b6   : > { %1769 = vadd.xlane.f32.xlu0 %v1768_v25  ;;  %v1780_v40 = vadd.f32 %v3584_v29, %v3582_v26  ;;  %v4927_v33 = vpop.permute.xlu0 %2219  ;;  %v4929_v53 = vpop.permute.xlu1 %2224 }
 0x2b7   : > { %1766 = vadd.xlane.f32.xlu1 %v1765_v34  ;;  %v1627_v34 = vld [vmem:[#allocation3 + $0x8] sm:$0xff] }
 0x2b8   : > { %v3586_v57 = vpop.eup %3585 }
 0x2b9   : > { %v3588_v4 = vpop.eup %3587  ;;  %v1881_v58 = vpack.c.bf16 %v3586_v57, %v3582_v26  ;;  %v2332_v26 = vmul.f32 0.0, %v4888_v61 }
 0x2ba   : > { %1775 = vadd.xlane.f32.xlu0 %v1774_v56  ;;  %v1882_v62 = vpack.c.bf16 %v3588_v4, %v3584_v29  ;;  %v1783_v21 = vadd.f32 %v3588_v4, %v3586_v57  ;;  %v4931_v52 = vpop.permute.xlu0 %2229  ;;  %v4933_v7 = vpop.eup %3589  ;;  %v1659_v4 = vmul.f32 %v4502_v1, %v1627_v34  ;;  %v1630_v1 = vld [vmem:[#allocation3 + $0x20] sm:$0xff] }
 0x2bb   : > { %1772 = vadd.xlane.f32.xlu1 %v1771_v50  ;;  %v4936_v20 = vpop.permute.xlu1 %2234 }
 0x2bc   : > { %2131 = vmatprep.mubr.bf16.mxu1 %v1882_v62  ;;  %v1628_v62 = vld [vmem:[#allocation3 + $0x10] sm:$0xff] }
 0x2bd   : > { %2132 = vmatmul.mubr.bf16.gmra.mxu1 %v1881_v58  ;;  %v1660_v61 = vmul.f32 %v4539_v46, %v1628_v62 }
 0x2be   : > { %1781 = vadd.xlane.f32.xlu0 %v1780_v40  ;;  %v4938_v42 = vpop.permute.xlu0 %2239 }
 0x2bf   : > { %1778 = vadd.xlane.f32.xlu1 %v1777_v24  ;;  %v4940_v0 = vpop.permute.xlu1 %2244 }
 0x2c2   : > { %v4942_v13 = vpop.permute.xlu0 %2249 }
 0x2c3   : > { %1784 = vadd.xlane.f32.xlu1 %v1783_v21  ;;  %v4944_v30 = vpop.permute.xlu1 %2254  ;;  %v1626_v21 = vld [vmem:[#allocation3] sm:$0xff] }
 0x2c6   : > { %v4946_v49 = vpop.permute.xlu0 %2259 }
 0x2c7   : > { %v4948_v54 = vpop.permute.xlu1 %2264 }
 0x2c8   : > { %5654 = vst [vmem:[#allocation16_spill] sm:$0xff] %v4948_v54 }
 0x2ca   : > { %v4950_v3 = vpop.permute.xlu0 %2269 }
 0x2cb   : > { %5655 = vst [vmem:[#allocation17_spill] sm:$0xff] %v4950_v3  ;;  %v4952_v51 = vpop.permute.xlu1 %2274 }
 0x2cc   : > { %5656 = vst [vmem:[#allocation18_spill] sm:$0xff] %v4952_v51 }
 0x2ce   : > { %v4954_v31 = vpop.permute.xlu0 %2279 }
 0x2cf   : > { %5657 = vst [vmem:[#allocation19_spill] sm:$0xff] %v4954_v31  ;;  %v4956_v17 = vpop.permute.xlu1 %2284 }
 0x2d0   : > { %5658 = vst [vmem:[#allocation20_spill] sm:$0xff] %v4956_v17 }
 0x2d2   : > { %v4958_v48 = vpop.permute.xlu0 %2289 }
 0x2d3   : > { %5659 = vst [vmem:[#allocation21_spill] sm:$0xff] %v4958_v48  ;;  %v4960_v11 = vpop.permute.xlu1 %2294 }
 0x2d4   : > { %2329 = vperm.xlu0 %3349, %v4933_v7   ;;  %5660 = vst [vmem:[#allocation22_spill] sm:$0xff] %v4960_v11 }
 0x2d6   : > { %v4962_v19 = vpop.permute.xlu0 %2299 }
 0x2d7   : > { %5661 = vst [vmem:[#allocation23_spill] sm:$0xff] %v4962_v19  ;;  %v4964_v47 = vpop.permute.xlu1 %2304  ;;  %v1646_v19 = vld [vmem:[#allocation3 + $0xa0] sm:$0xff] }
 0x2d8   : > { %5662 = vst [vmem:[#allocation24_spill] sm:$0xff] %v4964_v47 }
 0x2da   : > { %v4966_v35 = vpop.permute.xlu0 %2309 }
 0x2db   : > { %5663 = vst [vmem:[#allocation25_spill] sm:$0xff] %v4966_v35  ;;  %v4968_v39 = vpop.permute.xlu1 %2314 }
 0x2dc   : > { %5664 = vst [vmem:[#allocation26_spill] sm:$0xff] %v4968_v39 }
 0x2de   : > { %v4970_v60 = vpop.permute.xlu0 %2319 }
 0x2df   : > { %5665 = vst [vmem:[#allocation27_spill] sm:$0xff] %v4970_v60  ;;  %v4980_v40 = vpop.permute.xlu1 %2324 }
 0x2e0   : > { %5666 = vst [vmem:[#allocation28_spill] sm:$0xff] %v4980_v40 }
 0x305   : > { %v3185_v15 = vpop.f32.mrf.mxu1 }
 0x307   : > { %v3186_v25 = vpop.f32.mrf.mxu1 }
 0x308   : > { %v3187_v29 = vadd.f32 %v3186_v25, %v3185_v15  ;;  %v1658_v25 = vmul.f32 %v4519_v23, %v1626_v21 }
 0x309   : > { %v4973_v57 = vpop.f32.mrf.mxu1 }
 0x30a   : > { %v4975_v56 = vadd.f32 %v3187_v29, %v2332_v26  ;;  %v1629_v29 = vld [vmem:[#allocation3 + $0x18] sm:$0xff] }
 0x30b   : > { %v4978_v50 = vpop.f32.mrf.mxu1  ;;  %v1695_v58 = vpop.xlane.xlu0 %1694  ;;  %v1661_v62 = vmul.f32 %v4556_v36, %v1629_v29  ;;  %v1633_v29 = vld [vmem:[#allocation3 + $0x38] sm:$0xff] }
 0x30c   : > { %v1787_v24 = vadd.f32 %v1695_v58, %v1659_v4  ;;  %v1662_v4 = vmul.f32 %v4560_v14, %v1630_v1  ;;  %v1634_v1 = vld [vmem:[#allocation3 + $0x40] sm:$0xff] }
 0x30d   : > { %v4982_v45 = vpop.f32.mrf.mxu1 }
 0x30e   : > { %1820 = vst.msk [vmem:[#allocation3 + $0x8] sm:$0xff] %vm375_vm1, %v1787_v24  ;;  %v1632_v24 = vld [vmem:[#allocation3 + $0x30] sm:$0xff] }
 0x30f   : > { %v4986_v6 = vpop.f32.mrf.mxu1  ;;  %v1698_v15 = vpop.xlane.xlu0 %1697  ;;  %v1664_v14 = vmul.f32 %v4571_v55, %v1632_v24 }
 0x310   : > { %v1788_v34 = vadd.f32 %v1698_v15, %v1660_v61  ;;  %v1692_v26 = vpop.xlane.xlu1 %1691  ;;  %v1631_v61 = vld [vmem:[#allocation3 + $0x28] sm:$0xff] }
 0x311   : > { %v4989_v60 = vpop.f32.mrf.mxu1  ;;  %v1786_v40 = vadd.f32 %v1692_v26, %v1658_v25  ;;  %v1663_v36 = vmul.f32 %v4566_v27, %v1631_v61  ;;  %v1665_v27 = vmul.f32 %v4580_v22, %v1633_v29 }
 0x312   : > { %1821 = vst.msk [vmem:[#allocation3 + $0x10] sm:$0xff] %vm375_vm1, %v1788_v34 }
 0x313   : > { %1819 = vst.msk [vmem:[#allocation3] sm:$0xff] %vm375_vm1, %v1786_v40  ;;  %v4994_v58 = vpop.f32.mrf.mxu1  ;;  %v1704_v46 = vpop.xlane.xlu0 %1703 }
 0x314   : > { %v1790_v23 = vadd.f32 %v1704_v46, %v1662_v4  ;;  %v1701_v21 = vpop.xlane.xlu1 %1700 }
 0x315   : > { %v2464_v15 = vld [vmem:[#allocation3 + $0x8] sm:$0xff]  ;;  %v4997_v39 = vpop.f32.mrf.mxu1  ;;  %v1789_v35 = vadd.f32 %v1701_v21, %v1661_v62  ;;  %v1636_v21 = vld [vmem:[#allocation3 + $0x50] sm:$0xff] }
 0x316   : > { %3591 = vrcp.f32 %v2464_v15  ;;  %1823 = vst.msk [vmem:[#allocation3 + $0x20] sm:$0xff] %vm375_vm1, %v1790_v23  ;;  %v1666_v23 = vmul.f32 %v4585_v37, %v1634_v1  ;;  %v1668_v37 = vmul.f32 %v4598_v18, %v1636_v21 }
 0x317   : > { %1822 = vst.msk [vmem:[#allocation3 + $0x18] sm:$0xff] %vm375_vm1, %v1789_v35  ;;  %v5002_v40 = vpop.f32.mrf.mxu1  ;;  %v1710_v25 = vpop.xlane.xlu0 %1709 }
 0x318   : > { %v1792_v34 = vadd.f32 %v1710_v25, %v1664_v14  ;;  %v1707_v26 = vpop.xlane.xlu1 %1706  ;;  %v1635_v14 = vld [vmem:[#allocation3 + $0x48] sm:$0xff] }
 0x319   : > { %v5005_v4 = vpop.f32.mrf.mxu1  ;;  %v1791_v46 = vadd.f32 %v1707_v26, %v1663_v36  ;;  %v2465_v55 = vld [vmem:[#allocation3 + $0x10] sm:$0xff]  ;;  %v1667_v29 = vmul.f32 %v4596_v16, %v1635_v14 }
 0x31a   : > { %v2463_v62 = vld [vmem:[#allocation3] sm:$0xff]  ;;  %1825 = vst.msk [vmem:[#allocation3 + $0x30] sm:$0xff] %vm375_vm1, %v1792_v34 }
 0x31b   : > { %3593 = vrcp.f32 %v2463_v62  ;;  %1824 = vst.msk [vmem:[#allocation3 + $0x28] sm:$0xff] %vm375_vm1, %v1791_v46  ;;  %v5010_v35 = vpop.f32.mrf.mxu1  ;;  %v1716_v24 = vpop.xlane.xlu0 %1715  ;;  %v1638_v46 = vld [vmem:[#allocation3 + $0x60] sm:$0xff] }
 0x31c   : > { %v1794_v61 = vadd.f32 %v1716_v24, %v1666_v23  ;;  %v1713_v15 = vpop.xlane.xlu1 %1712  ;;  %3595 = vrcp.f32 %v2465_v55  ;;  %v1637_v24 = vld [vmem:[#allocation3 + $0x58] sm:$0xff]  ;;  %v1670_v18 = vmul.f32 %v4607_v8, %v1638_v46 }
 0x31d   : > { %v5013_v25 = vpop.f32.mrf.mxu1  ;;  %v1793_v36 = vadd.f32 %v1713_v15, %v1665_v27  ;;  %v2467_v1 = vld [vmem:[#allocation3 + $0x20] sm:$0xff]  ;;  %v1669_v14 = vmul.f32 %v4603_v28, %v1637_v24 }
 0x31e   : > { %v2466_v34 = vld [vmem:[#allocation3 + $0x18] sm:$0xff]  ;;  %1827 = vst.msk [vmem:[#allocation3 + $0x40] sm:$0xff] %vm375_vm1, %v1794_v61 }
 0x31f   : > { %3597 = vrcp.f32 %v2466_v34  ;;  %1826 = vst.msk [vmem:[#allocation3 + $0x38] sm:$0xff] %vm375_vm1, %v1793_v36  ;;  %v5018_v26 = vpop.f32.mrf.mxu1  ;;  %v1722_v22 = vpop.xlane.xlu0 %1721  ;;  %v1640_v34 = vld [vmem:[#allocation3 + $0x70] sm:$0xff] }
 0x320   : > { %v1796_v62 = vadd.f32 %v1722_v22, %v1668_v37  ;;  %v1719_v23 = vpop.xlane.xlu1 %1718  ;;  %3599 = vrcp.f32 %v2467_v1  ;;  %v1639_v1 = vld [vmem:[#allocation3 + $0x68] sm:$0xff]  ;;  %v1672_v46 = vmul.f32 %v4615_v12, %v1640_v34 }
 0x321   : > { %v5021_v27 = vpop.f32.mrf.mxu1  ;;  %v1795_v55 = vadd.f32 %v1719_v23, %v1667_v29  ;;  %v2469_v15 = vld [vmem:[#allocation3 + $0x30] sm:$0xff]  ;;  %v1671_v24 = vmul.f32 %v4613_v10, %v1639_v1 }
 0x322   : > { %v2468_v61 = vld [vmem:[#allocation3 + $0x28] sm:$0xff]  ;;  %1829 = vst.msk [vmem:[#allocation3 + $0x50] sm:$0xff] %vm375_vm1, %v1796_v62 }
 0x323   : > { %v3592_v21 = vpop.eup %3591  ;;  %3601 = vrcp.f32 %v2468_v61  ;;  %1828 = vst.msk [vmem:[#allocation3 + $0x48] sm:$0xff] %vm375_vm1, %v1795_v55  ;;  %v5026_v36 = vpop.f32.mrf.mxu1  ;;  %v1642_v61 = vld [vmem:[#allocation3 + $0x80] sm:$0xff] }
 0x324   : > { %v1728_v16 = vpop.xlane.xlu0 %1727  ;;  %2567 = vperm.xlu0 %3349, %v3592_v21   ;;  %v1725_v22 = vpop.xlane.xlu1 %1724  ;;  %3603 = vrcp.f32 %v2469_v15  ;;  %v1674_v34 = vmul.f32 %v4635_v59, %v1642_v61  ;;  %v5667_v61 = vld [vmem:[#allocation62_spill] sm:$0xff] }
 0x325   : > { %v1798_v37 = vadd.f32 %v1728_v16, %v1670_v18  ;;  %v5029_v29 = vpop.f32.mrf.mxu1  ;;  %v1797_v62 = vadd.f32 %v1725_v22, %v1669_v14  ;;  %v2471_v23 = vld [vmem:[#allocation3 + $0x40] sm:$0xff]  ;;  %v1641_v14 = vld [vmem:[#allocation3 + $0x78] sm:$0xff] }
 0x326   : > { %v2470_v8 = vld [vmem:[#allocation3 + $0x38] sm:$0xff] }
 0x327   : > { %1831 = vst.msk [vmem:[#allocation3 + $0x60] sm:$0xff] %vm375_vm1, %v1798_v37  ;;  %3605 = vrcp.f32 %v2470_v8  ;;  %1830 = vst.msk [vmem:[#allocation3 + $0x58] sm:$0xff] %vm375_vm1, %v1797_v62  ;;  %v5034_v55 = vpop.f32.mrf.mxu1  ;;  %v1673_v8 = vmul.f32 %v4631_v9, %v1641_v14 }
 0x328   : > { %v1734_v28 = vpop.xlane.xlu0 %1733  ;;  %v3594_v18 = vpop.eup %3593  ;;  %3607 = vrcp.f32 %v2471_v23  ;;  %v1643_v23 = vld [vmem:[#allocation3 + $0x88] sm:$0xff] }
 0x329   : > { %v1800_v21 = vadd.f32 %v1734_v28, %v1672_v46  ;;  %v1731_v16 = vpop.xlane.xlu1 %1730  ;;  %v5037_v15 = vpop.f32.mrf.mxu1  ;;  %2562 = vperm.xlu1 %3350, %v3594_v18   ;;  %v2473_v62 = vld [vmem:[#allocation3 + $0x50] sm:$0xff] }
 0x32a   : > { %v1799_v22 = vadd.f32 %v1731_v16, %v1671_v24  ;;  %v2472_v12 = vld [vmem:[#allocation3 + $0x48] sm:$0xff]  ;;  %v3596_v37 = vpop.eup %3595  ;;  %v1644_v46 = vld [vmem:[#allocation3 + $0x90] sm:$0xff] }
 0x32b   : > { %1833 = vst.msk [vmem:[#allocation3 + $0x70] sm:$0xff] %vm375_vm1, %v1800_v21  ;;  %3609 = vrcp.f32 %v2472_v12  ;;  %v5042_v10 = vpop.f32.mrf.mxu1 }
 0x32c   : > { %1832 = vst.msk [vmem:[#allocation3 + $0x68] sm:$0xff] %vm375_vm1, %v1799_v22  ;;  %v1740_v1 = vpop.xlane.xlu0 %1739  ;;  %v3598_v28 = vpop.eup %3597  ;;  %3611 = vrcp.f32 %v2473_v62  ;;  %v1676_v22 = vmul.f32 %v5667_v61, %v1644_v46  ;;  %v1645_v62 = vld [vmem:[#allocation3 + $0x98] sm:$0xff] }
 0x32d   : > { %v1802_v24 = vadd.f32 %v1740_v1, %v1674_v34  ;;  %v1737_v18 = vpop.xlane.xlu1 %1736  ;;  %v5045_v16 = vpop.f32.mrf.mxu1  ;;  %2572 = vperm.xlu1 %3350, %v3596_v37   ;;  %2577 = vperm.xlu0 %3349, %v3598_v28   ;;  %v5668_v34 = vld [vmem:[#allocation63_spill] sm:$0xff] }
 0x32e   : > { %v1801_v21 = vadd.f32 %v1737_v18, %v1673_v8  ;;  %v2474_v59 = vld [vmem:[#allocation3 + $0x58] sm:$0xff]  ;;  %v3600_v12 = vpop.eup %3599  ;;  %v2475_v47 = vld [vmem:[#allocation3 + $0x60] sm:$0xff]  ;;  %v1675_v1 = vmul.f32 %v5668_v34, %v1643_v23  ;;  %v1648_v34 = vld [vmem:[#allocation3 + $0xb0] sm:$0xff] }
 0x32f   : > { %1835 = vst.msk [vmem:[#allocation3 + $0x80] sm:$0xff] %vm375_vm1, %v1802_v24  ;;  %3613 = vrcp.f32 %v2474_v59  ;;  %v5050_v9 = vpop.f32.mrf.mxu1  ;;  %v5669_v24 = vld [vmem:[#allocation64_spill] sm:$0xff] }
 0x330   : > { %1834 = vst.msk [vmem:[#allocation3 + $0x78] sm:$0xff] %vm375_vm1, %v1801_v21  ;;  %v1746_v14 = vpop.xlane.xlu0 %1745  ;;  %v3602_v8 = vpop.eup %3601  ;;  %3615 = vrcp.f32 %v2475_v47  ;;  %v1678_v59 = vmul.f32 %v5669_v24, %v1646_v19  ;;  %v1647_v47 = vld [vmem:[#allocation3 + $0xa8] sm:$0xff] }
 0x331   : > { %v1804_v37 = vadd.f32 %v1746_v14, %v1676_v22  ;;  %v1743_v28 = vpop.xlane.xlu1 %1742  ;;  %2582 = vperm.xlu1 %3350, %v3600_v12   ;;  %2587 = vperm.xlu0 %3349, %v3602_v8   ;;  %v3604_v21 = vpop.eup %3603  ;;  %v5670_v22 = vld [vmem:[#allocation65_spill] sm:$0xff] }
 0x332   : > { %v1803_v18 = vadd.f32 %v1743_v28, %v1675_v1  ;;  %v2477_v61 = vld [vmem:[#allocation3 + $0x70] sm:$0xff]  ;;  %v5055_v11 = vpop.f32.mrf.mxu1  ;;  %v1677_v14 = vmul.f32 %v5670_v22, %v1645_v62  ;;  %v1650_v22 = vld [vmem:[#allocation3 + $0xc0] sm:$0xff] }
 0x333   : > { %v2476_v46 = vld [vmem:[#allocation3 + $0x68] sm:$0xff]  ;;  %1837 = vst.msk [vmem:[#allocation3 + $0x90] sm:$0xff] %vm375_vm1, %v1804_v37  ;;  %v5671_v37 = vld [vmem:[#allocation66_spill] sm:$0xff] }
 0x334   : > { %3617 = vrcp.f32 %v2476_v46  ;;  %1836 = vst.msk [vmem:[#allocation3 + $0x88] sm:$0xff] %vm375_vm1, %v1803_v18  ;;  %v1752_v23 = vpop.xlane.xlu0 %1751  ;;  %v3606_v1 = vpop.eup %3605  ;;  %v1680_v46 = vmul.f32 %v5671_v37, %v1648_v34 }
 0x335   : > { %v1806_v12 = vadd.f32 %v1752_v23, %v1678_v59  ;;  %v1749_v8 = vpop.xlane.xlu1 %1748  ;;  %2592 = vperm.xlu1 %3350, %v3604_v21   ;;  %2597 = vperm.xlu0 %3349, %v3606_v1   ;;  %3619 = vrcp.f32 %v2477_v61  ;;  %v3608_v24 = vpop.eup %3607  ;;  %v5672_v59 = vld [vmem:[#allocation67_spill] sm:$0xff] }
 0x336   : > { %v1805_v28 = vadd.f32 %v1749_v8, %v1677_v14  ;;  %v2479_v48 = vld [vmem:[#allocation3 + $0x80] sm:$0xff]  ;;  %v5061_v18 = vpop.f32.mrf.mxu1  ;;  %v1679_v23 = vmul.f32 %v5672_v59, %v1647_v47  ;;  %v1649_v61 = vld [vmem:[#allocation3 + $0xb8] sm:$0xff]  ;;  %v1652_v59 = vld [vmem:[#allocation3 + $0xd0] sm:$0xff] }
 0x337   : > { %v2478_v19 = vld [vmem:[#allocation3 + $0x78] sm:$0xff]  ;;  %1839 = vst.msk [vmem:[#allocation3 + $0xa0] sm:$0xff] %vm375_vm1, %v1806_v12  ;;  %v5673_v12 = vld [vmem:[#allocation9_spill] sm:$0xff] }
 0x338   : > { %3621 = vrcp.f32 %v2478_v19  ;;  %1838 = vst.msk [vmem:[#allocation3 + $0x98] sm:$0xff] %vm375_vm1, %v1805_v28  ;;  %v1758_v62 = vpop.xlane.xlu0 %1757  ;;  %v3610_v14 = vpop.eup %3609  ;;  %v1682_v19 = vmul.f32 %v5673_v12, %v1650_v22 }
 0x339   : > { %v1808_v21 = vadd.f32 %v1758_v62, %v1680_v46  ;;  %v1755_v1 = vpop.xlane.xlu1 %1754  ;;  %2602 = vperm.xlu1 %3350, %v3608_v24   ;;  %2607 = vperm.xlu0 %3349, %v3610_v14   ;;  %3623 = vrcp.f32 %v2479_v48  ;;  %v3612_v37 = vpop.eup %3611  ;;  %v5674_v46 = vld [vmem:[#allocation8_spill] sm:$0xff]  ;;  %v1651_v48 = vld [vmem:[#allocation3 + $0xc8] sm:$0xff] }
 0x33a   : > { %v1807_v8 = vadd.f32 %v1755_v1, %v1679_v23  ;;  %v2481_v17 = vld [vmem:[#allocation3 + $0x90] sm:$0xff]  ;;  %v5067_v28 = vpop.f32.mrf.mxu1  ;;  %v1681_v62 = vmul.f32 %v5674_v46, %v1649_v61  ;;  %v1654_v46 = vld [vmem:[#allocation3 + $0xe0] sm:$0xff] }
 0x33b   : > { %v2480_v34 = vld [vmem:[#allocation3 + $0x88] sm:$0xff]  ;;  %1841 = vst.msk [vmem:[#allocation3 + $0xb0] sm:$0xff] %vm375_vm1, %v1808_v21  ;;  %v5675_v21 = vld [vmem:[#allocation11_spill] sm:$0xff] }
 0x33c   : > { %3625 = vrcp.f32 %v2480_v34  ;;  %1840 = vst.msk [vmem:[#allocation3 + $0xa8] sm:$0xff] %vm375_vm1, %v1807_v8  ;;  %v1764_v47 = vpop.xlane.xlu0 %1763  ;;  %v3614_v23 = vpop.eup %3613  ;;  %v1684_v34 = vmul.f32 %v5675_v21, %v1652_v59 }
 0x33d   : > { %v1810_v24 = vadd.f32 %v1764_v47, %v1682_v19  ;;  %v1761_v14 = vpop.xlane.xlu1 %1760  ;;  %2612 = vperm.xlu1 %3350, %v3612_v37   ;;  %2617 = vperm.xlu0 %3349, %v3614_v23   ;;  %3627 = vrcp.f32 %v2481_v17  ;;  %v3616_v12 = vpop.eup %3615  ;;  %v5676_v19 = vld [vmem:[#allocation10_spill] sm:$0xff]  ;;  %v1653_v17 = vld [vmem:[#allocation3 + $0xd8] sm:$0xff] }
 0x33e   : > { %v1809_v1 = vadd.f32 %v1761_v14, %v1681_v62  ;;  %v2483_v31 = vld [vmem:[#allocation3 + $0xa0] sm:$0xff]  ;;  %v5073_v8 = vpop.f32.mrf.mxu1  ;;  %v1683_v47 = vmul.f32 %v5676_v19, %v1651_v48  ;;  %v1656_v19 = vld [vmem:[#allocation3 + $0xf0] sm:$0xff] }
 0x33f   : > { %v2482_v22 = vld [vmem:[#allocation3 + $0x98] sm:$0xff]  ;;  %1843 = vst.msk [vmem:[#allocation3 + $0xc0] sm:$0xff] %vm375_vm1, %v1810_v24  ;;  %v5677_v24 = vld [vmem:[#allocation13_spill] sm:$0xff] }
 0x340   : > { %3629 = vrcp.f32 %v2482_v22  ;;  %1842 = vst.msk [vmem:[#allocation3 + $0xb8] sm:$0xff] %vm375_vm1, %v1809_v1  ;;  %v1770_v61 = vpop.xlane.xlu0 %1769  ;;  %v1686_v22 = vmul.f32 %v5677_v24, %v1654_v46  ;;  %v5079_v1 = vpop.f32.mrf.mxu1 }
 0x341   : > { %v3618_v62 = vpop.eup %3617  ;;  %v1812_v37 = vadd.f32 %v1770_v61, %v1684_v34  ;;  %v1767_v23 = vpop.xlane.xlu1 %1766  ;;  %2622 = vperm.xlu1 %3350, %v3616_v12   ;;  %3631 = vrcp.f32 %v2483_v31  ;;  %v5678_v34 = vld [vmem:[#allocation12_spill] sm:$0xff]  ;;  %v1655_v31 = vld [vmem:[#allocation3 + $0xe8] sm:$0xff] }
 0x342   : > { %v1811_v14 = vadd.f32 %v1767_v23, %v1683_v47  ;;  %2627 = vperm.xlu0 %3349, %v3618_v62   ;;  %v3620_v21 = vpop.eup %3619  ;;  %v2485_v51 = vld [vmem:[#allocation3 + $0xb0] sm:$0xff]  ;;  %v1685_v61 = vmul.f32 %v5678_v34, %v1653_v17  ;;  %v5085_v3 = vpop.f32.mrf.mxu1 }
 0x343   : > { %v2484_v59 = vld [vmem:[#allocation3 + $0xa8] sm:$0xff]  ;;  %1845 = vst.msk [vmem:[#allocation3 + $0xd0] sm:$0xff] %vm375_vm1, %v1812_v37  ;;  %v5679_v37 = vld [vmem:[#allocation15_spill] sm:$0xff] }
 0x344   : > { %3633 = vrcp.f32 %v2484_v59  ;;  %1844 = vst.msk [vmem:[#allocation3 + $0xc8] sm:$0xff] %vm375_vm1, %v1811_v14  ;;  %v1776_v48 = vpop.xlane.xlu0 %1775  ;;  %v1688_v24 = vmul.f32 %v5679_v37, %v1656_v19 }
 0x345   : > { %v3622_v47 = vpop.eup %3621  ;;  %v1814_v12 = vadd.f32 %v1776_v48, %v1686_v22  ;;  %v1773_v62 = vpop.xlane.xlu1 %1772  ;;  %2632 = vperm.xlu1 %3350, %v3620_v21   ;;  %3635 = vrcp.f32 %v2485_v51  ;;  %v5680_v22 = vld [vmem:[#allocation14_spill] sm:$0xff] }
 0x346   : > { %v1813_v23 = vadd.f32 %v1773_v62, %v1685_v61  ;;  %2637 = vperm.xlu0 %3349, %v3622_v47   ;;  %v3624_v59 = vpop.eup %3623  ;;  %v2487_v14 = vld [vmem:[#allocation3 + $0xc0] sm:$0xff]  ;;  %v1687_v48 = vmul.f32 %v5680_v22, %v1655_v31  ;;  %v1657_v47 = vld [vmem:[#allocation3 + $0xf8] sm:$0xff]  ;;  %v5090_v62 = vpop.f32.mrf.mxu1 }
 0x347   : > { %v2486_v46 = vld [vmem:[#allocation3 + $0xb8] sm:$0xff]  ;;  %1847 = vst.msk [vmem:[#allocation3 + $0xe0] sm:$0xff] %vm375_vm1, %v1814_v12  ;;  %v1689_v31 = vmul.f32 %v4933_v7, %v1657_v47 }
 0x348   : > { %3637 = vrcp.f32 %v2486_v46  ;;  %1846 = vst.msk [vmem:[#allocation3 + $0xd8] sm:$0xff] %vm375_vm1, %v1813_v23  ;;  %v1782_v17 = vpop.xlane.xlu0 %1781 }
 0x349   : > { %v3626_v34 = vpop.eup %3625  ;;  %v1816_v61 = vadd.f32 %v1782_v17, %v1688_v24  ;;  %v1779_v21 = vpop.xlane.xlu1 %1778  ;;  %2642 = vperm.xlu1 %3350, %v3624_v59   ;;  %3639 = vrcp.f32 %v2487_v14 }
 0x34a   : > { %v1815_v51 = vadd.f32 %v1779_v21, %v1687_v48  ;;  %2647 = vperm.xlu0 %3349, %v3626_v34   ;;  %v3628_v19 = vpop.eup %3627  ;;  %v2489_v46 = vld [vmem:[#allocation3 + $0xd0] sm:$0xff]  ;;  %v5094_v17 = vpop.f32.mrf.mxu1 }
 0x34b   : > { %v2488_v12 = vld [vmem:[#allocation3 + $0xc8] sm:$0xff]  ;;  %1849 = vst.msk [vmem:[#allocation3 + $0xf0] sm:$0xff] %vm375_vm1, %v1816_v61 }
 0x34c   : > { %3641 = vrcp.f32 %v2488_v12  ;;  %1848 = vst.msk [vmem:[#allocation3 + $0xe8] sm:$0xff] %vm375_vm1, %v1815_v51  ;;  %v5097_v61 = vpop.f32.mrf.mxu1 }
 0x34d   : > { %v3630_v23 = vpop.eup %3629  ;;  %v1785_v37 = vpop.xlane.xlu1 %1784  ;;  %2652 = vperm.xlu1 %3350, %v3628_v19   ;;  %3643 = vrcp.f32 %v2489_v46 }
 0x34e   : > { %v1817_v24 = vadd.f32 %v1785_v37, %v1689_v31  ;;  %2657 = vperm.xlu0 %3349, %v3630_v23   ;;  %v3632_v14 = vpop.eup %3631  ;;  %v2491_v22 = vld [vmem:[#allocation3 + $0xe0] sm:$0xff]  ;;  %v5099_v19 = vpop.f32.mrf.mxu1 }
 0x34f   : > { %v2490_v59 = vld [vmem:[#allocation3 + $0xd8] sm:$0xff] }
 0x350   : > { %3645 = vrcp.f32 %v2490_v59  ;;  %1850 = vst.msk [vmem:[#allocation3 + $0xf8] sm:$0xff] %vm375_vm1, %v1817_v24  ;;  %v5101_v23 = vpop.f32.mrf.mxu1 }
 0x351   : > { %v3634_v48 = vpop.eup %3633  ;;  %2662 = vperm.xlu1 %3350, %v3632_v14   ;;  %3647 = vrcp.f32 %v2491_v22 }
 0x352   : > { %2667 = vperm.xlu0 %3349, %v3634_v48   ;;  %v3636_v7 = vpop.eup %3635  ;;  %v2493_v21 = vld [vmem:[#allocation3 + $0xf0] sm:$0xff]  ;;  %v5103_v59 = vpop.f32.mrf.mxu1 }
 0x353   : > { %v2492_v34 = vld [vmem:[#allocation3 + $0xe8] sm:$0xff] }
 0x354   : > { %3649 = vrcp.f32 %v2492_v34  ;;  %v5105_v48 = vpop.f32.mrf.mxu1 }
 0x355   : > { %v3638_v47 = vpop.eup %3637  ;;  %2672 = vperm.xlu1 %3350, %v3636_v7   ;;  %3651 = vrcp.f32 %v2493_v21 }
 0x356   : > { %2677 = vperm.xlu0 %3349, %v3638_v47   ;;  %v3640_v12 = vpop.eup %3639  ;;  %v5107_v7 = vpop.f32.mrf.mxu1 }
 0x357   : > { %v2494_v51 = vld [vmem:[#allocation3 + $0xf8] sm:$0xff] }
 0x358   : > { %3653 = vrcp.f32 %v2494_v51  ;;  %v5109_v21 = vpop.f32.mrf.mxu1 }
 0x359   : > { %v3642_v46 = vpop.eup %3641  ;;  %2682 = vperm.xlu1 %3350, %v3640_v12  }
 0x35a   : > { %2687 = vperm.xlu0 %3349, %v3642_v46   ;;  %v3644_v31 = vpop.eup %3643  ;;  %v5111_v47 = vpop.f32.mrf.mxu1 }
 0x35b   : > { %5681 = vst [vmem:[#allocation29_spill] sm:$0xff] %v5111_v47 }
 0x35c   : > { %v5113_v51 = vpop.f32.mrf.mxu1 }
 0x35d   : > { %v3646_v37 = vpop.eup %3645  ;;  %2692 = vperm.xlu1 %3350, %v3644_v31   ;;  %5682 = vst [vmem:[#allocation30_spill] sm:$0xff] %v5113_v51  ;;  %v2335_v51 = vmul.f32 0.0, %v4912_v38 }
 0x35e   : > { %2697 = vperm.xlu0 %3349, %v3646_v37   ;;  %v3648_v24 = vpop.eup %3647  ;;  %v5115_v12 = vpop.f32.mrf.mxu1 }
 0x35f   : > { %5683 = vst [vmem:[#allocation31_spill] sm:$0xff] %v5115_v12  ;;  %v3190_v12 = vadd.f32 %v4978_v50, %v4973_v57 }
 0x360   : > { %v5117_v46 = vpop.f32.mrf.mxu1 }
 0x361   : > { %v3650_v14 = vpop.eup %3649  ;;  %2702 = vperm.xlu1 %3350, %v3648_v24   ;;  %5684 = vst [vmem:[#allocation32_spill] sm:$0xff] %v5117_v46  ;;  %v5136_v46 = vpop.permute.xlu0 %2329 }
 0x362   : > { %2707 = vperm.xlu0 %3349, %v3650_v14   ;;  %v3652_v22 = vpop.eup %3651  ;;  %v5119_v31 = vpop.f32.mrf.mxu1  ;;  %5692 = vst [vmem:[#allocation40_spill] sm:$0xff] %v5136_v46  ;;  %v2786_v46 = vld [vmem:[%s5145_s9 + $0x8] sm:$0xff] }
 0x363   : > { %5685 = vst [vmem:[#allocation33_spill] sm:$0xff] %v5119_v31 }
 0x364   : > { %v5121_v37 = vpop.f32.mrf.mxu1 }
 0x365   : > { %v3654_v34 = vpop.eup %3653  ;;  %2712 = vperm.xlu1 %3350, %v3652_v22   ;;  %5686 = vst [vmem:[#allocation34_spill] sm:$0xff] %v5121_v37  ;;  %v2334_v37 = vmul.f32 0.0, %v4910_v43 }
 0x366   : > { %2717 = vperm.xlu0 %3349, %v3654_v34   ;;  %v5123_v24 = vpop.f32.mrf.mxu1 }
 0x367   : > { %5687 = vst [vmem:[#allocation35_spill] sm:$0xff] %v5123_v24  ;;  %v2333_v24 = vmul.f32 0.0, %v4876_v5 }
 0x368   : > { %v5125_v14 = vpop.f32.mrf.mxu1 }
 0x369   : > { %5688 = vst [vmem:[#allocation36_spill] sm:$0xff] %v5125_v14  ;;  %v2365_v14 = vadd.f32 %v3190_v12, %v2333_v24  ;;  %v3193_v12 = vadd.f32 %v4986_v6, %v4982_v45  ;;  %v3196_v24 = vadd.f32 %v4994_v58, %v4989_v60  ;;  %v2785_v60 = vld [vmem:[%s5145_s9] sm:$0xff] }
 0x36a   : > { %v5127_v22 = vpop.f32.mrf.mxu1 }
 0x36b   : > { %5689 = vst [vmem:[#allocation37_spill] sm:$0xff] %v5127_v22  ;;  %v2366_v45 = vadd.f32 %v3193_v12, %v2334_v37  ;;  %v2367_v6 = vadd.f32 %v3196_v24, %v2335_v51  ;;  %v3205_v51 = vadd.f32 %v5018_v26, %v5013_v25  ;;  %v2338_v12 = vmul.f32 0.0, %v4921_v44 }
 0x36c   : > { %v5129_v34 = vpop.f32.mrf.mxu1  ;;  %v2339_v24 = vmul.f32 0.0, %v4923_v41 }
 0x36d   : > { %5690 = vst [vmem:[#allocation38_spill] sm:$0xff] %v5129_v34  ;;  %v5149_v34 = vstv %s2527_s19  ;;  %s3661_s19 = scalar_lea.vmem %s3660_s18, 8192 }
 0x36e   : > { %v5131_v54 = vpop.f32.mrf.mxu1  ;;  %p3663_p2 = scmp.lt.s32.totalorder %s3661_s19, %s3655_s16 }
 0x36f   : > { %5691 = vst [vmem:[#allocation39_spill] sm:$0xff] %v5131_v54 }
 0x370   : > { %v5138_v31 = vpop.f32.mrf.mxu1  ;;  %p3664_p3 = por %p3663_p2, %p3662_p1 }
 0x371   : > { %5693 = vst [vmem:[#allocation41_spill] sm:$0xff] %v5138_v31 }
 0x372   : > { %v5147_v54 = vpop.f32.mrf.mxu1  ;;  %p3665_p5 = pnand %p3664_p3, %p3658_p0 }
 0x373   : > { %5694 = vst [vmem:[#allocation42_spill] sm:$0xff] %v5147_v54 }
 0x374   : > { %v5159_v31 = vpop.f32.mrf.mxu1 }
 0x376   : > { %v5172_v43 = vpop.f32.mrf.mxu1 }
 0x39f   : > { %v2568_v57 = vpop.permute.xlu0 %2567 }
 0x3a0   : > { %v2721_v50 = vmul.f32 %v2568_v57, %v2365_v14  ;;  %v3199_v14 = vadd.f32 %v5002_v40, %v4997_v39  ;;  %v3202_v57 = vadd.f32 %v5010_v35, %v5005_v4  ;;  %v2337_v39 = vmul.f32 0.0, %v4916_v2 }
 0x3a2   : > { %v2754_v5 = vmul.f32 %v5149_v34, %v2721_v50  ;;  %v2788_v50 = vld [vmem:[%s5145_s9 + $0x18] sm:$0xff] }
 0x3a4   : > { %v2818_v22 = vadd.f32 %v2786_v46, %v2754_v5  ;;  %v2563_v54 = vpop.permute.xlu1 %2562  ;;  %v2787_v5 = vld [vmem:[%s5145_s9 + $0x10] sm:$0xff] }
 0x3a5   : > { %v2720_v47 = vmul.f32 %v2563_v54, %v4975_v56  ;;  %v2336_v54 = vmul.f32 0.0, %v4914_v63  ;;  %v5183_v63 = vpop.f32.mrf.mxu1 }
 0x3a6   : > { %2850 = vst [vmem:[%s5168_s10 + $0x8] sm:$0xff] %v2818_v22  ;;  %v2369_v22 = vadd.f32 %v3202_v57, %v2337_v39 }
 0x3a7   : > { %v2753_v38 = vmul.f32 %v5149_v34, %v2720_v47  ;;  %v2368_v46 = vadd.f32 %v3199_v14, %v2336_v54  ;;  %v3208_v47 = vadd.f32 %v5026_v36, %v5021_v27  ;;  %v3211_v36 = vadd.f32 %v5034_v55, %v5029_v29  ;;  %v5196_v44 = vpop.f32.mrf.mxu1 }
 0x3a8   : > { %v2578_v56 = vpop.permute.xlu0 %2577  ;;  %v2573_v58 = vpop.permute.xlu1 %2572  ;;  %v2370_v54 = vadd.f32 %v3205_v51, %v2338_v12  ;;  %v2340_v29 = vmul.f32 0.0, %v4925_v32  ;;  %v2341_v55 = vmul.f32 0.0, %v4927_v33  ;;  %v3217_v51 = vadd.f32 %v5050_v9, %v5045_v16 }
 0x3a9   : > { %v2817_v40 = vadd.f32 %v2785_v60, %v2753_v38  ;;  %v2723_v4 = vmul.f32 %v2578_v56, %v2367_v6  ;;  %v2722_v35 = vmul.f32 %v2573_v58, %v2366_v45  ;;  %v3214_v45 = vadd.f32 %v5042_v10, %v5037_v15  ;;  %v2790_v6 = vld [vmem:[%s5145_s9 + $0x28] sm:$0xff]  ;;  %v2789_v38 = vld [vmem:[%s5145_s9 + $0x20] sm:$0xff]  ;;  %v5210_v32 = vpop.f32.mrf.mxu1 }
 0x3aa   : > { %v2371_v39 = vadd.f32 %v3208_v47, %v2339_v24  ;;  %v3220_v47 = vadd.f32 %v5061_v18, %v5055_v11  ;;  %v2343_v12 = vmul.f32 0.0, %v4931_v52 }
 0x3ab   : > { %2849 = vst [vmem:[%s5168_s10] sm:$0xff] %v2817_v40  ;;  %v2756_v2 = vmul.f32 %v5149_v34, %v2723_v4  ;;  %v2755_v37 = vmul.f32 %v5149_v34, %v2722_v35 }
 0x3ac   : > { %v2588_v14 = vpop.permute.xlu0 %2587  ;;  %v2583_v25 = vpop.permute.xlu1 %2582 }
 0x3ad   : > { %v2820_v26 = vadd.f32 %v2788_v50, %v2756_v2  ;;  %v2819_v57 = vadd.f32 %v2787_v5, %v2755_v37  ;;  %v2725_v60 = vmul.f32 %v2588_v14, %v2369_v22  ;;  %v2724_v27 = vmul.f32 %v2583_v25, %v2368_v46  ;;  %v2792_v50 = vld [vmem:[%s5145_s9 + $0x38] sm:$0xff]  ;;  %v2791_v5 = vld [vmem:[%s5145_s9 + $0x30] sm:$0xff] }
 0x3ae   : > { %v2372_v46 = vadd.f32 %v3211_v36, %v2340_v29  ;;  %v2373_v22 = vadd.f32 %v3214_v45, %v2341_v55  ;;  %v2342_v37 = vmul.f32 0.0, %v4929_v53  ;;  %v3223_v25 = vadd.f32 %v5073_v8, %v5067_v28  ;;  %v5224_v53 = vpop.f32.mrf.mxu1  ;;  %v2796_v29 = vld [vmem:[%s5145_s9 + $0x58] sm:$0xff]  ;;  %v2795_v55 = vld [vmem:[%s5145_s9 + $0x50] sm:$0xff] }
 0x3af   : > { %2852 = vst [vmem:[%s5168_s10 + $0x18] sm:$0xff] %v2820_v26  ;;  %2851 = vst [vmem:[%s5168_s10 + $0x10] sm:$0xff] %v2819_v57  ;;  %v2758_v41 = vmul.f32 %v5149_v34, %v2725_v60  ;;  %v2757_v56 = vmul.f32 %v5149_v34, %v2724_v27  ;;  %v3226_v26 = vadd.f32 %v5085_v3, %v5079_v1  ;;  %v2794_v57 = vld [vmem:[%s5145_s9 + $0x48] sm:$0xff]  ;;  %v2793_v60 = vld [vmem:[%s5145_s9 + $0x40] sm:$0xff]  ;;  %v2344_v28 = vmul.f32 0.0, %v4936_v20 }
 0x3b0   : > { %v2598_v15 = vpop.permute.xlu0 %2597  ;;  %v2593_v10 = vpop.permute.xlu1 %2592  ;;  %v2374_v27 = vadd.f32 %v3217_v51, %v2342_v37  ;;  %v2375_v36 = vadd.f32 %v3220_v47, %v2343_v12  ;;  %v2345_v3 = vmul.f32 0.0, %v4938_v42  ;;  %v2797_v51 = vld [vmem:[%s5145_s9 + $0x60] sm:$0xff] }
 0x3b1   : > { %v2822_v58 = vadd.f32 %v2790_v6, %v2758_v41  ;;  %v2821_v40 = vadd.f32 %v2789_v38, %v2757_v56  ;;  %v2727_v4 = vmul.f32 %v2598_v15, %v2371_v39  ;;  %v2726_v35 = vmul.f32 %v2593_v10, %v2370_v54  ;;  %v5238_v20 = vpop.f32.mrf.mxu1 }
 0x3b2   : > { %v2376_v41 = vadd.f32 %v3223_v25, %v2344_v28  ;;  %v2377_v56 = vadd.f32 %v3226_v26, %v2345_v3  ;;  %v3229_v15 = vadd.f32 %v5094_v17, %v5090_v62  ;;  %v3232_v10 = vadd.f32 %v5099_v19, %v5097_v61  ;;  %v5695_v25 = vld [vmem:[#allocation29_spill] sm:$0xff] }
 0x3b3   : > { %2854 = vst [vmem:[%s5168_s10 + $0x28] sm:$0xff] %v2822_v58  ;;  %2853 = vst [vmem:[%s5168_s10 + $0x20] sm:$0xff] %v2821_v40  ;;  %v2760_v33 = vmul.f32 %v5149_v34, %v2727_v4  ;;  %v2759_v2 = vmul.f32 %v5149_v34, %v2726_v35  ;;  %v2346_v40 = vmul.f32 0.0, %v4940_v0  ;;  %v2347_v4 = vmul.f32 0.0, %v4942_v13  ;;  %v5252_v0 = vpop.f32.mrf.mxu1  ;;  %v5699_v28 = vld [vmem:[#allocation17_spill] sm:$0xff] }
 0x3b4   : > { %v2608_v16 = vpop.permute.xlu0 %2607  ;;  %v2603_v9 = vpop.permute.xlu1 %2602  ;;  %v3241_v26 = vadd.f32 %v5695_v25, %v5109_v21  ;;  %v2351_v3 = vmul.f32 0.0, %v5699_v28  ;;  %v5712_v28 = vld [vmem:[#allocation41_spill] sm:$0xff] }
 0x3b5   : > { %v2824_v24 = vadd.f32 %v2792_v50, %v2760_v33  ;;  %v2823_v11 = vadd.f32 %v2791_v5, %v2759_v2  ;;  %v2729_v18 = vmul.f32 %v2608_v16, %v2373_v22  ;;  %v2728_v14 = vmul.f32 %v2603_v9, %v2372_v46  ;;  %v2798_v5 = vld [vmem:[%s5145_s9 + $0x68] sm:$0xff] }
 0x3b6   : > { %v3235_v22 = vadd.f32 %v5103_v59, %v5101_v23  ;;  %v3238_v50 = vadd.f32 %v5107_v7, %v5105_v48  ;;  %v2378_v47 = vadd.f32 %v3229_v15, %v2346_v40  ;;  %v2379_v33 = vadd.f32 %v3232_v10, %v2347_v4  ;;  %v2802_v10 = vld [vmem:[%s5145_s9 + $0x88] sm:$0xff] }
 0x3b7   : > { %2856 = vst [vmem:[%s5168_s10 + $0x38] sm:$0xff] %v2824_v24  ;;  %2855 = vst [vmem:[%s5168_s10 + $0x30] sm:$0xff] %v2823_v11  ;;  %v2762_v52 = vmul.f32 %v5149_v34, %v2729_v18  ;;  %v2761_v45 = vmul.f32 %v5149_v34, %v2728_v14  ;;  %v2348_v23 = vmul.f32 0.0, %v4944_v30  ;;  %v2349_v59 = vmul.f32 0.0, %v4946_v49  ;;  %v2800_v18 = vld [vmem:[%s5145_s9 + $0x78] sm:$0xff]  ;;  %v2799_v14 = vld [vmem:[%s5145_s9 + $0x70] sm:$0xff]  ;;  %v5266_v30 = vpop.f32.mrf.mxu1 }
 0x3b8   : > { %v2618_v8 = vpop.permute.xlu0 %2617  ;;  %v2613_v1 = vpop.permute.xlu1 %2612 }
 0x3b9   : > { %v2826_v6 = vadd.f32 %v2794_v57, %v2762_v52  ;;  %v2825_v38 = vadd.f32 %v2793_v60, %v2761_v45  ;;  %v2731_v54 = vmul.f32 %v2618_v8, %v2375_v36  ;;  %v2730_v39 = vmul.f32 %v2613_v1, %v2374_v27  ;;  %v5696_v57 = vld [vmem:[#allocation30_spill] sm:$0xff]  ;;  %v5697_v60 = vld [vmem:[#allocation31_spill] sm:$0xff]  ;;  %v5698_v52 = vld [vmem:[#allocation16_spill] sm:$0xff]  ;;  %v5280_v4 = vpop.f32.mrf.mxu1 }
 0x3ba   : > { %v2380_v24 = vadd.f32 %v3235_v22, %v2348_v23  ;;  %v2381_v11 = vadd.f32 %v3238_v50, %v2349_v59  ;;  %v3244_v27 = vadd.f32 %v5697_v60, %v5696_v57  ;;  %v2350_v45 = vmul.f32 0.0, %v5698_v52  ;;  %v2804_v23 = vld [vmem:[%s5145_s9 + $0x98] sm:$0xff]  ;;  %v2803_v59 = vld [vmem:[%s5145_s9 + $0x90] sm:$0xff] }
 0x3bb   : > { %2858 = vst [vmem:[%s5168_s10 + $0x48] sm:$0xff] %v2826_v6  ;;  %2857 = vst [vmem:[%s5168_s10 + $0x40] sm:$0xff] %v2825_v38  ;;  %v2764_v42 = vmul.f32 %v5149_v34, %v2731_v54  ;;  %v2763_v58 = vmul.f32 %v5149_v34, %v2730_v39  ;;  %v5700_v39 = vld [vmem:[#allocation32_spill] sm:$0xff] }
 0x3bc   : > { %v2623_v17 = vpop.permute.xlu1 %2622  ;;  %v2383_v40 = vadd.f32 %v3244_v27, %v2351_v3  ;;  %v5713_v3 = vld [vmem:[#allocation42_spill] sm:$0xff] }
 0x3bd   : > { %v2628_v62 = vpop.permute.xlu0 %2627  ;;  %v2828_v35 = vadd.f32 %v2796_v29, %v2764_v42  ;;  %v2827_v61 = vadd.f32 %v2795_v55, %v2763_v58  ;;  %v2732_v46 = vmul.f32 %v2623_v17, %v2376_v41  ;;  %v5701_v41 = vld [vmem:[#allocation33_spill] sm:$0xff]  ;;  %v5702_v29 = vld [vmem:[#allocation34_spill] sm:$0xff]  ;;  %v5703_v55 = vld [vmem:[#allocation35_spill] sm:$0xff]  ;;  %v2382_v58 = vadd.f32 %v3241_v26, %v2350_v45 }
 0x3be   : > { %v2733_v19 = vmul.f32 %v2628_v62, %v2377_v56  ;;  %v3247_v56 = vadd.f32 %v5701_v41, %v5700_v39  ;;  %v3250_v15 = vadd.f32 %v5703_v55, %v5702_v29  ;;  %v2801_v42 = vld [vmem:[%s5145_s9 + $0x80] sm:$0xff]  ;;  %v5711_v26 = vld [vmem:[#allocation21_spill] sm:$0xff]  ;;  %v5714_v29 = vld [vmem:[#allocation22_spill] sm:$0xff] }
 0x3bf   : > { %2860 = vst [vmem:[%s5168_s10 + $0x58] sm:$0xff] %v2828_v35  ;;  %2859 = vst [vmem:[%s5168_s10 + $0x50] sm:$0xff] %v2827_v61  ;;  %v2765_v2 = vmul.f32 %v5149_v34, %v2732_v46  ;;  %v5704_v35 = vld [vmem:[#allocation18_spill] sm:$0xff]  ;;  %v2355_v57 = vmul.f32 0.0, %v5711_v26  ;;  %v2356_v55 = vmul.f32 0.0, %v5714_v29 }
 0x3c0   : > { %v2766_v13 = vmul.f32 %v5149_v34, %v2733_v19  ;;  %v2633_v7 = vpop.permute.xlu1 %2632  ;;  %v2352_v61 = vmul.f32 0.0, %v5704_v35  ;;  %v5705_v19 = vld [vmem:[#allocation19_spill] sm:$0xff] }
 0x3c1   : > { %v2638_v48 = vpop.permute.xlu0 %2637  ;;  %v2829_v12 = vadd.f32 %v2797_v51, %v2765_v2  ;;  %v2734_v9 = vmul.f32 %v2633_v7, %v2378_v47  ;;  %v2353_v46 = vmul.f32 0.0, %v5705_v19  ;;  %v5707_v7 = vld [vmem:[#allocation37_spill] sm:$0xff]  ;;  %v2807_v19 = vld [vmem:[%s5145_s9 + $0xb0] sm:$0xff] }
 0x3c2   : > { %v2830_v37 = vadd.f32 %v2798_v5, %v2766_v13  ;;  %v2735_v16 = vmul.f32 %v2638_v48, %v2379_v33  ;;  %v2384_v13 = vadd.f32 %v3247_v56, %v2352_v61  ;;  %v5706_v48 = vld [vmem:[#allocation36_spill] sm:$0xff]  ;;  %v2808_v61 = vld [vmem:[%s5145_s9 + $0xb8] sm:$0xff] }
 0x3c3   : > { %2861 = vst [vmem:[%s5168_s10 + $0x60] sm:$0xff] %v2829_v12  ;;  %v2767_v36 = vmul.f32 %v5149_v34, %v2734_v9  ;;  %v2385_v2 = vadd.f32 %v3250_v15, %v2353_v46  ;;  %v5708_v12 = vld [vmem:[#allocation38_spill] sm:$0xff]  ;;  %v5715_v15 = vld [vmem:[#allocation23_spill] sm:$0xff]  ;;  %v3265_v46 = vadd.f32 %v5196_v44, %v5183_v63 }
 0x3c4   : > { %2862 = vst [vmem:[%s5168_s10 + $0x68] sm:$0xff] %v2830_v37  ;;  %v2768_v49 = vmul.f32 %v5149_v34, %v2735_v16  ;;  %v2643_v8 = vpop.permute.xlu1 %2642  ;;  %v3253_v37 = vadd.f32 %v5707_v7, %v5706_v48  ;;  %v5709_v16 = vld [vmem:[#allocation39_spill] sm:$0xff]  ;;  %v3271_v48 = vadd.f32 %v5252_v0, %v5238_v20  ;;  %v3274_v7 = vadd.f32 %v5280_v4, %v5266_v30 }
 0x3c5   : > { %v2648_v21 = vpop.permute.xlu0 %2647  ;;  %v2831_v6 = vadd.f32 %v2799_v14, %v2767_v36  ;;  %v2736_v54 = vmul.f32 %v2643_v8, %v2380_v24  ;;  %v3256_v9 = vadd.f32 %v5709_v16, %v5708_v12  ;;  %v5294_v24 = vpop.f32.mrf.mxu1  ;;  %v5710_v14 = vld [vmem:[#allocation20_spill] sm:$0xff]  ;;  %v3262_v8 = vadd.f32 %v5172_v43, %v5159_v31  ;;  %v5719_v0 = vld [vmem:[#allocation27_spill] sm:$0xff] }
 0x3c6   : > { %v2832_v1 = vadd.f32 %v2800_v18, %v2768_v49  ;;  %v2737_v38 = vmul.f32 %v2648_v21, %v2381_v11  ;;  %v2354_v25 = vmul.f32 0.0, %v5710_v14  ;;  %v3259_v21 = vadd.f32 %v5713_v3, %v5712_v28  ;;  %v2809_v12 = vld [vmem:[%s5145_s9 + $0xc0] sm:$0xff]  ;;  %v2811_v28 = vld [vmem:[%s5145_s9 + $0xd0] sm:$0xff] }
 0x3c7   : > { %2863 = vst [vmem:[%s5168_s10 + $0x70] sm:$0xff] %v2831_v6  ;;  %v2769_v17 = vmul.f32 %v5149_v34, %v2736_v54  ;;  %v2805_v6 = vld [vmem:[%s5145_s9 + $0xa0] sm:$0xff]  ;;  %v2387_v54 = vadd.f32 %v3256_v9, %v2355_v57  ;;  %v3276_v39 = vpop.f32.mrf.mxu1  ;;  %v2361_v26 = vmul.f32 0.0, %v5719_v0 }
 0x3c8   : > { %2864 = vst [vmem:[%s5168_s10 + $0x78] sm:$0xff] %v2832_v1  ;;  %v2770_v62 = vmul.f32 %v5149_v34, %v2737_v38  ;;  %v2653_v50 = vpop.permute.xlu1 %2652  ;;  %v2806_v1 = vld [vmem:[%s5145_s9 + $0xa8] sm:$0xff]  ;;  %v2386_v38 = vadd.f32 %v3253_v37, %v2354_v25  ;;  %v5718_v25 = vld [vmem:[#allocation26_spill] sm:$0xff]  ;;  %v3277_v3 = vadd.f32 %v3276_v39, %v5294_v24 }
 0x3c9   : > { %v2658_v22 = vpop.permute.xlu0 %2657  ;;  %v2833_v51 = vadd.f32 %v2801_v42, %v2769_v17  ;;  %v2738_v33 = vmul.f32 %v2653_v50, %v2382_v58  ;;  %v2388_v17 = vadd.f32 %v3259_v21, %v2356_v55  ;;  %v3278_v50 = vpop.f32.mrf.mxu1  ;;  %v2810_v37 = vld [vmem:[%s5145_s9 + $0xc8] sm:$0xff]  ;;  %v2360_v20 = vmul.f32 0.0, %v5718_v25 }
 0x3ca   : > { %v2834_v5 = vadd.f32 %v2802_v10, %v2770_v62  ;;  %v2739_v47 = vmul.f32 %v2658_v22, %v2383_v40  ;;  %v2357_v10 = vmul.f32 0.0, %v5715_v15  ;;  %v3268_v22 = vadd.f32 %v5224_v53, %v5210_v32  ;;  %v2814_v39 = vld [vmem:[%s5145_s9 + $0xe8] sm:$0xff] }
 0x3cb   : > { %2865 = vst [vmem:[%s5168_s10 + $0x80] sm:$0xff] %v2833_v51  ;;  %v2771_v18 = vmul.f32 %v5149_v34, %v2738_v33 }
 0x3cc   : > { %2866 = vst [vmem:[%s5168_s10 + $0x88] sm:$0xff] %v2834_v5  ;;  %v2772_v11 = vmul.f32 %v5149_v34, %v2739_v47  ;;  %v2663_v27 = vpop.permute.xlu1 %2662  ;;  %v2389_v35 = vadd.f32 %v3262_v8, %v2357_v10  ;;  %v5716_v47 = vld [vmem:[#allocation24_spill] sm:$0xff] }
 0x3cd   : > { %v2668_v60 = vpop.permute.xlu0 %2667  ;;  %v2835_v36 = vadd.f32 %v2803_v59, %v2771_v18  ;;  %v2740_v45 = vmul.f32 %v2663_v27, %v2384_v13  ;;  %v2358_v33 = vmul.f32 0.0, %v5716_v47  ;;  %v5717_v13 = vld [vmem:[#allocation25_spill] sm:$0xff] }
 0x3ce   : > { %v2836_v49 = vadd.f32 %v2804_v23, %v2772_v11  ;;  %v2741_v52 = vmul.f32 %v2668_v60, %v2385_v2  ;;  %v2359_v2 = vmul.f32 0.0, %v5717_v13  ;;  %v3279_v11 = vpop.f32.mrf.mxu1 }
 0x3cf   : > { %2867 = vst [vmem:[%s5168_s10 + $0x90] sm:$0xff] %v2835_v36  ;;  %v2773_v56 = vmul.f32 %v5149_v34, %v2740_v45  ;;  %v2390_v16 = vadd.f32 %v3265_v46, %v2358_v33  ;;  %v2392_v36 = vadd.f32 %v3271_v48, %v2360_v20  ;;  %v2812_v45 = vld [vmem:[%s5145_s9 + $0xd8] sm:$0xff]  ;;  %v3280_v21 = vadd.f32 %v3279_v11, %v3278_v50  ;;  %v2815_v50 = vld [vmem:[%s5145_s9 + $0xf0] sm:$0xff] }
 0x3d0   : > { %2868 = vst [vmem:[%s5168_s10 + $0x98] sm:$0xff] %v2836_v49  ;;  %v2774_v41 = vmul.f32 %v5149_v34, %v2741_v52  ;;  %v2673_v43 = vpop.permute.xlu1 %2672  ;;  %v2391_v9 = vadd.f32 %v3268_v22, %v2359_v2  ;;  %v2393_v52 = vadd.f32 %v3274_v7, %v2361_v26  ;;  %v2816_v22 = vld [vmem:[%s5145_s9 + $0xf8] sm:$0xff] }
 0x3d1   : > { %v2678_v31 = vpop.permute.xlu0 %2677  ;;  %v2837_v58 = vadd.f32 %v2805_v6, %v2773_v56  ;;  %v2742_v62 = vmul.f32 %v2673_v43, %v2386_v38  ;;  %v5720_v6 = vld [vmem:[#allocation28_spill] sm:$0xff] }
 0x3d2   : > { %v2838_v42 = vadd.f32 %v2806_v1, %v2774_v41  ;;  %v2743_v40 = vmul.f32 %v2678_v31, %v2387_v54  ;;  %v2362_v38 = vmul.f32 0.0, %v5720_v6  ;;  %v5721_v54 = vld [vmem:[#allocation40_spill] sm:$0xff] }
 0x3d3   : > { %2869 = vst [vmem:[%s5168_s10 + $0xa0] sm:$0xff] %v2837_v58  ;;  %v2775_v51 = vmul.f32 %v5149_v34, %v2742_v62  ;;  %v2363_v41 = vmul.f32 0.0, %v5721_v54  ;;  %v2813_v31 = vld [vmem:[%s5145_s9 + $0xe0] sm:$0xff] }
 0x3d4   : > { %2870 = vst [vmem:[%s5168_s10 + $0xa8] sm:$0xff] %v2838_v42  ;;  %v2776_v5 = vmul.f32 %v5149_v34, %v2743_v40  ;;  %v2683_v63 = vpop.permute.xlu1 %2682  ;;  %v2394_v43 = vadd.f32 %v3277_v3, %v2362_v38 }
 0x3d5   : > { %v2688_v23 = vpop.permute.xlu0 %2687  ;;  %v2839_v59 = vadd.f32 %v2807_v19, %v2775_v51  ;;  %v2744_v53 = vmul.f32 %v2683_v63, %v2388_v17  ;;  %v2395_v42 = vadd.f32 %v3280_v21, %v2363_v41 }
 0x3d6   : > { %v2840_v44 = vadd.f32 %v2808_v61, %v2776_v5  ;;  %v2745_v32 = vmul.f32 %v2688_v23, %v2389_v35 }
 0x3d7   : > { %2871 = vst [vmem:[%s5168_s10 + $0xb0] sm:$0xff] %v2839_v59  ;;  %v2777_v14 = vmul.f32 %v5149_v34, %v2744_v53 }
 0x3d8   : > { %2872 = vst [vmem:[%s5168_s10 + $0xb8] sm:$0xff] %v2840_v44  ;;  %v2778_v18 = vmul.f32 %v5149_v34, %v2745_v32  ;;  %v2693_v4 = vpop.permute.xlu1 %2692 }
 0x3d9   : > { %v2698_v30 = vpop.permute.xlu0 %2697  ;;  %v2841_v60 = vadd.f32 %v2809_v12, %v2777_v14  ;;  %v2746_v49 = vmul.f32 %v2693_v4, %v2390_v16 }
 0x3da   : > { %v2842_v57 = vadd.f32 %v2810_v37, %v2778_v18  ;;  %v2747_v27 = vmul.f32 %v2698_v30, %v2391_v9 }
 0x3db   : > { %2873 = vst [vmem:[%s5168_s10 + $0xc0] sm:$0xff] %v2841_v60  ;;  %v2779_v1 = vmul.f32 %v5149_v34, %v2746_v49 }
 0x3dc   : > { %2874 = vst [vmem:[%s5168_s10 + $0xc8] sm:$0xff] %v2842_v57  ;;  %v2780_v8 = vmul.f32 %v5149_v34, %v2747_v27  ;;  %v2703_v29 = vpop.permute.xlu1 %2702 }
 0x3dd   : > { %v2708_v56 = vpop.permute.xlu0 %2707  ;;  %v2843_v15 = vadd.f32 %v2811_v28, %v2779_v1  ;;  %v2748_v24 = vmul.f32 %v2703_v29, %v2392_v36 }
 0x3de   : > { %v2844_v55 = vadd.f32 %v2812_v45, %v2780_v8  ;;  %v2749_v10 = vmul.f32 %v2708_v56, %v2393_v52 }
 0x3df   : > { %2875 = vst [vmem:[%s5168_s10 + $0xd0] sm:$0xff] %v2843_v15  ;;  %v2781_v40 = vmul.f32 %v5149_v34, %v2748_v24 }
 0x3e0   : > { %2876 = vst [vmem:[%s5168_s10 + $0xd8] sm:$0xff] %v2844_v55  ;;  %v2782_v58 = vmul.f32 %v5149_v34, %v2749_v10  ;;  %v2713_v17 = vpop.permute.xlu1 %2712 }
 0x3e1   : > { %v2718_v62 = vpop.permute.xlu0 %2717  ;;  %v2845_v61 = vadd.f32 %v2813_v31, %v2781_v40  ;;  %v2750_v46 = vmul.f32 %v2713_v17, %v2394_v43 }
 0x3e2   : > { %v2846_v35 = vadd.f32 %v2814_v39, %v2782_v58  ;;  %v2751_v19 = vmul.f32 %v2718_v62, %v2395_v42 }
 0x3e3   : > { %2877 = vst [vmem:[%s5168_s10 + $0xe0] sm:$0xff] %v2845_v61  ;;  %v2783_v51 = vmul.f32 %v5149_v34, %v2750_v46 }
 0x3e4   : > { %2878 = vst [vmem:[%s5168_s10 + $0xe8] sm:$0xff] %v2846_v35  ;;  %v2784_v5 = vmul.f32 %v5149_v34, %v2751_v19 }
 0x3e5   : > { %v2847_v33 = vadd.f32 %v2815_v50, %v2783_v51 }
 0x3e6   : > { %v2848_v47 = vadd.f32 %v2816_v22, %v2784_v5 }
 0x3e7   : > { %2879 = vst [vmem:[%s5168_s10 + $0xf0] sm:$0xff] %v2847_v33 }
 0x3e8   : > { %2880 = vst [vmem:[%s5168_s10 + $0xf8] sm:$0xff] %v2848_v47 }
 0x3e9   : > { %3668 = shalt.err (!%p3665_p5)
}
 0x3ea   : > { %s3669_s0 = scalar_lea.hbm %s5364_s15, 4096  ;;  %s3673_s30 = scalar_lea.hbm %s5422_s5, 8192 }
 0x3eb   : > { %p3670_p6 = scmp.ne.s32.totalorder %s5364_s15, %s3669_s0  ;;  %p3674_p10 = scmp.lt.s32.totalorder %s5364_s15, %s5422_s5 }
 0x3ec   : > { %p3675_p11 = scmp.lt.s32.totalorder %s3673_s30, %s3669_s0 }
 0x3ed   : > { %p3671_p7 = pnand %p3670_p6, %p3812_p4 }
 0x3ee   : > { %p3676_p12 = por %p3675_p11, %p3674_p10 }
 0x3ef   : > { %p3672_p9 = pneg %p3671_p7 }
 0x3f1   : > { %p3677_p13 = pnand %p3676_p12, %p3672_p9 }
 0x3f3   : > { %3680 = shalt.err (!%p3677_p13)
}
 0x3f4   : > { %s3737_s10 = smov 128   ;;  %s3738_s11 = smov 8  }
 0x3f5   : > { %3289 = dma.vmem_to_hbm [thread:$0]  (%p3812_p4), %s5366_s12, 4096, %s5364_s15, %s5372_s23, %s3737_s10, %s3737_s10, %s3738_s11  }
 0x3f6 PF: > { %p3295_p0 = scmp.ge.s32.totalorder %s3731_s25, 2  ;;  %s2912_s13 = sand.u32 1, %s3711_s20  }
 0x3f7   : > { %s2913_s14 = scalar_lea.sflag [#allocation6], %s2912_s13 }
 0x3f8   : > { %p3292_p1 = pnand %p3295_p0, %p3819_p8 }
 0x3fa   : > { %p3293_p2 = pneg %p3292_p1 }
 0x3fc   : > { %3706 = dma.done.wait (%p3293_p2), %s2913_s14, 4096  }
 0x3fd   : > { %3708 = vsyncadd (%p3293_p2), %s2913_s14, 4294963200  ;;  %s19_s25 = sadd.s32 1, %s3731_s25   ;;  %s5722_s20 = smov %s3715_s21 }
 0x3fe   : > { %p16_p3 = scmp.ge.s32.totalorder %s19_s25, 4   ;;  %s5723_s21 = smov %s3719_s22 }
 0x3ff   : > { %s5724_s22 = smov %s3825_s7  ;;  %s5725_s23 = smov %s3727_s24 }
 0x400   : > { %s5726_s24 = smov %s5728_s27  ;;  %18 = sbr.rel (!%p16_p3) target bundleno = 6 (0x6), region = 92 }
 0x405   :  { %2918 = vsyncpa [#allocation6], 1 }
 0x406   :  { %2920 = vsyncpa [#allocation6 + $0x1], 1 }

</bundles_post_ra>
